<compile_context>
chip_gen: v7x
topology: tpu7x:2x2x1
jax: 0.10.0
libtpu: 0.0.40
codegen_flags: <defaults>
</compile_context>

<pallas_src>
import jax
import jax.numpy as jnp
from jax.experimental import pallas as pl
from jax.experimental.pallas import tpu as pltpu

B, S, H, VOCAB = 2, 256, 128, 512   # batch, max_length, hidden, vocab (downscaled)


# ---------------------------------------------------------------------------
# Single fused kernel (one grid step):
#   onehot = (ids == vocab_iota)                      (VPU)
#   x      = onehot @ table_bf16                      (MXU, exact table rows)
#   y      = gelu(x_bf16 @ W_bf16 + b)                (MXU f32 acc + VPU/EUP)
#   mask   = seq_iota < lens[b]   (built in-kernel)   (VPU)
#   emb    = sum_s(y * mask) / n_valid                (VPU mul + sublane reduce)
#   score  = cos(emb, emb[::-1])  (rowwise)           (VPU/EUP epilogue)
# Nothing round-trips through HBM except the tiny inputs and the two outputs.
# ---------------------------------------------------------------------------
def fused_embed_kernel(lens_ref, ids_ref, table_ref, w_ref, b_ref,
                       emb_ref, score_ref):
    BS = B * S

    # ---- in-kernel embedding gather: one-hot matmul on the MXU -------------
    ids = ids_ref[...]                                            # (BS, 1) i32
    vocab_iota = jax.lax.broadcasted_iota(jnp.int32, (BS, VOCAB), 1)
    onehot = (vocab_iota == ids).astype(jnp.bfloat16)             # (BS, VOCAB)
    x = jnp.dot(onehot, table_ref[...],
                preferred_element_type=jnp.float32)               # exact rows
    x = x.astype(jnp.bfloat16)                                    # (BS, H) bf16

    # ---- stand-in encoder: dense + GELU (f32 accumulate / f32 epilogue) ----
    y = jnp.dot(x, w_ref[...], preferred_element_type=jnp.float32)  # (BS, H)
    y = jax.nn.gelu(y + b_ref[...], approximate=True)

    # ---- build the attention mask in-kernel from prefetched lengths --------
    row = jax.lax.broadcasted_iota(jnp.int32, (BS, 1), 0)         # global row
    limit = jnp.zeros((BS, 1), jnp.int32)
    for b in range(B):                                            # unrolled, B=2
        lb = jnp.minimum(lens_ref[b], S)
        limit = jnp.where(row >= b * S, b * S + lb, limit)
    mask = (row < limit).astype(jnp.float32)                      # (BS, 1)

    ym = y * mask                                                 # (BS, H)

    # ---- masked mean-pool per batch row (static sublane slices) ------------
    bi_h = jax.lax.broadcasted_iota(jnp.int32, (B, H), 0)
    emb = jnp.zeros((B, H), jnp.float32)
    for b in range(B):
        sl = slice(b * S, (b + 1) * S)
        seg = jnp.sum(ym[sl, :], axis=0, keepdims=True)           # (1, H)
        cnt = jnp.sum(mask[sl, :], axis=0, keepdims=True)         # (1, 1)
        mean = seg / jnp.maximum(cnt, 1.0)                        # guard empty
        emb = jnp.where(bi_h == b, mean, emb)
    emb_ref[...] = emb

    # ---- fused cos_score(q=emb, a=emb[::-1]) epilogue -----------------------
    sq = jnp.sum(emb * emb, axis=1, keepdims=True)                # (B, 1)
    qn = emb * jax.lax.rsqrt(sq)                                  # EUP rsqrt
    an = jnp.zeros_like(qn)
    for b in range(B):                                            # a = q[::-1]
        an = jnp.where(bi_h == b, qn[B - 1 - b:B - b, :], an)
    score_ref[...] = jnp.sum(qn * an, axis=1, keepdims=True)      # (B, 1)


@jax.jit
def embed_and_score(token_ids, lengths, table_bf, w_bf, b_f32):
    ids_col = token_ids.reshape(B * S, 1).astype(jnp.int32)       # 2 KiB column
    emb, scores = pl.pallas_call(
        fused_embed_kernel,
        out_shape=(jax.ShapeDtypeStruct((B, H), jnp.float32),
                   jax.ShapeDtypeStruct((B, 1), jnp.float32)),
        grid_spec=pltpu.PrefetchScalarGridSpec(
            num_scalar_prefetch=1,          # lengths -> SMEM
            grid=(1,),                      # single step (whole batch per block)
            in_specs=[
                pl.BlockSpec((B * S, 1), lambda i, lens: (0, 0)),   # ids column
                pl.BlockSpec((VOCAB, H), lambda i, lens: (0, 0)),   # table bf16
                pl.BlockSpec((H, H),     lambda i, lens: (0, 0)),   # W bf16
                pl.BlockSpec((1, H),     lambda i, lens: (0, 0)),   # bias f32
            ],
            out_specs=(
                pl.BlockSpec((B, H), lambda i, lens: (0, 0)),       # pooled emb
                pl.BlockSpec((B, 1), lambda i, lens: (0, 0)),       # cos scores
            ),
        ),
        compiler_params=pltpu.CompilerParams(
            dimension_semantics=("arbitrary",)),   # 1 step: nothing to shard
    )(lengths, ids_col, table_bf, w_bf, b_f32)
    return emb, scores[:, 0]


if __name__ == "__main__":
    key = jax.random.PRNGKey(0)
    k_emb, k_w, k_tok = jax.random.split(key, 3)

    # deterministic synthetic parameters (stand-in for pretrained BERT weights)
    emb_table = jax.random.normal(k_emb, (VOCAB, H), jnp.float32) * 0.02
    w_enc = jax.random.normal(k_w, (H, H), jnp.float32) * (1.0 / H ** 0.5)
    b_enc = jnp.zeros((1, H), jnp.float32)

    # deterministic synthetic "tokenizer output" (padding='max_length')
    token_ids = jax.random.randint(k_tok, (B, S), 0, VOCAB, dtype=jnp.int32)
    lengths = jnp.array([200, 100], jnp.int32)
    attn_mask = (jnp.arange(S)[None, :] < lengths[:, None]).astype(jnp.float32)

    # bf16 MXU operands (one-time parameter prep; accumulation stays f32)
    table_bf = emb_table.astype(jnp.bfloat16)
    w_bf = w_enc.astype(jnp.bfloat16)

    # hot path: single fused Pallas kernel (forward() + cos_score())
    emb, scores = embed_and_score(token_ids, lengths, table_bf, w_bf, b_enc)
    jax.block_until_ready((emb, scores))

    # reference check (same bf16 operands, f32 accumulate, f32 epilogue)
    x_bf = jnp.take(table_bf, token_ids, axis=0)                  # (B, S, H) bf16
    ref_y = jnp.einsum("bsh,hd->bsd", x_bf, w_bf,
                       preferred_element_type=jnp.float32)
    ref_hidden = jax.nn.gelu(ref_y + b_enc[0], approximate=True)
    ref_emb = (ref_hidden * attn_mask[..., None]).sum(1) / attn_mask.sum(1)[..., None]
    qn = ref_emb / jnp.sqrt((ref_emb ** 2).sum(1, keepdims=True))
    an = ref_emb[::-1] / jnp.sqrt((ref_emb[::-1] ** 2).sum(1, keepdims=True))
    ref_scores = jnp.sum(qn * an, axis=1)

    assert jnp.allclose(emb, ref_emb, atol=1e-3, rtol=1e-3)
    assert jnp.allclose(scores, ref_scores, atol=1e-3, rtol=1e-3)

    print("KERNEL_OK")
</pallas_src>

<mosaic_0001>
module attributes {stable_mosaic.version = 11 : i64} {
  func.func @fused_embed_kernel(%arg0: i32, %arg1: memref<2xi32, #tpu.memory_space<smem>>, %arg2: memref<512x1xi32, #tpu.memory_space<vmem>>, %arg3: memref<512x128xbf16, #tpu.memory_space<vmem>>, %arg4: memref<128x128xbf16, #tpu.memory_space<vmem>>, %arg5: memref<1x128xf32, #tpu.memory_space<vmem>>, %arg6: memref<2x128xf32, #tpu.memory_space<vmem>>, %arg7: memref<2x1xf32, #tpu.memory_space<vmem>>) attributes {dimension_semantics = [#tpu.dimension_semantics<arbitrary>], iteration_bounds = array<i64: 1>, scalar_prefetch = 1 : i64, scratch_operands = 0 : i64, tpu.core_type = #tpu.core_type<tc>, window_params = [{pipeline_mode = #tpu.pipeline_mode<synchronous>, transform_indices = @transform_0, window_bounds = array<i64: 512, 1>}, {pipeline_mode = #tpu.pipeline_mode<synchronous>, transform_indices = @transform_1, window_bounds = array<i64: 512, 128>}, {pipeline_mode = #tpu.pipeline_mode<synchronous>, transform_indices = @transform_2, window_bounds = array<i64: 128, 128>}, {pipeline_mode = #tpu.pipeline_mode<synchronous>, transform_indices = @transform_3, window_bounds = array<i64: 1, 128>}, {pipeline_mode = #tpu.pipeline_mode<synchronous>, transform_indices = @transform_4, window_bounds = array<i64: 2, 128>}, {pipeline_mode = #tpu.pipeline_mode<synchronous>, transform_indices = @transform_5, window_bounds = array<i64: 2, 1>}]} {
    %c0 = arith.constant 0 : index
    %c0_0 = arith.constant 0 : index
    %0 = vector.load %arg2[%c0, %c0_0] : memref<512x1xi32, #tpu.memory_space<vmem>>, vector<512x1xi32>
    %1 = tpu.iota {dimensions = array<i32: 1>} : vector<512x512xi32>
    %2 = vector.broadcast %0 : vector<512x1xi32> to vector<512x512xi32>
    %3 = arith.cmpi eq, %1, %2 : vector<512x512xi32>
    %4 = arith.extui %3 : vector<512x512xi1> to vector<512x512xi32>
    %5 = arith.sitofp %4 : vector<512x512xi32> to vector<512x512xf32>
    %6 = arith.truncf %5 : vector<512x512xf32> to vector<512x512xbf16>
    %c0_1 = arith.constant 0 : index
    %c0_2 = arith.constant 0 : index
    %7 = vector.load %arg3[%c0_1, %c0_2] : memref<512x128xbf16, #tpu.memory_space<vmem>>, vector<512x128xbf16>
    %cst = arith.constant dense<0.000000e+00> : vector<512x128xf32>
    %8 = tpu.matmul %6, %7, %cst {dimension_numbers = #tpu.dot_dimension_numbers<[1], [0], [0], [1], [0, 0, 1, 1], [], []>} : vector<512x512xbf16>, vector<512x128xbf16>, vector<512x128xf32> -> vector<512x128xf32>
    %9 = arith.truncf %8 : vector<512x128xf32> to vector<512x128xbf16>
    %c0_3 = arith.constant 0 : index
    %c0_4 = arith.constant 0 : index
    %10 = vector.load %arg4[%c0_3, %c0_4] : memref<128x128xbf16, #tpu.memory_space<vmem>>, vector<128x128xbf16>
    %cst_5 = arith.constant dense<0.000000e+00> : vector<512x128xf32>
    %11 = tpu.matmul %9, %10, %cst_5 {dimension_numbers = #tpu.dot_dimension_numbers<[1], [0], [0], [1], [0, 0, 1, 1], [], []>} : vector<512x128xbf16>, vector<128x128xbf16>, vector<512x128xf32> -> vector<512x128xf32>
    %c0_6 = arith.constant 0 : index
    %c0_7 = arith.constant 0 : index
    %12 = vector.load %arg5[%c0_6, %c0_7] : memref<1x128xf32, #tpu.memory_space<vmem>>, vector<1x128xf32>
    %13 = vector.broadcast %12 : vector<1x128xf32> to vector<512x128xf32>
    %14 = arith.addf %11, %13 : vector<512x128xf32>
    %15 = arith.mulf %14, %14 : vector<512x128xf32>
    %16 = arith.mulf %14, %15 : vector<512x128xf32>
    %cst_8 = arith.constant 4.471500e-02 : f32
    %17 = vector.broadcast %cst_8 : f32 to vector<512x128xf32>
    %18 = arith.mulf %17, %16 : vector<512x128xf32>
    %19 = arith.addf %14, %18 : vector<512x128xf32>
    %cst_9 = arith.constant 0.797884583 : f32
    %20 = vector.broadcast %cst_9 : f32 to vector<512x128xf32>
    %21 = arith.mulf %20, %19 : vector<512x128xf32>
    %22 = math.tanh %21 : vector<512x128xf32>
    %cst_10 = arith.constant 1.000000e+00 : f32
    %23 = vector.broadcast %cst_10 : f32 to vector<512x128xf32>
    %24 = arith.addf %23, %22 : vector<512x128xf32>
    %cst_11 = arith.constant 5.000000e-01 : f32
    %25 = vector.broadcast %cst_11 : f32 to vector<512x128xf32>
    %26 = arith.mulf %25, %24 : vector<512x128xf32>
    %27 = arith.mulf %14, %26 : vector<512x128xf32>
    %28 = tpu.iota {dimensions = array<i32: 0>} : vector<512x1xi32>
    %c0_i32 = arith.constant 0 : i32
    %29 = vector.broadcast %c0_i32 : i32 to vector<512x1xi32>
    %c0_12 = arith.constant 0 : index
    %30 = memref.load %arg1[%c0_12] : memref<2xi32, #tpu.memory_space<smem>>
    %c256_i32 = arith.constant 256 : i32
    %31 = arith.minsi %30, %c256_i32 : i32
    %c0_i32_13 = arith.constant 0 : i32
    %32 = vector.broadcast %c0_i32_13 : i32 to vector<512x1xi32>
    %33 = arith.cmpi sge, %28, %32 : vector<512x1xi32>
    %c0_i32_14 = arith.constant 0 : i32
    %34 = arith.addi %c0_i32_14, %31 : i32
    %35 = vector.broadcast %34 : i32 to vector<512x1xi32>
    %36 = arith.select %33, %35, %29 : vector<512x1xi1>, vector<512x1xi32>
    %c1 = arith.constant 1 : index
    %37 = memref.load %arg1[%c1] : memref<2xi32, #tpu.memory_space<smem>>
    %c256_i32_15 = arith.constant 256 : i32
    %38 = arith.minsi %37, %c256_i32_15 : i32
    %c256_i32_16 = arith.constant 256 : i32
    %39 = vector.broadcast %c256_i32_16 : i32 to vector<512x1xi32>
    %40 = arith.cmpi sge, %28, %39 : vector<512x1xi32>
    %c256_i32_17 = arith.constant 256 : i32
    %41 = arith.addi %c256_i32_17, %38 : i32
    %42 = vector.broadcast %41 : i32 to vector<512x1xi32>
    %43 = arith.select %40, %42, %36 : vector<512x1xi1>, vector<512x1xi32>
    %44 = arith.cmpi slt, %28, %43 : vector<512x1xi32>
    %45 = arith.extui %44 : vector<512x1xi1> to vector<512x1xi32>
    %46 = arith.sitofp %45 : vector<512x1xi32> to vector<512x1xf32>
    %47 = vector.broadcast %46 : vector<512x1xf32> to vector<512x128xf32>
    %48 = arith.mulf %27, %47 : vector<512x128xf32>
    %49 = tpu.iota {dimensions = array<i32: 0>} : vector<2x128xi32>
    %cst_18 = arith.constant 0.000000e+00 : f32
    %50 = vector.broadcast %cst_18 : f32 to vector<2x128xf32>
    %51 = vector.extract_strided_slice %48 {offsets = [0, 0], sizes = [256, 128], strides = [1, 1]} : vector<512x128xf32> to vector<256x128xf32>
    %cst_19 = arith.constant dense<0.000000e+00> : vector<128xf32>
    %52 = vector.multi_reduction <add>, %51, %cst_19 [0] : vector<256x128xf32> to vector<128xf32>
    %53 = vector.shape_cast %52 : vector<128xf32> to vector<1x128xf32>
    %54 = vector.extract_strided_slice %46 {offsets = [0, 0], sizes = [256, 1], strides = [1, 1]} : vector<512x1xf32> to vector<256x1xf32>
    %cst_20 = arith.constant dense<0.000000e+00> : vector<1xf32>
    %55 = vector.multi_reduction <add>, %54, %cst_20 [0] : vector<256x1xf32> to vector<1xf32>
    %56 = vector.shape_cast %55 : vector<1xf32> to vector<1x1xf32>
    %cst_21 = arith.constant 1.000000e+00 : f32
    %57 = vector.broadcast %cst_21 : f32 to vector<1x1xf32>
    %58 = arith.maximumf %56, %57 : vector<1x1xf32>
    %59 = vector.broadcast %58 : vector<1x1xf32> to vector<1x128xf32>
    %60 = arith.divf %53, %59 : vector<1x128xf32>
    %c0_i32_22 = arith.constant 0 : i32
    %61 = vector.broadcast %c0_i32_22 : i32 to vector<2x128xi32>
    %62 = arith.cmpi eq, %49, %61 : vector<2x128xi32>
    %63 = vector.shape_cast %60 : vector<1x128xf32> to vector<1x128xf32>
    %64 = vector.broadcast %63 : vector<1x128xf32> to vector<2x128xf32>
    %65 = arith.select %62, %64, %50 : vector<2x128xi1>, vector<2x128xf32>
    %66 = vector.extract_strided_slice %48 {offsets = [256, 0], sizes = [256, 128], strides = [1, 1]} : vector<512x128xf32> to vector<256x128xf32>
    %cst_23 = arith.constant dense<0.000000e+00> : vector<128xf32>
    %67 = vector.multi_reduction <add>, %66, %cst_23 [0] : vector<256x128xf32> to vector<128xf32>
    %68 = vector.shape_cast %67 : vector<128xf32> to vector<1x128xf32>
    %69 = vector.extract_strided_slice %46 {offsets = [256, 0], sizes = [256, 1], strides = [1, 1]} : vector<512x1xf32> to vector<256x1xf32>
    %cst_24 = arith.constant dense<0.000000e+00> : vector<1xf32>
    %70 = vector.multi_reduction <add>, %69, %cst_24 [0] : vector<256x1xf32> to vector<1xf32>
    %71 = vector.shape_cast %70 : vector<1xf32> to vector<1x1xf32>
    %cst_25 = arith.constant 1.000000e+00 : f32
    %72 = vector.broadcast %cst_25 : f32 to vector<1x1xf32>
    %73 = arith.maximumf %71, %72 : vector<1x1xf32>
    %74 = vector.broadcast %73 : vector<1x1xf32> to vector<1x128xf32>
    %75 = arith.divf %68, %74 : vector<1x128xf32>
    %c1_i32 = arith.constant 1 : i32
    %76 = vector.broadcast %c1_i32 : i32 to vector<2x128xi32>
    %77 = arith.cmpi eq, %49, %76 : vector<2x128xi32>
    %78 = vector.shape_cast %75 : vector<1x128xf32> to vector<1x128xf32>
    %79 = vector.broadcast %78 : vector<1x128xf32> to vector<2x128xf32>
    %80 = arith.select %77, %79, %65 : vector<2x128xi1>, vector<2x128xf32>
    %c0_26 = arith.constant 0 : index
    %c0_27 = arith.constant 0 : index
    %81 = vector.load %arg6[%c0_26, %c0_27] : memref<2x128xf32, #tpu.memory_space<vmem>>, vector<2x128xf32>
    tpu.vector_store %arg6[%c0_26, %c0_27], %80 {strides = array<i32>} : memref<2x128xf32, #tpu.memory_space<vmem>>, vector<2x128xf32>,
    %82 = arith.mulf %80, %80 : vector<2x128xf32>
    %cst_28 = arith.constant dense<0.000000e+00> : vector<2xf32>
    %83 = vector.multi_reduction <add>, %82, %cst_28 [1] : vector<2x128xf32> to vector<2xf32>
    %84 = vector.shape_cast %83 : vector<2xf32> to vector<2x1xf32>
    %85 = math.rsqrt %84 : vector<2x1xf32>
    %86 = vector.broadcast %85 : vector<2x1xf32> to vector<2x128xf32>
    %87 = arith.mulf %80, %86 : vector<2x128xf32>
    %cst_29 = arith.constant 0.000000e+00 : f32
    %88 = vector.broadcast %cst_29 : f32 to vector<2x128xf32>
    %c0_i32_30 = arith.constant 0 : i32
    %89 = vector.broadcast %c0_i32_30 : i32 to vector<2x128xi32>
    %90 = arith.cmpi eq, %49, %89 : vector<2x128xi32>
    %91 = vector.extract_strided_slice %87 {offsets = [1, 0], sizes = [1, 128], strides = [1, 1]} : vector<2x128xf32> to vector<1x128xf32>
    %92 = vector.shape_cast %91 : vector<1x128xf32> to vector<1x128xf32>
    %93 = vector.broadcast %92 : vector<1x128xf32> to vector<2x128xf32>
    %94 = arith.select %90, %93, %88 : vector<2x128xi1>, vector<2x128xf32>
    %c1_i32_31 = arith.constant 1 : i32
    %95 = vector.broadcast %c1_i32_31 : i32 to vector<2x128xi32>
    %96 = arith.cmpi eq, %49, %95 : vector<2x128xi32>
    %97 = vector.extract_strided_slice %87 {offsets = [0, 0], sizes = [1, 128], strides = [1, 1]} : vector<2x128xf32> to vector<1x128xf32>
    %98 = vector.shape_cast %97 : vector<1x128xf32> to vector<1x128xf32>
    %99 = vector.broadcast %98 : vector<1x128xf32> to vector<2x128xf32>
    %100 = arith.select %96, %99, %94 : vector<2x128xi1>, vector<2x128xf32>
    %101 = arith.mulf %87, %100 : vector<2x128xf32>
    %cst_32 = arith.constant dense<0.000000e+00> : vector<2xf32>
    %102 = vector.multi_reduction <add>, %101, %cst_32 [1] : vector<2x128xf32> to vector<2xf32>
    %103 = vector.shape_cast %102 : vector<2xf32> to vector<2x1xf32>
    %c0_33 = arith.constant 0 : index
    %c0_34 = arith.constant 0 : index
    %104 = vector.load %arg7[%c0_33, %c0_34] : memref<2x1xf32, #tpu.memory_space<vmem>>, vector<2x1xf32>
    tpu.vector_store %arg7[%c0_33, %c0_34], %103 {strides = array<i32>} : memref<2x1xf32, #tpu.memory_space<vmem>>, vector<2x1xf32>,
    return
  }
  func.func @transform_0(%arg0: i32, %arg1: memref<2xi32, #tpu.memory_space<smem>>) -> (i32, i32) {
    %c0_i32 = arith.constant 0 : i32
    %c0_i32_0 = arith.constant 0 : i32
    %c0_i32_1 = arith.constant 0 : i32
    return %c0_i32, %c0_i32_0 : i32, i32
  }
  func.func @transform_1(%arg0: i32, %arg1: memref<2xi32, #tpu.memory_space<smem>>) -> (i32, i32) {
    %c0_i32 = arith.constant 0 : i32
    %c0_i32_0 = arith.constant 0 : i32
    %c0_i32_1 = arith.constant 0 : i32
    return %c0_i32, %c0_i32_0 : i32, i32
  }
  func.func @transform_2(%arg0: i32, %arg1: memref<2xi32, #tpu.memory_space<smem>>) -> (i32, i32) {
    %c0_i32 = arith.constant 0 : i32
    %c0_i32_0 = arith.constant 0 : i32
    %c0_i32_1 = arith.constant 0 : i32
    return %c0_i32, %c0_i32_0 : i32, i32
  }
  func.func @transform_3(%arg0: i32, %arg1: memref<2xi32, #tpu.memory_space<smem>>) -> (i32, i32) {
    %c0_i32 = arith.constant 0 : i32
    %c0_i32_0 = arith.constant 0 : i32
    %c0_i32_1 = arith.constant 0 : i32
    return %c0_i32, %c0_i32_0 : i32, i32
  }
  func.func @transform_4(%arg0: i32, %arg1: memref<2xi32, #tpu.memory_space<smem>>) -> (i32, i32) {
    %c0_i32 = arith.constant 0 : i32
    %c0_i32_0 = arith.constant 0 : i32
    %c0_i32_1 = arith.constant 0 : i32
    return %c0_i32, %c0_i32_0 : i32, i32
  }
  func.func @transform_5(%arg0: i32, %arg1: memref<2xi32, #tpu.memory_space<smem>>) -> (i32, i32) {
    %c0_i32 = arith.constant 0 : i32
    %c0_i32_0 = arith.constant 0 : i32
    %c0_i32_1 = arith.constant 0 : i32
    return %c0_i32, %c0_i32_0 : i32, i32
  }
}

</mosaic_0001>

<bundles_post_ra>
// kernel: embed_and_score.1
= control target key start
LH: loop header
LB: loop body
LE: loop exit
PB: predicated region body
PF: predicated region fallthrough
CT: control target
= control target key end

     0   :  { %s7706_s0 = inlined_call_operand.vmem [shape: s32[2], index: 0, kind: input, shape index: {}]   ;;  %s7707_s1 = inlined_call_operand.vmem [shape: s32[512,1], index: 1, kind: input, shape index: {}]   ;;  %s7708_s2 = inlined_call_operand.vmem [shape: bf16[512,128], index: 2, kind: input, shape index: {}]   ;;  %s7709_s3 = inlined_call_operand.vmem [shape: bf16[128,128], index: 3, kind: input, shape index: {}]   ;;  %s7710_s4 = inlined_call_operand.vmem [shape: f32[1,128], index: 4, kind: input, shape index: {}]   ;;  %s7711_s5 = inlined_call_operand.hbm [shape: f32[2,128], index: 5, kind: output, shape index: {0}]   ;;  %s7712_s6 = inlined_call_operand.vmem [shape: f32[2,1], index: 6, kind: output, shape index: {1}]  }
   0x1   :  { %s12_s23 = sshll.u32 %s7706_s0, 4  ;;  %s13_s23 = int_to_ptr.vmem [resolvable:$true] %s12_s23 }
   0x2   :  { %s4806_s24 = scalar_lea.vmem %s13_s23, 16  ;;  %p4811_p1 = scmp.lt.s32.totalorder %s13_s23, %s13_s23 }
   0x3   :  { %p4807_p0 = scmp.ne.s32.totalorder %s13_s23, %s4806_s24  ;;  %p4812_p2 = scmp.lt.s32.totalorder %s4806_s24, %s4806_s24 }
   0x5   :  { %p4813_p3 = por %p4812_p2, %p4811_p1 }
   0x7   :  { %p4814_p4 = pnand %p4813_p3, %p4807_p0 }
   0x9   :  { %4817 = shalt.err (!%p4814_p4)  }
   0xa   :  { %s4844_s25 = smov [#allocation3]  }
   0xb   :  { %15 = dma.vmem_to_smem %s13_s23, 16, %s4844_s25, [#allocation2] }
   0xc   :  { %4840 = dma.done.wait [#allocation2], 16 }
   0xd   :  { %4841 = vsyncadd [#allocation2], 4294967280 }
   0xe   :  { %17 = sfence }
   0xf   :  { %v30_v0 = vld [vmem:[%s7707_s1 + $0x10] sm:$0xff]  ;;  %v28_v1 = vld [vmem:[%s7707_s1] sm:$0xff]  ;;  %v4845_v2 = vmov 0   ;;  %v31_v3 = vld [vmem:[%s7707_s1 + $0x18] sm:$0xff] }
  0x10   :  { %4629 = vset.pattern.permute.xlu1 %v4845_v2  ;;  %4628 = vset.pattern.permute.xlu0 %v4845_v2  ;;  %v29_v4 = vld [vmem:[%s7707_s1 + $0x8] sm:$0xff]  ;;  %v32_v6 = vld [vmem:[%s7707_s1 + $0x20] sm:$0xff]  ;;  %v35_v7 = vld [vmem:[%s7707_s1 + $0x38] sm:$0xff] }
  0x11   :  { %104 = vperm.xlu1 %4629, %v30_v0   ;;  %98 = vperm.xlu0 %4628, %v28_v1   ;;  %v33_v5 = vld [vmem:[%s7707_s1 + $0x28] sm:$0xff]  ;;  %v34_v8 = vld [vmem:[%s7707_s1 + $0x30] sm:$0xff]  ;;  %v4630_v9 = vld [vmem:[%s7708_s2] sm:$0xff]  }
  0x12   :  { %1441 = vmatprep.subr.bf16.mxu0 %v4845_v2  ;;  %4511 = vmatprep.subr.bf16.mxu1 %v4845_v2  ;;  %v37_v10 = vld [vmem:[%s7707_s1 + $0x48] sm:$0xff]  ;;  %v36_v11 = vld [vmem:[%s7707_s1 + $0x40] sm:$0xff]  ;;  %v39_v13 = vld [vmem:[%s7707_s1 + $0x58] sm:$0xff] }
  0x13   :  { %1442 = vmatpush1.bf16.msra.mxu0 %v4630_v9  ;;  %v4631_v12 = vld [vmem:[%s7708_s2 + $0x8] sm:$0xff]   ;;  %4527 = vmatpush1.bf16.msra.mxu1 %v4630_v9  ;;  %v38_v14 = vld [vmem:[%s7707_s1 + $0x50] sm:$0xff]  ;;  %v40_v17 = vld [vmem:[%s7707_s1 + $0x60] sm:$0xff] }
  0x14   :  { %1443 = vmatprep.subr.bf16.mxu0 %v4845_v2  ;;  %4512 = vmatprep.subr.bf16.mxu1 %v4845_v2  ;;  %v4632_v15 = vld [vmem:[%s7708_s2 + $0x10] sm:$0xff]   ;;  %v41_v16 = vld [vmem:[%s7707_s1 + $0x68] sm:$0xff]  ;;  %v4633_v18 = vld [vmem:[%s7708_s2 + $0x18] sm:$0xff]  }
  0x15   :  { %107 = vperm.xlu1 %4629, %v31_v3   ;;  %101 = vperm.xlu0 %4628, %v29_v4   ;;  %v43_v19 = vld [vmem:[%s7707_s1 + $0x78] sm:$0xff]  ;;  %v42_v20 = vld [vmem:[%s7707_s1 + $0x70] sm:$0xff]  ;;  %v4634_v21 = vld [vmem:[%s7708_s2 + $0x20] sm:$0xff]  }
  0x16   :  { %v45_v22 = vld [vmem:[%s7707_s1 + $0x88] sm:$0xff]  ;;  %v44_v23 = vld [vmem:[%s7707_s1 + $0x80] sm:$0xff]  ;;  %v47_v25 = vld [vmem:[%s7707_s1 + $0x98] sm:$0xff] }
  0x17   :  { %1444 = vmatpush1.bf16.msra.mxu0 %v4631_v12  ;;  %4528 = vmatpush1.bf16.msra.mxu1 %v4631_v12  ;;  %v4635_v24 = vld [vmem:[%s7708_s2 + $0x28] sm:$0xff]   ;;  %v46_v26 = vld [vmem:[%s7707_s1 + $0x90] sm:$0xff]  ;;  %v48_v29 = vld [vmem:[%s7707_s1 + $0xa0] sm:$0xff] }
  0x18   :  { %1445 = vmatprep.subr.bf16.mxu0 %v4845_v2  ;;  %4513 = vmatprep.subr.bf16.mxu1 %v4845_v2  ;;  %v4636_v27 = vld [vmem:[%s7708_s2 + $0x30] sm:$0xff]   ;;  %v49_v28 = vld [vmem:[%s7707_s1 + $0xa8] sm:$0xff]  ;;  %v4637_v30 = vld [vmem:[%s7708_s2 + $0x38] sm:$0xff]  }
  0x19   :  { %113 = vperm.xlu1 %4629, %v33_v5   ;;  %110 = vperm.xlu0 %4628, %v32_v6   ;;  %v51_v31 = vld [vmem:[%s7707_s1 + $0xb8] sm:$0xff]  ;;  %v50_v32 = vld [vmem:[%s7707_s1 + $0xb0] sm:$0xff]  ;;  %v4638_v33 = vld [vmem:[%s7708_s2 + $0x40] sm:$0xff]  }
  0x1a   :  { %v53_v34 = vld [vmem:[%s7707_s1 + $0xc8] sm:$0xff]  ;;  %v52_v35 = vld [vmem:[%s7707_s1 + $0xc0] sm:$0xff]  ;;  %v55_v37 = vld [vmem:[%s7707_s1 + $0xd8] sm:$0xff] }
  0x1b   :  { %1446 = vmatpush1.bf16.msra.mxu0 %v4632_v15  ;;  %4529 = vmatpush1.bf16.msra.mxu1 %v4632_v15  ;;  %v4639_v36 = vld [vmem:[%s7708_s2 + $0x48] sm:$0xff]   ;;  %v54_v38 = vld [vmem:[%s7707_s1 + $0xd0] sm:$0xff]  ;;  %v56_v41 = vld [vmem:[%s7707_s1 + $0xe0] sm:$0xff] }
  0x1c   :  { %1447 = vmatprep.subr.bf16.mxu0 %v4845_v2  ;;  %4514 = vmatprep.subr.bf16.mxu1 %v4845_v2  ;;  %v4640_v39 = vld [vmem:[%s7708_s2 + $0x50] sm:$0xff]   ;;  %v57_v40 = vld [vmem:[%s7707_s1 + $0xe8] sm:$0xff]  ;;  %v4641_v42 = vld [vmem:[%s7708_s2 + $0x58] sm:$0xff]  }
  0x1d   :  { %119 = vperm.xlu1 %4629, %v35_v7   ;;  %116 = vperm.xlu0 %4628, %v34_v8  }
  0x1f   :  { %1448 = vmatpush1.bf16.msra.mxu0 %v4633_v18  ;;  %4530 = vmatpush1.bf16.msra.mxu1 %v4633_v18 }
  0x20   :  { %1449 = vmatprep.subr.bf16.mxu0 %v4845_v2  ;;  %4515 = vmatprep.subr.bf16.mxu1 %v4845_v2 }
  0x21   :  { %125 = vperm.xlu1 %4629, %v37_v10   ;;  %122 = vperm.xlu0 %4628, %v36_v11  }
  0x23   :  { %1450 = vmatpush1.bf16.msra.mxu0 %v4634_v21  ;;  %4531 = vmatpush1.bf16.msra.mxu1 %v4634_v21 }
  0x24   :  { %1451 = vmatprep.subr.bf16.mxu0 %v4845_v2  ;;  %4516 = vmatprep.subr.bf16.mxu1 %v4845_v2 }
  0x25   :  { %131 = vperm.xlu1 %4629, %v39_v13   ;;  %128 = vperm.xlu0 %4628, %v38_v14  }
  0x27   :  { %1452 = vmatpush1.bf16.msra.mxu0 %v4635_v24  ;;  %4532 = vmatpush1.bf16.msra.mxu1 %v4635_v24 }
  0x28   :  { %1453 = vmatprep.subr.bf16.mxu0 %v4845_v2  ;;  %4517 = vmatprep.subr.bf16.mxu1 %v4845_v2 }
  0x29   :  { %137 = vperm.xlu1 %4629, %v41_v16   ;;  %134 = vperm.xlu0 %4628, %v40_v17  }
  0x2b   :  { %1454 = vmatpush1.bf16.msra.mxu0 %v4636_v27  ;;  %4533 = vmatpush1.bf16.msra.mxu1 %v4636_v27 }
  0x2c   :  { %1455 = vmatprep.subr.bf16.mxu0 %v4845_v2  ;;  %4518 = vmatprep.subr.bf16.mxu1 %v4845_v2 }
  0x2d   :  { %143 = vperm.xlu1 %4629, %v43_v19   ;;  %140 = vperm.xlu0 %4628, %v42_v20  }
  0x2f   :  { %1456 = vmatpush1.bf16.msra.mxu0 %v4637_v30  ;;  %4534 = vmatpush1.bf16.msra.mxu1 %v4637_v30 }
  0x30   :  { %1457 = vmatprep.subr.bf16.mxu0 %v4845_v2  ;;  %4519 = vmatprep.subr.bf16.mxu1 %v4845_v2 }
  0x31   :  { %149 = vperm.xlu1 %4629, %v45_v22   ;;  %146 = vperm.xlu0 %4628, %v44_v23  }
  0x33   :  { %1458 = vmatpush1.bf16.msra.mxu0 %v4638_v33  ;;  %4535 = vmatpush1.bf16.msra.mxu1 %v4638_v33 }
  0x34   :  { %1459 = vmatprep.subr.bf16.mxu0 %v4845_v2  ;;  %4520 = vmatprep.subr.bf16.mxu1 %v4845_v2 }
  0x35   :  { %155 = vperm.xlu1 %4629, %v47_v25   ;;  %152 = vperm.xlu0 %4628, %v46_v26  }
  0x37   :  { %1460 = vmatpush1.bf16.msra.mxu0 %v4639_v36  ;;  %4536 = vmatpush1.bf16.msra.mxu1 %v4639_v36 }
  0x38   :  { %1461 = vmatprep.subr.bf16.mxu0 %v4845_v2  ;;  %4521 = vmatprep.subr.bf16.mxu1 %v4845_v2 }
  0x39   :  { %161 = vperm.xlu1 %4629, %v49_v28   ;;  %158 = vperm.xlu0 %4628, %v48_v29  }
  0x3b   :  { %1462 = vmatpush1.bf16.msra.mxu0 %v4640_v39  ;;  %4537 = vmatpush1.bf16.msra.mxu1 %v4640_v39 }
  0x3c   :  { %1463 = vmatprep.subr.bf16.mxu0 %v4845_v2  ;;  %4522 = vmatprep.subr.bf16.mxu1 %v4845_v2 }
  0x3d   :  { %167 = vperm.xlu1 %4629, %v51_v31   ;;  %164 = vperm.xlu0 %4628, %v50_v32  }
  0x41   :  { %173 = vperm.xlu1 %4629, %v53_v34   ;;  %170 = vperm.xlu0 %4628, %v52_v35  }
  0x45   :  { %179 = vperm.xlu1 %4629, %v55_v37   ;;  %176 = vperm.xlu0 %4628, %v54_v38  }
  0x46   :  { %18 = vsyncpa [#allocation5], 0  ;;  %v59_v43 = vld [vmem:[%s7707_s1 + $0xf8] sm:$0xff]  ;;  %v58_v44 = vld [vmem:[%s7707_s1 + $0xf0] sm:$0xff]  ;;  %1464 = vmatpush1.bf16.msra.mxu0 %v4641_v42  ;;  %4538 = vmatpush1.bf16.msra.mxu1 %v4641_v42  ;;  %v7713_v16 = vlaneseq  ;;  %v7714_v28 = vmov 1.0|1.0  }
  0x47   :  { %v4642_v45 = vld [vmem:[%s7708_s2 + $0x60] sm:$0xff]   ;;  %1465 = vmatprep.subr.bf16.mxu0 %v4845_v2  ;;  %4523 = vmatprep.subr.bf16.mxu1 %v4845_v2  ;;  %v61_v46 = vld [vmem:[%s7707_s1 + $0x108] sm:$0xff]  ;;  %v63_v49 = vld [vmem:[%s7707_s1 + $0x118] sm:$0xff]  ;;  %v7725_v38 = vmov 0  ;;  %v7727_v39 = vmov 0  ;;  %s6962_s8 = sld [smem:[#allocation3 + $0x1]] }
  0x48   :  { %v60_v47 = vld [vmem:[%s7707_s1 + $0x100] sm:$0xff]  ;;  %v4643_v48 = vld [vmem:[%s7708_s2 + $0x68] sm:$0xff]   ;;  %v62_v50 = vld [vmem:[%s7707_s1 + $0x110] sm:$0xff]  ;;  %v5163_v19 = vand.u32 127, %v7713_v16  ;;  %v7838_v16 = vmov 0 }
  0x49   :  { %185 = vperm.xlu1 %4629, %v57_v40   ;;  %182 = vperm.xlu0 %4628, %v56_v41   ;;  %v4644_v51 = vld [vmem:[%s7708_s2 + $0x70] sm:$0xff]   ;;  %v65_v52 = vld [vmem:[%s7707_s1 + $0x128] sm:$0xff]  ;;  %v64_v53 = vld [vmem:[%s7707_s1 + $0x120] sm:$0xff] }
  0x4a   :  { %1466 = vmatpush1.bf16.msra.mxu0 %v4642_v45  ;;  %4539 = vmatpush1.bf16.msra.mxu1 %v4642_v45  ;;  %v4645_v54 = vld [vmem:[%s7708_s2 + $0x78] sm:$0xff]   ;;  %v66_v56 = vld [vmem:[%s7707_s1 + $0x130] sm:$0xff]  ;;  %v69_v57 = vld [vmem:[%s7707_s1 + $0x148] sm:$0xff]  ;;  %v5168_v22 = vadd.s32 256, %v5163_v19  ;;  %v5171_v23 = vadd.s32 128, %v5163_v19  ;;  %v5206_v32 = vadd.s32 384, %v5163_v19 }
  0x4b   :  { %1467 = vmatprep.subr.bf16.mxu0 %v4845_v2  ;;  %4524 = vmatprep.subr.bf16.mxu1 %v4845_v2  ;;  %v67_v55 = vld [vmem:[%s7707_s1 + $0x138] sm:$0xff]  ;;  %v68_v58 = vld [vmem:[%s7707_s1 + $0x140] sm:$0xff]  ;;  %v70_v60 = vld [vmem:[%s7707_s1 + $0x150] sm:$0xff] }
  0x4c   :  { %v71_v59 = vld [vmem:[%s7707_s1 + $0x158] sm:$0xff]  ;;  %v73_v61 = vld [vmem:[%s7707_s1 + $0x168] sm:$0xff]  ;;  %v72_v62 = vld [vmem:[%s7707_s1 + $0x160] sm:$0xff] }
  0x4d   :  { %191 = vperm.xlu1 %4629, %v59_v43   ;;  %188 = vperm.xlu0 %4628, %v58_v44   ;;  %v75_v63 = vld [vmem:[%s7707_s1 + $0x178] sm:$0xff]  ;;  %v74_v0 = vld [vmem:[%s7707_s1 + $0x170] sm:$0xff]  ;;  %v77_v1 = vld [vmem:[%s7707_s1 + $0x188] sm:$0xff]  ;;  %v7729_v43 = vmov 0  ;;  %v7731_v44 = vmov 0  ;;  %p3185_p6 = scmp.lt.s32.totalorder %s6962_s8, 256 }
  0x4e   :  { %1468 = vmatpush1.bf16.msra.mxu0 %v4643_v48  ;;  %4540 = vmatpush1.bf16.msra.mxu1 %v4643_v48  ;;  %v76_v3 = vld [vmem:[%s7707_s1 + $0x180] sm:$0xff]  ;;  %v79_v4 = vld [vmem:[%s7707_s1 + $0x198] sm:$0xff]  ;;  %v78_v5 = vld [vmem:[%s7707_s1 + $0x190] sm:$0xff]  ;;  %v7733_v48 = vmov 0 }
  0x4f   :  { %1469 = vmatprep.subr.bf16.mxu0 %v4845_v2  ;;  %4525 = vmatprep.subr.bf16.mxu1 %v4845_v2  ;;  %v81_v6 = vld [vmem:[%s7707_s1 + $0x1a8] sm:$0xff]  ;;  %v80_v7 = vld [vmem:[%s7707_s1 + $0x1a0] sm:$0xff]  ;;  %v83_v8 = vld [vmem:[%s7707_s1 + $0x1b8] sm:$0xff]  ;;  %s7930_s8 = smov (!%p3185_p6, %s6962_s8), 256 }
  0x50   :  { %v82_v9 = vld [vmem:[%s7707_s1 + $0x1b0] sm:$0xff]  ;;  %v85_v10 = vld [vmem:[%s7707_s1 + $0x1c8] sm:$0xff]  ;;  %v84_v11 = vld [vmem:[%s7707_s1 + $0x1c0] sm:$0xff]  ;;  %s3251_s9 = sadd.s32 256, %s7930_s8 }
  0x51   :  { %197 = vperm.xlu1 %4629, %v61_v46   ;;  %194 = vperm.xlu0 %4628, %v60_v47   ;;  %v87_v12 = vld [vmem:[%s7707_s1 + $0x1d8] sm:$0xff]  ;;  %v86_v13 = vld [vmem:[%s7707_s1 + $0x1d0] sm:$0xff]  ;;  %v89_v14 = vld [vmem:[%s7707_s1 + $0x1e8] sm:$0xff] }
  0x52   :  { %1470 = vmatpush1.bf16.msra.mxu0 %v4644_v51  ;;  %4541 = vmatpush1.bf16.msra.mxu1 %v4644_v51  ;;  %v88_v15 = vld [vmem:[%s7707_s1 + $0x1e0] sm:$0xff]  ;;  %v91_v17 = vld [vmem:[%s7707_s1 + $0x1f8] sm:$0xff]  ;;  %v90_v18 = vld [vmem:[%s7707_s1 + $0x1f0] sm:$0xff] }
  0x53   :  { %1471 = vmatprep.subr.bf16.mxu0 %v4845_v2  ;;  %4526 = vmatprep.subr.bf16.mxu1 %v4845_v2  ;;  %v4646_v27 = vld [vmem:[%s7708_s2 + $0x80] sm:$0xff]   ;;  %v4647_v31 = vld [vmem:[%s7708_s2 + $0x88] sm:$0xff]   ;;  %v4648_v35 = vld [vmem:[%s7708_s2 + $0x90] sm:$0xff]  }
  0x54   :  { %v4649_v40 = vld [vmem:[%s7708_s2 + $0x98] sm:$0xff]   ;;  %v4650_v45 = vld [vmem:[%s7708_s2 + $0xa0] sm:$0xff]  }
  0x55   :  { %203 = vperm.xlu1 %4629, %v63_v49   ;;  %200 = vperm.xlu0 %4628, %v62_v50   ;;  %v7735_v49 = vmov 0  ;;  %v4651_v50 = vld [vmem:[%s7708_s2 + $0xa8] sm:$0xff]  }
  0x56   :  { %1472 = vmatpush1.bf16.msra.mxu0 %v4645_v54  ;;  %4542 = vmatpush1.bf16.msra.mxu1 %v4645_v54  ;;  %v7739_v54 = vmov 0 }
  0x57   :  { %1730 = vmatprep.subr.bf16.mxu0 %v4845_v2 }
  0x59   :  { %209 = vperm.xlu1 %4629, %v65_v52   ;;  %206 = vperm.xlu0 %4628, %v64_v53   ;;  %v7737_v53 = vmov 0 }
  0x5d   :  { %215 = vperm.xlu1 %4629, %v67_v55   ;;  %212 = vperm.xlu0 %4628, %v66_v56   ;;  %v4652_v55 = vld [vmem:[%s7708_s2 + $0xb0] sm:$0xff]  }
  0x61   :  { %221 = vperm.xlu1 %4629, %v69_v57   ;;  %218 = vperm.xlu0 %4628, %v68_v58   ;;  %v7790_v58 = vmov 0 }
  0x65   :  { %227 = vperm.xlu1 %4629, %v71_v59   ;;  %224 = vperm.xlu0 %4628, %v70_v60   ;;  %v7743_v59 = vmov 0  ;;  %v7746_v60 = vmov 0 }
  0x69   :  { %233 = vperm.xlu1 %4629, %v73_v61   ;;  %230 = vperm.xlu0 %4628, %v72_v62   ;;  %v4653_v61 = vld [vmem:[%s7708_s2 + $0xb8] sm:$0xff]  }
  0x6d   :  { %239 = vperm.xlu1 %4629, %v75_v63   ;;  %236 = vperm.xlu0 %4628, %v74_v0   ;;  %v7750_v0 = vmov 0 }
  0x71   :  { %245 = vperm.xlu1 %4629, %v77_v1   ;;  %242 = vperm.xlu0 %4628, %v76_v3   ;;  %v7752_v1 = vmov 0  ;;  %v4654_v3 = vld [vmem:[%s7708_s2 + $0xc0] sm:$0xff]  }
  0x75   :  { %251 = vperm.xlu1 %4629, %v79_v4   ;;  %248 = vperm.xlu0 %4628, %v78_v5  }
  0x79   :  { %257 = vperm.xlu1 %4629, %v81_v6   ;;  %254 = vperm.xlu0 %4628, %v80_v7   ;;  %v7755_v6 = vmov 0  ;;  %v7757_v7 = vmov 0 }
  0x7d   :  { %263 = vperm.xlu1 %4629, %v83_v8   ;;  %260 = vperm.xlu0 %4628, %v82_v9   ;;  %v4655_v8 = vld [vmem:[%s7708_s2 + $0xc8] sm:$0xff]  }
  0x81   :  { %269 = vperm.xlu1 %4629, %v85_v10   ;;  %266 = vperm.xlu0 %4628, %v84_v11   ;;  %v7761_v11 = vmov 0 }
  0x85   :  { %275 = vperm.xlu1 %4629, %v87_v12   ;;  %272 = vperm.xlu0 %4628, %v86_v13   ;;  %v7763_v12 = vmov 0  ;;  %v4656_v13 = vld [vmem:[%s7708_s2 + $0xd0] sm:$0xff]  }
  0x89   :  { %281 = vperm.xlu1 %4629, %v89_v14   ;;  %278 = vperm.xlu0 %4628, %v88_v15  }
  0x8d   :  { %287 = vperm.xlu1 %4629, %v91_v17   ;;  %284 = vperm.xlu0 %4628, %v90_v18   ;;  %v7765_v17 = vmov 0  ;;  %v7767_v18 = vmov 0 }
  0x90   :  { %v105_v20 = vpop.permute.xlu1 %104  ;;  %v5165_v21 = vpop.permute.xlu0 %98 }
  0x91   :  { %vm291_vm0 = vcmp.eq.s32.totalorder %v5168_v22, %v5165_v21  ;;  %vm290_vm5 = vcmp.eq.s32.totalorder %v5171_v23, %v5165_v21  ;;  %vm298_vm6 = vcmp.eq.s32.totalorder %v5171_v23, %v105_v20  ;;  %vm289_vm9 = vcmp.eq.s32.totalorder %v5163_v19, %v5165_v21 }
  0x92   :  { %vm297_vm12 = vcmp.eq.s32.totalorder %v5163_v19, %v105_v20 }
  0x94   :  { %v108_v24 = vpop.permute.xlu1 %107  ;;  %v5173_v25 = vpop.permute.xlu0 %101 }
  0x95   :  { %vm295_vm1 = vcmp.eq.s32.totalorder %v5168_v22, %v5173_v25  ;;  %vm294_vm2 = vcmp.eq.s32.totalorder %v5171_v23, %v5173_v25  ;;  %vm293_vm3 = vcmp.eq.s32.totalorder %v5163_v19, %v5173_v25  ;;  %vm302_vm7 = vcmp.eq.s32.totalorder %v5171_v23, %v108_v24 }
  0x96   :  { %vm5183_vm4 = vmpackc.low %vm295_vm1, %vm291_vm0  ;;  %vm301_vm13 = vcmp.eq.s32.totalorder %v5163_v19, %v108_v24  ;;  %vm300_vm0 = vcmp.eq.s32.totalorder %v5206_v32, %v105_v20  ;;  %vm304_vm1 = vcmp.eq.s32.totalorder %v5206_v32, %v108_v24 }
  0x97   :  { %vm4061_vm8 = vmpackc.low %vm294_vm2, %vm290_vm5  ;;  %vm303_vm5 = vcmp.eq.s32.totalorder %v5168_v22, %v108_v24 }
  0x98   :  { %4062 = vmatprep.mubr.msk.bf16.mxu0 %vm4061_vm8, %v7714_v28  ;;  %v114_v29 = vpop.permute.xlu1 %113  ;;  %vm4063_vm10 = vmpackc.low %vm293_vm3, %vm289_vm9  ;;  %v111_v30 = vpop.permute.xlu0 %110  ;;  %vm299_vm3 = vcmp.eq.s32.totalorder %v5168_v22, %v105_v20  ;;  %v4657_v20 = vld [vmem:[%s7708_s2 + $0xd8] sm:$0xff]  }
  0x99   :  { %4064 = vmatmul.mubr.msk.bf16.vlgmr.msra.gmra.mrb[0].mxu0 %vm4063_vm10, %v7714_v28  ;;  %vm4065_vm11 = vmpackc.low %vm302_vm7, %vm298_vm6  ;;  %vm306_vm14 = vcmp.eq.s32.totalorder %v5171_v23, %v111_v30  ;;  %vm310_vm15 = vcmp.eq.s32.totalorder %v5171_v23, %v114_v29  ;;  %vm308_vm9 = vcmp.eq.s32.totalorder %v5206_v32, %v111_v30  ;;  %vm312_vm10 = vcmp.eq.s32.totalorder %v5206_v32, %v114_v29 }
  0x9a   :  { %1731 = vmatpush1.bf16.msra.mxu0 %v4646_v27  ;;  %4066 = vmatprep.mubr.msk.bf16.mxu0 %vm4065_vm11, %v7714_v28  ;;  %vm4067_vm2 = vmpackc.low %vm301_vm13, %vm297_vm12  ;;  %vm307_vm11 = vcmp.eq.s32.totalorder %v5168_v22, %v111_v30  ;;  %vm311_vm12 = vcmp.eq.s32.totalorder %v5168_v22, %v114_v29  ;;  %vm305_vm13 = vcmp.eq.s32.totalorder %v5163_v19, %v111_v30  ;;  %v7771_v30 = vmov 0 }
  0x9b   :  { %1732 = vmatprep.subr.bf16.mxu0 %v4845_v2  ;;  %vm4069_vm6 = vmpackc.low %vm310_vm15, %vm306_vm14  ;;  %vm309_vm14 = vcmp.eq.s32.totalorder %v5163_v19, %v114_v29  ;;  %v7769_v29 = vmov 0 }
  0x9c   :  { %v5208_v33 = vpop.permute.xlu1 %119  ;;  %v5210_v34 = vpop.permute.xlu0 %116  ;;  %vm5226_vm7 = vmpackc.low %vm304_vm1, %vm300_vm0 }
  0x9d   :  { %v7726_v38 = vsel %vm5226_vm7, 4294967295, %v7725_v38  ;;  %vm5231_vm8 = vmpackc.low %vm303_vm5, %vm299_vm3  ;;  %vm314_vm15 = vcmp.eq.s32.totalorder %v5171_v23, %v5210_v34  ;;  %vm318_vm0 = vcmp.eq.s32.totalorder %v5171_v23, %v5208_v33  ;;  %vm316_vm3 = vcmp.eq.s32.totalorder %v5206_v32, %v5210_v34 }
  0x9e   :  { %1733 = vmatpush1.bf16.msra.mxu0 %v4647_v31  ;;  %v7728_v39 = vsel %vm5231_vm8, 4294967295, %v7727_v39  ;;  %vm5254_vm1 = vmpackc.low %vm312_vm10, %vm308_vm9  ;;  %vm320_vm5 = vcmp.eq.s32.totalorder %v5206_v32, %v5208_v33  ;;  %vm315_vm9 = vcmp.eq.s32.totalorder %v5168_v22, %v5210_v34  ;;  %vm319_vm10 = vcmp.eq.s32.totalorder %v5168_v22, %v5208_v33  ;;  %v4658_v31 = vld [vmem:[%s7708_s2 + $0xe0] sm:$0xff]  }
  0x9f   :  { %1734 = vmatprep.subr.bf16.mxu0 %v4845_v2  ;;  %v7730_v43 = vsel %vm5254_vm1, 4294967295, %v7729_v43 }
  0xa0   :  { %v5222_v36 = vpop.permute.xlu1 %125  ;;  %v5224_v37 = vpop.permute.xlu0 %122 }
  0xa1   :  { %4068 = vmatmul.mubr.msk.bf16.gmra.mrb[4].mxu0 %vm4067_vm2, %v7714_v28  ;;  %vm5258_vm2 = vmpackc.low %vm311_vm12, %vm307_vm11 }
  0xa2   :  { %1735 = vmatpush1.bf16.msra.mxu0 %v4648_v35  ;;  %4070 = vmatprep.mubr.msk.bf16.mxu0 %vm4069_vm6, %v7714_v28  ;;  %v7732_v44 = vsel %vm5258_vm2, 4294967295, %v7731_v44  ;;  %vm4071_vm6 = vmpackc.low %vm309_vm14, %vm305_vm13  ;;  %vm324_vm14 = vcmp.eq.s32.totalorder %v5206_v32, %v5224_v37 }
  0xa3   :  { %1736 = vmatprep.subr.bf16.mxu0 %v4845_v2  ;;  %vm4073_vm11 = vmpackc.low %vm318_vm0, %vm314_vm15  ;;  %vm328_vm15 = vcmp.eq.s32.totalorder %v5206_v32, %v5222_v36  ;;  %vm323_vm0 = vcmp.eq.s32.totalorder %v5168_v22, %v5224_v37 }
  0xa4   :  { %v5246_v41 = vpop.permute.xlu1 %131  ;;  %v5248_v42 = vpop.permute.xlu0 %128  ;;  %vm5278_vm12 = vmpackc.low %vm320_vm5, %vm316_vm3  ;;  %vm327_vm3 = vcmp.eq.s32.totalorder %v5168_v22, %v5222_v36  ;;  %vm313_vm5 = vcmp.eq.s32.totalorder %v5163_v19, %v5210_v34 }
  0xa5   :  { %v7734_v48 = vsel %vm5278_vm12, 4294967295, %v7733_v48  ;;  %vm5283_vm13 = vmpackc.low %vm319_vm10, %vm315_vm9  ;;  %vm322_vm9 = vcmp.eq.s32.totalorder %v5171_v23, %v5224_v37  ;;  %vm326_vm10 = vcmp.eq.s32.totalorder %v5171_v23, %v5222_v36  ;;  %vm325_vm12 = vcmp.eq.s32.totalorder %v5163_v19, %v5222_v36 }
  0xa6   :  { %1737 = vmatpush1.bf16.msra.mxu0 %v4649_v40  ;;  %v7736_v49 = vsel %vm5283_vm13, 4294967295, %v7735_v49  ;;  %vm321_vm13 = vcmp.eq.s32.totalorder %v5163_v19, %v5224_v37  ;;  %vm5320_vm2 = vmpackc.low %vm327_vm3, %vm323_vm0  ;;  %vm332_vm1 = vcmp.eq.s32.totalorder %v5206_v32, %v5248_v42  ;;  %vm336_vm8 = vcmp.eq.s32.totalorder %v5206_v32, %v5246_v41  ;;  %v4659_v37 = vld [vmem:[%s7708_s2 + $0xe8] sm:$0xff]  }
  0xa7   :  { %1738 = vmatprep.subr.bf16.mxu0 %v4845_v2  ;;  %v7740_v54 = vsel %vm5320_vm2, 4294967295, %v7739_v54  ;;  %vm335_vm0 = vcmp.eq.s32.totalorder %v5168_v22, %v5246_v41  ;;  %vm4077_vm3 = vmpackc.low %vm326_vm10, %vm322_vm9  ;;  %v7775_v36 = vmov 0 }
  0xa8   :  { %v5274_v46 = vpop.permute.xlu1 %137  ;;  %v5276_v47 = vpop.permute.xlu0 %134  ;;  %vm5340_vm2 = vmpackc.low %vm325_vm12, %vm321_vm13  ;;  %vm7745_vm13 = vcmp.eq.s32.totalorder %v5168_v22, %v5248_v42 }
  0xa9   :  { %4072 = vmatmul.mubr.msk.bf16.gmra.mrb[8].mxu0 %vm4071_vm6, %v7714_v28  ;;  %vm317_vm6 = vcmp.eq.s32.totalorder %v5163_v19, %v5208_v33  ;;  %vm5364_vm10 = vmpackc.low %vm335_vm0, %vm7745_vm13  ;;  %vm7749_vm13 = vcmp.eq.s32.totalorder %v5206_v32, %v5274_v46 }
  0xaa   :  { %1739 = vmatpush1.bf16.msra.mxu0 %v4650_v45  ;;  %4074 = vmatprep.mubr.msk.bf16.mxu0 %vm4073_vm11, %v7714_v28  ;;  %vm5312_vm11 = vmpackc.low %vm328_vm15, %vm324_vm14  ;;  %v7747_v60 = vsel %vm5364_vm10, 4294967295, %v7746_v60  ;;  %vm339_vm15 = vcmp.eq.s32.totalorder %v5168_v22, %v5276_v47  ;;  %v4660_v45 = vld [vmem:[%s7708_s2 + $0xf0] sm:$0xff]  }
  0xab   :  { %1740 = vmatprep.subr.bf16.mxu0 %v4845_v2  ;;  %v7738_v53 = vsel %vm5312_vm11, 4294967295, %v7737_v53  ;;  %vm4075_vm14 = vmpackc.low %vm317_vm6, %vm313_vm5  ;;  %vm343_vm6 = vcmp.eq.s32.totalorder %v5168_v22, %v5274_v46 }
  0xac   :  { %v5304_v51 = vpop.permute.xlu1 %143  ;;  %v5306_v52 = vpop.permute.xlu0 %140  ;;  %vm5344_vm5 = vmpackc.low %vm336_vm8, %vm332_vm1 }
  0xad   :  { %v7744_v59 = vsel %vm5344_vm5, 4294967295, %v7743_v59  ;;  %vm352_vm10 = vcmp.eq.s32.totalorder %v5206_v32, %v5304_v51 }
  0xae   :  { %1741 = vmatpush1.bf16.msra.mxu0 %v4651_v50 }
  0xaf   :  { %1742 = vmatprep.subr.bf16.mxu0 %v4845_v2 }
  0xb0   :  { %v5336_v56 = vpop.permute.xlu1 %149  ;;  %v5338_v57 = vpop.permute.xlu0 %146 }
  0xb1   :  { %4076 = vmatmul.mubr.msk.bf16.gmra.mrb[12].mxu0 %vm4075_vm14, %v7714_v28  ;;  %vm354_vm9 = vcmp.eq.s32.totalorder %v5171_v23, %v5338_v57  ;;  %vm358_vm12 = vcmp.eq.s32.totalorder %v5171_v23, %v5336_v56  ;;  %vm353_vm8 = vcmp.eq.s32.totalorder %v5163_v19, %v5338_v57  ;;  %vm357_vm1 = vcmp.eq.s32.totalorder %v5163_v19, %v5336_v56 }
  0xb2   :  { %1743 = vmatpush1.bf16.msra.mxu0 %v4652_v55  ;;  %4078 = vmatprep.mubr.msk.bf16.mxu0 %vm4077_vm3, %v7714_v28  ;;  %vm4093_vm14 = vmpackc.low %vm358_vm12, %vm354_vm9  ;;  %vm334_vm9 = vcmp.eq.s32.totalorder %v5171_v23, %v5246_v41  ;;  %vm7748_vm12 = vcmp.eq.s32.totalorder %v5206_v32, %v5276_v47  ;;  %vm348_vm3 = vcmp.eq.s32.totalorder %v5206_v32, %v5306_v52 }
  0xb3   :  { %4094 = vmatprep.mubr.msk.bf16.mxu1 %vm4093_vm14, %v7714_v28  ;;  %1744 = vmatprep.subr.bf16.mxu0 %v4845_v2  ;;  %vm4095_vm0 = vmpackc.low %vm357_vm1, %vm353_vm8 }
  0xb4   :  { %v5378_v62 = vpop.permute.xlu1 %155  ;;  %4096 = vmatmul.mubr.msk.bf16.vlgmr.msra.gmra.mrb[0].mxu1 %vm4095_vm0, %v7714_v28  ;;  %v5381_v63 = vpop.permute.xlu0 %152  ;;  %vm5393_vm14 = vmpackc.low %vm7749_vm13, %vm7748_vm12  ;;  %vm347_vm13 = vcmp.eq.s32.totalorder %v5168_v22, %v5306_v52 }
  0xb5   :  { %v7751_v0 = vsel %vm5393_vm14, 4294967295, %v7750_v0  ;;  %vm362_vm8 = vcmp.eq.s32.totalorder %v5171_v23, %v5381_v63  ;;  %vm366_vm1 = vcmp.eq.s32.totalorder %v5171_v23, %v5378_v62  ;;  %vm5401_vm0 = vmpackc.low %vm343_vm6, %vm339_vm15  ;;  %vm351_vm15 = vcmp.eq.s32.totalorder %v5168_v22, %v5304_v51 }
  0xb6   :  { %v7753_v1 = vsel %vm5401_vm0, 4294967295, %v7752_v1  ;;  %1745 = vmatpush1.bf16.msra.mxu0 %v4653_v61  ;;  %vm4097_vm12 = vmpackc.low %vm366_vm1, %vm362_vm8  ;;  %vm7754_vm6 = vcmp.eq.s32.totalorder %v5171_v23, %v5248_v42  ;;  %vm361_vm8 = vcmp.eq.s32.totalorder %v5163_v19, %v5381_v63  ;;  %vm365_vm1 = vcmp.eq.s32.totalorder %v5163_v19, %v5378_v62 }
  0xb7   :  { %4098 = vmatprep.mubr.msk.bf16.mxu1 %vm4097_vm12, %v7714_v28  ;;  %1746 = vmatprep.subr.bf16.mxu0 %v4845_v2  ;;  %vm4081_vm0 = vmpackc.low %vm334_vm9, %vm7754_vm6  ;;  %vm368_vm5 = vcmp.eq.s32.totalorder %v5206_v32, %v5378_v62 }
  0xb8   :  { %v5425_v4 = vpop.permute.xlu1 %161  ;;  %v5427_v5 = vpop.permute.xlu0 %158  ;;  %vm5429_vm14 = vmpackc.low %vm352_vm10, %vm348_vm3  ;;  %vm329_vm3 = vcmp.eq.s32.totalorder %v5163_v19, %v5248_v42  ;;  %v7779_v42 = vmov 0 }
  0xb9   :  { %v7756_v6 = vsel %vm5429_vm14, 4294967295, %v7755_v6  ;;  %4080 = vmatmul.mubr.msk.bf16.gmra.mrb[16].mxu0 %vm5340_vm2, %v7714_v28  ;;  %vm370_vm9 = vcmp.eq.s32.totalorder %v5171_v23, %v5427_v5  ;;  %vm374_vm12 = vcmp.eq.s32.totalorder %v5171_v23, %v5425_v4  ;;  %vm5440_vm6 = vmpackc.low %vm351_vm15, %vm347_vm13  ;;  %vm355_vm13 = vcmp.eq.s32.totalorder %v5168_v22, %v5338_v57 }
  0xba   :  { %v7758_v7 = vsel %vm5440_vm6, 4294967295, %v7757_v7  ;;  %1747 = vmatpush1.bf16.msra.mxu0 %v4654_v3  ;;  %4082 = vmatprep.mubr.msk.bf16.mxu0 %vm4081_vm0, %v7714_v28  ;;  %vm4099_vm2 = vmpackc.low %vm365_vm1, %vm361_vm8  ;;  %vm359_vm15 = vcmp.eq.s32.totalorder %v5168_v22, %v5336_v56  ;;  %vm333_vm0 = vcmp.eq.s32.totalorder %v5163_v19, %v5246_v41  ;;  %vm338_vm8 = vcmp.eq.s32.totalorder %v5171_v23, %v5276_v47 }
  0xbb   :  { %1748 = vmatprep.subr.bf16.mxu0 %v4845_v2  ;;  %vm4101_vm10 = vmpackc.low %vm374_vm12, %vm370_vm9  ;;  %vm342_vm1 = vcmp.eq.s32.totalorder %v5171_v23, %v5274_v46  ;;  %vm7759_vm9 = vcmp.eq.s32.totalorder %v5206_v32, %v5338_v57  ;;  %vm7760_vm12 = vcmp.eq.s32.totalorder %v5206_v32, %v5336_v56  ;;  %vm364_vm14 = vcmp.eq.s32.totalorder %v5206_v32, %v5381_v63 }
  0xbc   :  { %v5461_v9 = vpop.permute.xlu1 %167  ;;  %4100 = vmatmul.mubr.msk.bf16.gmra.mrb[4].mxu1 %vm4099_vm2, %v7714_v28  ;;  %v5464_v10 = vpop.permute.xlu0 %164  ;;  %vm5476_vm6 = vmpackc.low %vm7760_vm12, %vm7759_vm9  ;;  %vm363_vm9 = vcmp.eq.s32.totalorder %v5168_v22, %v5381_v63  ;;  %vm373_vm12 = vcmp.eq.s32.totalorder %v5163_v19, %v5425_v4  ;;  %v7788_v57 = vmov 0  ;;  %v7794_v63 = vmov 0 }
  0xbd   :  { %v7762_v11 = vsel %vm5476_vm6, 4294967295, %v7761_v11  ;;  %4102 = vmatprep.mubr.msk.bf16.mxu1 %vm4101_vm10, %v7714_v28  ;;  %vm5481_vm2 = vmpackc.low %vm359_vm15, %vm355_vm13  ;;  %vm367_vm10 = vcmp.eq.s32.totalorder %v5168_v22, %v5378_v62  ;;  %vm369_vm15 = vcmp.eq.s32.totalorder %v5163_v19, %v5427_v5  ;;  %vm376_vm6 = vcmp.eq.s32.totalorder %v5206_v32, %v5425_v4 }
  0xbe   :  { %v7764_v12 = vsel %vm5481_vm2, 4294967295, %v7763_v12  ;;  %1749 = vmatpush1.bf16.msra.mxu0 %v4655_v8  ;;  %vm4083_vm11 = vmpackc.low %vm333_vm0, %vm329_vm3  ;;  %vm378_vm3 = vcmp.eq.s32.totalorder %v5171_v23, %v5464_v10  ;;  %vm382_vm0 = vcmp.eq.s32.totalorder %v5171_v23, %v5461_v9  ;;  %vm372_vm2 = vcmp.eq.s32.totalorder %v5206_v32, %v5427_v5 }
  0xbf   :  { %1750 = vmatprep.subr.bf16.mxu0 %v4845_v2  ;;  %vm4085_vm13 = vmpackc.low %vm342_vm1, %vm338_vm8  ;;  %v7792_v62 = vmov 0 }
  0xc0   :  { %v5501_v14 = vpop.permute.xlu1 %173  ;;  %v5503_v15 = vpop.permute.xlu0 %170  ;;  %vm5512_vm8 = vmpackc.low %vm368_vm5, %vm364_vm14  ;;  %vm375_vm5 = vcmp.eq.s32.totalorder %v5168_v22, %v5425_v4  ;;  %v7797_v4 = vmov 0 }
  0xc1   :  { %v7766_v17 = vsel %vm5512_vm8, 4294967295, %v7765_v17  ;;  %4084 = vmatmul.mubr.msk.bf16.gmra.mrb[20].mxu0 %vm4083_vm11, %v7714_v28  ;;  %vm5517_vm1 = vmpackc.low %vm367_vm10, %vm363_vm9  ;;  %vm371_vm11 = vcmp.eq.s32.totalorder %v5168_v22, %v5427_v5  ;;  %vm337_vm9 = vcmp.eq.s32.totalorder %v5163_v19, %v5276_v47  ;;  %vm341_vm10 = vcmp.eq.s32.totalorder %v5163_v19, %v5274_v46 }
  0xc2   :  { %v7768_v18 = vsel %vm5517_vm1, 4294967295, %v7767_v18  ;;  %1751 = vmatpush1.bf16.msra.mxu0 %v4656_v13  ;;  %4086 = vmatprep.mubr.msk.bf16.mxu0 %vm4085_vm13, %v7714_v28  ;;  %vm4103_vm7 = vmpackc.low %vm373_vm12, %vm369_vm15  ;;  %vm346_vm13 = vcmp.eq.s32.totalorder %v5171_v23, %v5306_v52  ;;  %vm350_vm15 = vcmp.eq.s32.totalorder %v5171_v23, %v5304_v51 }
  0xc3   :  { %1752 = vmatprep.subr.bf16.mxu0 %v4845_v2  ;;  %vm4105_vm14 = vmpackc.low %vm382_vm0, %vm378_vm3  ;;  %vm380_vm3 = vcmp.eq.s32.totalorder %v5206_v32, %v5464_v10  ;;  %vm384_vm0 = vcmp.eq.s32.totalorder %v5206_v32, %v5461_v9 }
  0xc4   :  { %v5538_v24 = vpop.permute.xlu1 %179  ;;  %4104 = vmatmul.mubr.msk.bf16.gmra.mrb[8].mxu1 %vm4103_vm7, %v7714_v28  ;;  %v5541_v27 = vpop.permute.xlu0 %176  ;;  %vm5553_vm12 = vmpackc.low %vm376_vm6, %vm372_vm2  ;;  %vm379_vm6 = vcmp.eq.s32.totalorder %v5168_v22, %v5464_v10  ;;  %vm383_vm2 = vcmp.eq.s32.totalorder %v5168_v22, %v5461_v9 }
  0xc5   :  { %v7770_v29 = vsel %vm5553_vm12, 4294967295, %v7769_v29  ;;  %4106 = vmatprep.mubr.msk.bf16.mxu1 %vm4105_vm14, %v7714_v28  ;;  %vm5558_vm7 = vmpackc.low %vm375_vm5, %vm371_vm11  ;;  %vm377_vm5 = vcmp.eq.s32.totalorder %v5163_v19, %v5464_v10  ;;  %vm381_vm14 = vcmp.eq.s32.totalorder %v5163_v19, %v5461_v9  ;;  %vm392_vm12 = vcmp.eq.s32.totalorder %v5206_v32, %v5501_v14 }
  0xc6   :  { %v7772_v30 = vsel %vm5558_vm7, 4294967295, %v7771_v30  ;;  %1753 = vmatpush1.bf16.msra.mxu0 %v4657_v20  ;;  %vm4087_vm1 = vmpackc.low %vm341_vm10, %vm337_vm9  ;;  %vm386_vm9 = vcmp.eq.s32.totalorder %v5171_v23, %v5503_v15  ;;  %vm390_vm10 = vcmp.eq.s32.totalorder %v5171_v23, %v5501_v14  ;;  %vm388_vm7 = vcmp.eq.s32.totalorder %v5206_v32, %v5503_v15 }
  0xc7   :  { %1754 = vmatprep.subr.bf16.mxu0 %v4845_v2  ;;  %vm4089_vm11 = vmpackc.low %vm350_vm15, %vm346_vm13  ;;  %v7801_v9 = vmov 0  ;;  %v7804_v10 = vmov 0 }
  0xc8   :  { %v5578_v33 = vpop.permute.xlu1 %185  ;;  %v5580_v34 = vpop.permute.xlu0 %182  ;;  %vm5589_vm13 = vmpackc.low %vm384_vm0, %vm380_vm3  ;;  %vm391_vm3 = vcmp.eq.s32.totalorder %v5168_v22, %v5501_v14 }
  0xc9   :  { %4088 = vmatmul.mubr.msk.bf16.gmra.mrb[24].mxu0 %vm4087_vm1, %v7714_v28  ;;  %vm5594_vm15 = vmpackc.low %vm383_vm2, %vm379_vm6  ;;  %vm387_vm1 = vcmp.eq.s32.totalorder %v5168_v22, %v5503_v15  ;;  %vm296_vm6 = vcmp.eq.s32.totalorder %v5206_v32, %v5173_v25  ;;  %vm345_vm2 = vcmp.eq.s32.totalorder %v5163_v19, %v5306_v52  ;;  %v7777_v25 = vmov 0  ;;  %v4661_v52 = vld [vmem:[%s7708_s2 + $0xf8] sm:$0xff]  }
  0xca   :  { %v7776_v36 = vsel %vm5594_vm15, 4294967295, %v7775_v36  ;;  %1755 = vmatpush1.bf16.msra.mxu0 %v4658_v31  ;;  %4090 = vmatprep.mubr.msk.bf16.mxu0 %vm4089_vm11, %v7714_v28  ;;  %vm4107_vm8 = vmpackc.low %vm381_vm14, %vm377_vm5  ;;  %vm349_vm11 = vcmp.eq.s32.totalorder %v5163_v19, %v5304_v51  ;;  %v7786_v51 = vmov 0  ;;  %vm408_vm15 = vcmp.eq.s32.totalorder %v5206_v32, %v5578_v33 }
  0xcb   :  { %1756 = vmatprep.subr.bf16.mxu0 %v4845_v2  ;;  %vm4109_vm0 = vmpackc.low %vm390_vm10, %vm386_vm9  ;;  %vm400_vm10 = vcmp.eq.s32.totalorder %v5206_v32, %v5538_v24  ;;  %vm389_vm9 = vcmp.eq.s32.totalorder %v5163_v19, %v5501_v14  ;;  %v7807_v14 = vmov 0 }
  0xcc   :  { %v5613_v40 = vpop.permute.xlu1 %191  ;;  %4108 = vmatmul.mubr.msk.bf16.gmra.mrb[12].mxu1 %vm4107_vm8, %v7714_v28  ;;  %v5616_v41 = vpop.permute.xlu0 %188  ;;  %vm5628_vm5 = vmpackc.low %vm392_vm12, %vm388_vm7  ;;  %vm292_vm8 = vcmp.eq.s32.totalorder %v5206_v32, %v5165_v21  ;;  %vm395_vm7 = vcmp.eq.s32.totalorder %v5168_v22, %v5541_v27 }
  0xcd   :  { %v7778_v25 = vsel %vm5628_vm5, 4294967295, %v7777_v25  ;;  %4110 = vmatprep.mubr.msk.bf16.mxu1 %vm4109_vm0, %v7714_v28  ;;  %vm5635_vm14 = vmpackc.low %vm391_vm3, %vm387_vm1  ;;  %vm399_vm1 = vcmp.eq.s32.totalorder %v5168_v22, %v5538_v24  ;;  %vm385_vm0 = vcmp.eq.s32.totalorder %v5163_v19, %v5503_v15  ;;  %vm404_vm5 = vcmp.eq.s32.totalorder %v5206_v32, %v5580_v34 }
  0xce   :  { %v7780_v42 = vsel %vm5635_vm14, 4294967295, %v7779_v42  ;;  %1757 = vmatpush1.bf16.msra.mxu0 %v4659_v37  ;;  %vm5646_vm12 = vmpackc.low %vm296_vm6, %vm292_vm8  ;;  %vm394_vm6 = vcmp.eq.s32.totalorder %v5171_v23, %v5541_v27  ;;  %vm398_vm8 = vcmp.eq.s32.totalorder %v5171_v23, %v5538_v24  ;;  %vm7783_vm14 = vcmp.eq.s32.totalorder %v5206_v32, %v5541_v27 }
  0xcf   :  { %1758 = vmatprep.subr.bf16.mxu0 %v4845_v2  ;;  %vm4091_vm3 = vmpackc.low %vm349_vm11, %vm345_vm2 }
  0xd0   :  { %v5659_v21 = vpop.permute.xlu1 %197  ;;  %v5661_v47 = vpop.permute.xlu0 %194  ;;  %vm5670_vm2 = vmpackc.low %vm400_vm10, %vm7783_vm14  ;;  %vm403_vm10 = vcmp.eq.s32.totalorder %v5168_v22, %v5580_v34 }
  0xd1   :  { %4092 = vmatmul.mubr.msk.bf16.gmra.mrb[28].mxu0 %vm4091_vm3, %v7714_v28  ;;  %vm5675_vm11 = vmpackc.low %vm399_vm1, %vm395_vm7  ;;  %vm407_vm7 = vcmp.eq.s32.totalorder %v5168_v22, %v5578_v33  ;;  %vm412_vm3 = vcmp.eq.s32.totalorder %v5206_v32, %v5616_v41 }
  0xd2   :  { %v7787_v51 = vsel %vm5675_vm11, 4294967295, %v7786_v51  ;;  %1759 = vmatpush1.bf16.msra.mxu0 %v4660_v45  ;;  %4190 = vmatprep.mubr.msk.bf16.mxu0 %vm5646_vm12, %v7714_v28  ;;  %vm4111_vm14 = vmpackc.low %vm389_vm9, %vm385_vm0  ;;  %vm416_vm0 = vcmp.eq.s32.totalorder %v5206_v32, %v5613_v40 }
  0xd3   :  { %1760 = vmatprep.subr.bf16.mxu0 %v4845_v2  ;;  %vm4113_vm1 = vmpackc.low %vm398_vm8, %vm394_vm6  ;;  %vm411_vm6 = vcmp.eq.s32.totalorder %v5168_v22, %v5616_v41  ;;  %vm397_vm8 = vcmp.eq.s32.totalorder %v5163_v19, %v5538_v24  ;;  %v7811_v24 = vmov 0 }
  0xd4   :  { %v5694_v55 = vpop.permute.xlu1 %203  ;;  %4112 = vmatmul.mubr.msk.bf16.gmra.mrb[16].mxu1 %vm4111_vm14, %v7714_v28  ;;  %v5697_v56 = vpop.permute.xlu0 %200  ;;  %vm5699_vm9 = vmpackc.low %vm408_vm15, %vm404_vm5  ;;  %vm415_vm15 = vcmp.eq.s32.totalorder %v5168_v22, %v5613_v40  ;;  %vm393_vm5 = vcmp.eq.s32.totalorder %v5163_v19, %v5541_v27  ;;  %vm402_vm14 = vcmp.eq.s32.totalorder %v5171_v23, %v5580_v34  ;;  %v7814_v27 = vmov 0 }
  0xd5   :  { %v7789_v57 = vsel %vm5699_vm9, 4294967295, %v7788_v57  ;;  %4114 = vmatprep.mubr.msk.bf16.mxu1 %vm4113_vm1, %v7714_v28  ;;  %vm5704_vm12 = vmpackc.low %vm407_vm7, %vm403_vm10  ;;  %vm406_vm10 = vcmp.eq.s32.totalorder %v5171_v23, %v5578_v33  ;;  %vm424_vm9 = vcmp.eq.s32.totalorder %v5206_v32, %v5659_v21 }
  0xd6   :  { %v7791_v58 = vsel %vm5704_vm12, 4294967295, %v7790_v58  ;;  %1761 = vmatpush1.bf16.msra.mxu0 %v4661_v52  ;;  %vm5728_vm7 = vmpackc.low %vm416_vm0, %vm412_vm3  ;;  %vm420_vm12 = vcmp.eq.s32.totalorder %v5206_v32, %v5661_v47  ;;  %vm7796_vm3 = vnez %v7726_v38  ;;  %v7799_v38 = vmov 0 }
  0xd7   :  { %v7793_v62 = vsel %vm5728_vm7, 4294967295, %v7792_v62  ;;  %vm5735_vm1 = vmpackc.low %vm415_vm15, %vm411_vm6  ;;  %vm419_vm7 = vcmp.eq.s32.totalorder %v5168_v22, %v5661_v47 }
  0xd8   :  { %v5720_v2 = vpop.permute.xlu1 %209  ;;  %v5722_v61 = vpop.permute.xlu0 %206  ;;  %v7795_v63 = vsel %vm5735_vm1, 4294967295, %v7794_v63  ;;  %vm4115_vm0 = vmpackc.low %vm397_vm8, %vm393_vm5  ;;  %vm428_vm8 = vcmp.eq.s32.totalorder %v5206_v32, %v5697_v56 }
  0xd9   :  { %4192 = vmatmul.mubr.msk.bf16.vlgmr.msra.gmra.mrb[0].mxu0 %vm5183_vm4, %v7714_v28  ;;  %vm423_vm4 = vcmp.eq.s32.totalorder %v5168_v22, %v5659_v21  ;;  %vm4117_vm6 = vmpackc.low %vm406_vm10, %vm402_vm14  ;;  %vm432_vm14 = vcmp.eq.s32.totalorder %v5206_v32, %v5694_v55  ;;  %vm427_vm10 = vcmp.eq.s32.totalorder %v5168_v22, %v5697_v56  ;;  %vm440_vm1 = vcmp.eq.s32.totalorder %v5206_v32, %v5720_v2 }
  0xda   :  { %4194 = vmatprep.mubr.msk.bf16.mxu0 %vm7796_vm3, %v7714_v28  ;;  %vm5755_vm15 = vmpackc.low %vm424_vm9, %vm420_vm12  ;;  %vm431_vm9 = vcmp.eq.s32.totalorder %v5168_v22, %v5694_v55  ;;  %vm401_vm12 = vcmp.eq.s32.totalorder %v5163_v19, %v5580_v34  ;;  %vm410_vm3 = vcmp.eq.s32.totalorder %v5171_v23, %v5616_v41 }
  0xdb   :  { %v7798_v4 = vsel %vm5755_vm15, 4294967295, %v7797_v4  ;;  %vm5760_vm5 = vmpackc.low %vm423_vm4, %vm419_vm7  ;;  %vm405_vm7 = vcmp.eq.s32.totalorder %v5163_v19, %v5578_v33  ;;  %vm436_vm15 = vcmp.eq.s32.totalorder %v5206_v32, %v5722_v61  ;;  %v7817_v33 = vmov 0 }
  0xdc   :  { %v5750_v26 = vpop.permute.xlu1 %215  ;;  %4116 = vmatmul.mubr.msk.bf16.gmra.mrb[20].mxu1 %vm4115_vm0, %v7714_v28  ;;  %v5753_v3 = vpop.permute.xlu0 %212  ;;  %v7800_v38 = vsel %vm5760_vm5, 4294967295, %v7799_v38  ;;  %vm414_vm0 = vcmp.eq.s32.totalorder %v5171_v23, %v5613_v40  ;;  %vm5784_vm4 = vmpackc.low %vm432_vm14, %vm428_vm8  ;;  %vm7806_vm8 = vnez %v7730_v43  ;;  %v7809_v43 = vmov 0 }
  0xdd   :  { %4118 = vmatprep.mubr.msk.bf16.mxu1 %vm4117_vm6, %v7714_v28  ;;  %v7802_v9 = vsel %vm5784_vm4, 4294967295, %v7801_v9  ;;  %vm7803_vm6 = vnez %v7728_v39  ;;  %vm5791_vm5 = vmpackc.low %vm431_vm9, %vm427_vm10  ;;  %vm435_vm4 = vcmp.eq.s32.totalorder %v5168_v22, %v5722_v61  ;;  %vm439_vm10 = vcmp.eq.s32.totalorder %v5168_v22, %v5720_v2 }
  0xde   :  { %v7805_v10 = vsel %vm5791_vm5, 4294967295, %v7804_v10  ;;  %vm4119_vm14 = vmpackc.low %vm405_vm7, %vm401_vm12  ;;  %vm444_vm7 = vcmp.eq.s32.totalorder %v5206_v32, %v5753_v3 }
  0xdf   :  { %vm4121_vm9 = vmpackc.low %vm414_vm0, %vm410_vm3  ;;  %vm448_vm3 = vcmp.eq.s32.totalorder %v5206_v32, %v5750_v26  ;;  %vm443_vm0 = vcmp.eq.s32.totalorder %v5168_v22, %v5753_v3 }
  0xe0   :  { %v5776_v5 = vpop.permute.xlu1 %221  ;;  %v5778_v8 = vpop.permute.xlu0 %218  ;;  %vm5816_vm12 = vmpackc.low %vm439_vm10, %vm435_vm4  ;;  %vm413_vm4 = vcmp.eq.s32.totalorder %v5163_v19, %v5613_v40  ;;  %v7821_v40 = vmov 0 }
  0xe1   :  { %4196 = vmatmul.mubr.msk.bf16.gmra.mrb[4].mxu0 %vm7803_vm6, %v7714_v28  ;;  %vm5811_vm6 = vmpackc.low %vm440_vm1, %vm436_vm15  ;;  %v7810_v43 = vsel %vm5816_vm12, 4294967295, %v7809_v43  ;;  %vm447_vm1 = vcmp.eq.s32.totalorder %v5168_v22, %v5750_v26  ;;  %vm409_vm15 = vcmp.eq.s32.totalorder %v5163_v19, %v5616_v41  ;;  %vm456_vm5 = vcmp.eq.s32.totalorder %v5206_v32, %v5776_v5 }
  0xe2   :  { %4198 = vmatprep.mubr.msk.bf16.mxu0 %vm7806_vm8, %v7714_v28  ;;  %v7808_v14 = vsel %vm5811_vm6, 4294967295, %v7807_v14  ;;  %vm418_vm8 = vcmp.eq.s32.totalorder %v5171_v23, %v5661_v47  ;;  %vm5840_vm10 = vmpackc.low %vm448_vm3, %vm444_vm7  ;;  %vm452_vm6 = vcmp.eq.s32.totalorder %v5206_v32, %v5778_v8  ;;  %vm7816_vm7 = vnez %v7734_v48 }
  0xe3   :  { %v7812_v24 = vsel %vm5840_vm10, 4294967295, %v7811_v24  ;;  %vm5847_vm12 = vmpackc.low %vm447_vm1, %vm443_vm0  ;;  %vm451_vm10 = vcmp.eq.s32.totalorder %v5168_v22, %v5778_v8  ;;  %vm455_vm0 = vcmp.eq.s32.totalorder %v5168_v22, %v5776_v5  ;;  %v7819_v48 = vmov 0 }
  0xe4   :  { %v5806_v39 = vpop.permute.xlu1 %227  ;;  %4120 = vmatmul.mubr.msk.bf16.gmra.mrb[24].mxu1 %vm4119_vm14, %v7714_v28  ;;  %v5809_v13 = vpop.permute.xlu0 %224  ;;  %vm422_vm14 = vcmp.eq.s32.totalorder %v5171_v23, %v5659_v21  ;;  %v7815_v27 = vsel %vm5847_vm12, 4294967295, %v7814_v27  ;;  %vm4123_vm3 = vmpackc.low %vm413_vm4, %vm409_vm15  ;;  %v7824_v41 = vmov 0 }
  0xe5   :  { %4122 = vmatprep.mubr.msk.bf16.mxu1 %vm4121_vm9, %v7714_v28  ;;  %vm7813_vm9 = vnez %v7732_v44  ;;  %vm4125_vm1 = vmpackc.low %vm422_vm14, %vm418_vm8  ;;  %vm460_vm4 = vcmp.eq.s32.totalorder %v5206_v32, %v5809_v13  ;;  %vm464_vm8 = vcmp.eq.s32.totalorder %v5206_v32, %v5806_v39  ;;  %vm459_vm14 = vcmp.eq.s32.totalorder %v5168_v22, %v5809_v13 }
  0xe6   :  { %vm5872_vm15 = vmpackc.low %vm455_vm0, %vm451_vm10  ;;  %vm421_vm10 = vcmp.eq.s32.totalorder %v5163_v19, %v5659_v21  ;;  %v7829_v21 = vmov 0 }
  0xe7   :  { %v7820_v48 = vsel %vm5872_vm15, 4294967295, %v7819_v48  ;;  %vm5896_vm0 = vmpackc.low %vm464_vm8, %vm460_vm4  ;;  %vm7826_vm4 = vnez %v7738_v53  ;;  %v7827_v53 = vmov 0 }
  0xe8   :  { %v5832_v15 = vpop.permute.xlu1 %233  ;;  %v5834_v20 = vpop.permute.xlu0 %230  ;;  %v7822_v40 = vsel %vm5896_vm0, 4294967295, %v7821_v40 }
  0xe9   :  { %4200 = vmatmul.mubr.msk.bf16.gmra.mrb[8].mxu0 %vm7813_vm9, %v7714_v28  ;;  %vm5867_vm9 = vmpackc.low %vm456_vm5, %vm452_vm6  ;;  %vm463_vm5 = vcmp.eq.s32.totalorder %v5168_v22, %v5806_v39  ;;  %vm417_vm6 = vcmp.eq.s32.totalorder %v5163_v19, %v5661_v47  ;;  %vm472_vm12 = vcmp.eq.s32.totalorder %v5206_v32, %v5832_v15 }
  0xea   :  { %4202 = vmatprep.mubr.msk.bf16.mxu0 %vm7816_vm7, %v7714_v28  ;;  %v7818_v33 = vsel %vm5867_vm9, 4294967295, %v7817_v33  ;;  %vm426_vm7 = vcmp.eq.s32.totalorder %v5171_v23, %v5697_v56  ;;  %vm5903_vm15 = vmpackc.low %vm463_vm5, %vm459_vm14  ;;  %vm468_vm9 = vcmp.eq.s32.totalorder %v5206_v32, %v5834_v20  ;;  %vm467_vm14 = vcmp.eq.s32.totalorder %v5168_v22, %v5834_v20 }
  0xeb   :  { %v7825_v41 = vsel %vm5903_vm15, 4294967295, %v7824_v41  ;;  %vm4127_vm8 = vmpackc.low %vm421_vm10, %vm417_vm6  ;;  %vm471_vm5 = vcmp.eq.s32.totalorder %v5168_v22, %v5832_v15 }
  0xec   :  { %v5862_v44 = vpop.permute.xlu1 %239  ;;  %4124 = vmatmul.mubr.msk.bf16.gmra.mrb[28].mxu1 %vm4123_vm3, %v7714_v28  ;;  %v5865_v31 = vpop.permute.xlu0 %236  ;;  %vm430_vm3 = vcmp.eq.s32.totalorder %v5171_v23, %v5694_v55  ;;  %vm5931_vm6 = vmpackc.low %vm471_vm5, %vm467_vm14  ;;  %vm434_vm14 = vcmp.eq.s32.totalorder %v5171_v23, %v5722_v61  ;;  %vm438_vm5 = vcmp.eq.s32.totalorder %v5171_v23, %v5720_v2 }
  0xed   :  { %4126 = vmatprep.mubr.msk.bf16.mxu1 %vm4125_vm1, %v7714_v28  ;;  %vm7823_vm1 = vnez %v7736_v49  ;;  %v4662_v49 = vld [vmem:[%s7709_s3] sm:$0xff]   ;;  %v7830_v21 = vsel %vm5931_vm6, 4294967295, %v7829_v21  ;;  %vm476_vm10 = vcmp.eq.s32.totalorder %v5206_v32, %v5865_v31  ;;  %vm7833_vm6 = vnez %v7740_v54 }
  0xee   :  { %4431 = vmatprep.subr.bf16.mxu1 %v4662_v49 }
  0xef   :  { %4432 = vmatpush3.bf16.msra.mxu1 %v4662_v49  ;;  %v7831_v49 = vmov 0 }
  0xf0   :  { %v5888_v34 = vpop.permute.xlu1 %245  ;;  %v5890_v37 = vpop.permute.xlu0 %242 }
  0xf1   :  { %4204 = vmatmul.mubr.msk.bf16.gmra.mrb[12].mxu0 %vm7823_vm1, %v7714_v28  ;;  %vm4129_vm1 = vmpackc.low %vm430_vm3, %vm426_vm7  ;;  %vm480_vm7 = vcmp.eq.s32.totalorder %v5206_v32, %v5862_v44  ;;  %vm475_vm3 = vcmp.eq.s32.totalorder %v5168_v22, %v5865_v31  ;;  %vm484_vm15 = vcmp.eq.s32.totalorder %v5206_v32, %v5890_v37  ;;  %vm488_vm0 = vcmp.eq.s32.totalorder %v5206_v32, %v5888_v34 }
  0xf2   :  { %4206 = vmatprep.mubr.msk.bf16.mxu0 %vm7826_vm4, %v7714_v28  ;;  %vm5926_vm4 = vmpackc.low %vm472_vm12, %vm468_vm9  ;;  %vm479_vm12 = vcmp.eq.s32.totalorder %v5168_v22, %v5862_v44  ;;  %vm425_vm9 = vcmp.eq.s32.totalorder %v5163_v19, %v5697_v56 }
  0xf3   :  { %v7828_v53 = vsel %vm5926_vm4, 4294967295, %v7827_v53  ;;  %vm5962_vm4 = vmpackc.low %vm479_vm12, %vm475_vm3 }
  0xf4   :  { %v5921_v45 = vpop.permute.xlu1 %251  ;;  %4128 = vmatmul.mubr.msk.bf16.gmra.mrb[32].mxu1 %vm4127_vm8, %v7714_v28  ;;  %v5924_v46 = vpop.permute.xlu0 %248  ;;  %vm429_vm8 = vcmp.eq.s32.totalorder %v5163_v19, %v5694_v55  ;;  %v7834_v55 = vmov 0  ;;  %vm4133_vm3 = vmpackc.low %vm438_vm5, %vm434_vm14 }
  0xf5   :  { %4130 = vmatprep.mubr.msk.bf16.mxu1 %vm4129_vm1, %v7714_v28  ;;  %vm5955_vm1 = vmpackc.low %vm480_vm7, %vm476_vm10  ;;  %v7835_v55 = vsel %vm5962_vm4, 4294967295, %v7834_v55  ;;  %vm7837_vm10 = vnez %v7744_v59  ;;  %v7841_v59 = vmov 0  ;;  %vm496_vm14 = vcmp.eq.s32.totalorder %v5206_v32, %v5921_v45 }
  0xf6   :  { %v7832_v49 = vsel %vm5955_vm1, 4294967295, %v7831_v49  ;;  %7836 = vst [vmem:[#allocation8_spill] sm:$0xff] %v7835_v55  ;;  %vm4131_vm7 = vmpackc.low %vm429_vm8, %vm425_vm9  ;;  %vm483_vm1 = vcmp.eq.s32.totalorder %v5168_v22, %v5890_v37  ;;  %vm492_vm8 = vcmp.eq.s32.totalorder %v5206_v32, %v5924_v46  ;;  %vm491_vm5 = vcmp.eq.s32.totalorder %v5168_v22, %v5924_v46 }
  0xf7   :  { %vm5982_vm12 = vmpackc.low %vm488_vm0, %vm484_vm15  ;;  %vm495_vm15 = vcmp.eq.s32.totalorder %v5168_v22, %v5921_v45  ;;  %vm433_vm0 = vcmp.eq.s32.totalorder %v5163_v19, %v5722_v61  ;;  %v7846_v55 = vmov 1.0|1.0   ;;  %v7855_v61 = vmov 0 }
  0xf8   :  { %v5947_v47 = vpop.permute.xlu1 %257  ;;  %v5949_v52 = vpop.permute.xlu0 %254  ;;  %v7839_v16 = vsel %vm5982_vm12, 4294967295, %v7838_v16 }
  0xf9   :  { %4208 = vmatmul.mubr.msk.bf16.gmra.mrb[16].mxu0 %vm7833_vm6, %v7714_v28  ;;  %vm487_vm6 = vcmp.eq.s32.totalorder %v5168_v22, %v5888_v34  ;;  %7840 = vst [vmem:[#allocation9_spill] sm:$0xff] %v7839_v16  ;;  %v7844_v16 = vmov 0  ;;  %vm500_vm12 = vcmp.eq.s32.totalorder %v5206_v32, %v5949_v52  ;;  %vm504_vm4 = vcmp.eq.s32.totalorder %v5206_v32, %v5947_v47 }
  0xfa   :  { %4210 = vmatprep.mubr.msk.bf16.mxu0 %vm7837_vm10, %v7714_v28  ;;  %vm5987_vm9 = vmpackc.low %vm487_vm6, %vm483_vm1  ;;  %vm437_vm1 = vcmp.eq.s32.totalorder %v5163_v19, %v5720_v2  ;;  %vm442_vm10 = vcmp.eq.s32.totalorder %v5171_v23, %v5753_v3  ;;  %v7848_v2 = vmov 0 }
  0xfb   :  { %v7842_v59 = vsel %vm5987_vm9, 4294967295, %v7841_v59  ;;  %vm6011_vm6 = vmpackc.low %vm496_vm14, %vm492_vm8  ;;  %vm7851_vm8 = vnez %v7751_v0 }
  0xfc   :  { %v5977_v54 = vpop.permute.xlu1 %263  ;;  %4132 = vmatmul.mubr.msk.bf16.gmra.mrb[36].mxu1 %vm4131_vm7, %v7714_v28  ;;  %v5980_v56 = vpop.permute.xlu0 %260  ;;  %7843 = vst [vmem:[#allocation10_spill] sm:$0xff] %v7842_v59  ;;  %vm446_vm7 = vcmp.eq.s32.totalorder %v5171_v23, %v5750_v26  ;;  %v7845_v16 = vsel %vm6011_vm6, 4294967295, %v7844_v16  ;;  %vm6018_vm9 = vmpackc.low %vm495_vm15, %vm491_vm5  ;;  %vm499_vm6 = vcmp.eq.s32.totalorder %v5168_v22, %v5949_v52  ;;  %vm503_vm5 = vcmp.eq.s32.totalorder %v5168_v22, %v5947_v47 }
  0xfd   :  { %4134 = vmatprep.mubr.msk.bf16.mxu1 %vm4133_vm3, %v7714_v28  ;;  %vm7847_vm3 = vnez %v7747_v60  ;;  %v7849_v2 = vsel %vm6018_vm9, 4294967295, %v7848_v2  ;;  %vm4135_vm14 = vmpackc.low %vm437_vm1, %vm433_vm0  ;;  %v7852_v60 = vmov 0  ;;  %vm508_vm0 = vcmp.eq.s32.totalorder %v5206_v32, %v5980_v56 }
  0xfe   :  { %7850 = vst [vmem:[#allocation11_spill] sm:$0xff] %v7849_v2  ;;  %vm4137_vm15 = vmpackc.low %vm446_vm7, %vm442_vm10  ;;  %vm512_vm1 = vcmp.eq.s32.totalorder %v5206_v32, %v5977_v54  ;;  %vm441_vm10 = vcmp.eq.s32.totalorder %v5163_v19, %v5753_v3  ;;  %vm445_vm7 = vcmp.eq.s32.totalorder %v5163_v19, %v5750_v26 }
  0xff   :  { %vm6039_vm9 = vmpackc.low %vm503_vm5, %vm499_vm6  ;;  %vm450_vm6 = vcmp.eq.s32.totalorder %v5171_v23, %v5778_v8  ;;  %vm7860_vm5 = vnez %v7753_v1  ;;  %v4663_v1 = vld [vmem:[%s7709_s3 + $0x8] sm:$0xff]  }
 0x100   :  { %v6003_v28 = vpop.permute.xlu1 %269  ;;  %v6005_v59 = vpop.permute.xlu0 %266  ;;  %v7856_v61 = vsel %vm6039_vm9, 4294967295, %v7855_v61  ;;  %4433 = vmatprep.subr.bf16.mxu1 %v4663_v1 }
 0x101   :  { %4212 = vmatmul.mubr.msk.bf16.gmra.mrb[20].mxu0 %vm7847_vm3, %v7846_v55  ;;  %vm6034_vm3 = vmpackc.low %vm504_vm4, %vm500_vm12  ;;  %7857 = vst [vmem:[#allocation13_spill] sm:$0xff] %v7856_v61  ;;  %vm507_vm4 = vcmp.eq.s32.totalorder %v5168_v22, %v5980_v56  ;;  %vm511_vm12 = vcmp.eq.s32.totalorder %v5168_v22, %v5977_v54  ;;  %v7858_v61 = vmov 0  ;;  %vm516_vm9 = vcmp.eq.s32.totalorder %v5206_v32, %v6005_v59 }
 0x102   :  { %4214 = vmatprep.mubr.msk.bf16.mxu0 %vm7851_vm8, %v7846_v55  ;;  %v7853_v60 = vsel %vm6034_vm3, 4294967295, %v7852_v60  ;;  %vm454_vm8 = vcmp.eq.s32.totalorder %v5171_v23, %v5776_v5  ;;  %vm520_vm3 = vcmp.eq.s32.totalorder %v5206_v32, %v6003_v28  ;;  %4434 = vmatpush3.bf16.msra.mxu1 %v4663_v1 }
 0x103   :  { %7854 = vst [vmem:[#allocation12_spill] sm:$0xff] %v7853_v60  ;;  %v7861_v60 = vmov 0 }
 0x104   :  { %4136 = vmatmul.mubr.msk.bf16.gmra.mrb[40].mxu1 %vm4135_vm14, %v7846_v55  ;;  %v6047_v0 = vpop.permute.xlu1 %275  ;;  %v6049_v2 = vpop.permute.xlu0 %272  ;;  %vm6063_vm14 = vmpackc.low %vm512_vm1, %vm508_vm0  ;;  %vm7864_vm0 = vnez %v7756_v6  ;;  %v7865_v6 = vmov 0 }
 0x105   :  { %4138 = vmatprep.mubr.msk.bf16.mxu1 %vm4137_vm15, %v7846_v55  ;;  %v7859_v61 = vsel %vm6063_vm14, 4294967295, %v7858_v61  ;;  %vm6070_vm15 = vmpackc.low %vm511_vm12, %vm507_vm4  ;;  %vm515_vm4 = vcmp.eq.s32.totalorder %v5168_v22, %v6005_v59  ;;  %vm519_vm12 = vcmp.eq.s32.totalorder %v5168_v22, %v6003_v28  ;;  %vm7871_vm14 = vnez %v7758_v7 }
 0x106   :  { %v7862_v60 = vsel %vm6070_vm15, 4294967295, %v7861_v60  ;;  %vm4139_vm1 = vmpackc.low %vm445_vm7, %vm441_vm10  ;;  %vm449_vm10 = vcmp.eq.s32.totalorder %v5163_v19, %v5778_v8  ;;  %vm453_vm7 = vcmp.eq.s32.totalorder %v5163_v19, %v5776_v5  ;;  %vm523_vm15 = vcmp.eq.s32.totalorder %v5168_v22, %v6049_v2 }
 0x107   :  { %7863 = vst [vmem:[#allocation14_spill] sm:$0xff] %v7862_v60  ;;  %v7867_v60 = vmov 0  ;;  %v7869_v5 = vmov 0 }
 0x108   :  { %v6088_v26 = vpop.permute.xlu1 %281  ;;  %v6090_v3 = vpop.permute.xlu0 %278 }
 0x109   :  { %4216 = vmatmul.mubr.msk.bf16.gmra.mrb[24].mxu0 %vm7860_vm5, %v7846_v55  ;;  %vm4141_vm5 = vmpackc.low %vm454_vm8, %vm450_vm6  ;;  %vm524_vm8 = vcmp.eq.s32.totalorder %v5206_v32, %v6049_v2 }
 0x10a   :  { %4218 = vmatprep.mubr.msk.bf16.mxu0 %vm7864_vm0, %v7846_v55  ;;  %vm6097_vm0 = vmpackc.low %vm520_vm3, %vm516_vm9  ;;  %vm527_vm9 = vcmp.eq.s32.totalorder %v5168_v22, %v6047_v0 }
 0x10b   :  { %v7866_v6 = vsel %vm6097_vm0, 4294967295, %v7865_v6  ;;  %vm6102_vm6 = vmpackc.low %vm519_vm12, %vm515_vm4  ;;  %vm532_vm4 = vcmp.eq.s32.totalorder %v5206_v32, %v6090_v3  ;;  %vm536_vm12 = vcmp.eq.s32.totalorder %v5206_v32, %v6088_v26  ;;  %vm535_vm0 = vcmp.eq.s32.totalorder %v5168_v22, %v6088_v26 }
 0x10c   :  { %4140 = vmatmul.mubr.msk.bf16.gmra.mrb[44].mxu1 %vm4139_vm1, %v7846_v55  ;;  %v7868_v60 = vsel %vm6102_vm6, 4294967295, %v7867_v60  ;;  %vm528_vm1 = vcmp.eq.s32.totalorder %v5206_v32, %v6047_v0  ;;  %vm4143_vm3 = vmpackc.low %vm453_vm7, %vm449_vm10  ;;  %vm531_vm6 = vcmp.eq.s32.totalorder %v5168_v22, %v6090_v3  ;;  %vm458_vm10 = vcmp.eq.s32.totalorder %v5171_v23, %v5809_v13  ;;  %v6314_v35 = vpop.permute.xlu0 %284 }
 0x10d   :  { %4142 = vmatprep.mubr.msk.bf16.mxu1 %vm4141_vm5, %v7846_v55  ;;  %vm6118_vm5 = vmpackc.low %vm528_vm1, %vm524_vm8  ;;  %vm462_vm7 = vcmp.eq.s32.totalorder %v5171_v23, %v5806_v39  ;;  %vm7874_vm1 = vnez %v7762_v11  ;;  %v4664_v11 = vld [vmem:[%s7709_s3 + $0x10] sm:$0xff]  }
 0x10e   :  { %v7870_v5 = vsel %vm6118_vm5, 4294967295, %v7869_v5  ;;  %vm6133_vm8 = vmpackc.low %vm527_vm9, %vm523_vm15  ;;  %vm457_vm15 = vcmp.eq.s32.totalorder %v5163_v19, %v5809_v13  ;;  %vm461_vm9 = vcmp.eq.s32.totalorder %v5163_v19, %v5806_v39  ;;  %4435 = vmatprep.subr.bf16.mxu1 %v4664_v11 }
 0x10f   :  { %vm6140_vm5 = vmpackc.low %vm536_vm12, %vm532_vm4  ;;  %vm7879_vm4 = vnez %v7764_v12  ;;  %v4665_v12 = vld [vmem:[%s7709_s3 + $0x18] sm:$0xff]   ;;  %4436 = vmatpush3.bf16.msra.mxu1 %v4664_v11 }
 0x110   :  { %vm6144_vm11 = vmpackc.low %vm535_vm0, %vm531_vm6  ;;  %vm466_vm0 = vcmp.eq.s32.totalorder %v5171_v23, %v5834_v20  ;;  %vm470_vm6 = vcmp.eq.s32.totalorder %v5171_v23, %v5832_v15  ;;  %4437 = vmatprep.subr.bf16.mxu1 %v4665_v12 }
 0x111   :  { %4220 = vmatmul.mubr.msk.bf16.gmra.mrb[28].mxu0 %vm7871_vm14, %v7846_v55  ;;  %vm4145_vm14 = vmpackc.low %vm462_vm7, %vm458_vm10  ;;  %vm465_vm7 = vcmp.eq.s32.totalorder %v5163_v19, %v5834_v20 }
 0x112   :  { %4222 = vmatprep.mubr.msk.bf16.mxu0 %vm7874_vm1, %v7846_v55  ;;  %vm4147_vm12 = vmpackc.low %vm461_vm9, %vm457_vm15  ;;  %vm469_vm1 = vcmp.eq.s32.totalorder %v5163_v19, %v5832_v15  ;;  %vm478_vm15 = vcmp.eq.s32.totalorder %v5171_v23, %v5862_v44  ;;  %vm7882_vm9 = vnez %v7770_v29  ;;  %v4668_v29 = vld [vmem:[%s7709_s3 + $0x30] sm:$0xff]   ;;  %v7916_v15 = vld [vmem:[#allocation12_spill] sm:$0xff] }
 0x113   :  { %vm4149_vm10 = vmpackc.low %vm470_vm6, %vm466_vm0  ;;  %4438 = vmatpush3.bf16.msra.mxu1 %v4665_v12 }
 0x114   :  { %4144 = vmatmul.mubr.msk.bf16.gmra.mrb[48].mxu1 %vm4143_vm3, %v7846_v55  ;;  %vm7880_vm3 = vnez %v7766_v17  ;;  %vm4151_vm0 = vmpackc.low %vm469_vm1, %vm465_vm7  ;;  %vm482_vm7 = vcmp.eq.s32.totalorder %v5171_v23, %v5890_v37  ;;  %vm486_vm1 = vcmp.eq.s32.totalorder %v5171_v23, %v5888_v34  ;;  %v4666_v17 = vld [vmem:[%s7709_s3 + $0x20] sm:$0xff]  }
 0x115   :  { %4146 = vmatprep.mubr.msk.bf16.mxu1 %vm4145_vm14, %v7846_v55  ;;  %vm7881_vm14 = vnez %v7768_v18  ;;  %4439 = vmatprep.subr.bf16.mxu1 %v4666_v17  ;;  %v4667_v18 = vld [vmem:[%s7709_s3 + $0x28] sm:$0xff]  }
 0x117   :  { %4440 = vmatpush3.bf16.msra.mxu1 %v4666_v17 }
 0x118   :  { %4441 = vmatprep.subr.bf16.mxu1 %v4667_v18 }
 0x119   :  { %4224 = vmatmul.mubr.msk.bf16.gmra.mrb[32].mxu0 %vm7879_vm4, %v7846_v55  ;;  %vm474_vm4 = vcmp.eq.s32.totalorder %v5171_v23, %v5865_v31 }
 0x11a   :  { %4226 = vmatprep.mubr.msk.bf16.mxu0 %vm7880_vm3, %v7846_v55  ;;  %vm4153_vm6 = vmpackc.low %vm478_vm15, %vm474_vm4  ;;  %vm473_vm3 = vcmp.eq.s32.totalorder %v5163_v19, %v5865_v31  ;;  %vm481_vm15 = vcmp.eq.s32.totalorder %v5163_v19, %v5890_v37 }
 0x11b   :  { %vm4157_vm4 = vmpackc.low %vm486_vm1, %vm482_vm7  ;;  %4442 = vmatpush3.bf16.msra.mxu1 %v4667_v18  ;;  %vm489_vm7 = vcmp.eq.s32.totalorder %v5163_v19, %v5924_v46  ;;  %vm493_vm1 = vcmp.eq.s32.totalorder %v5163_v19, %v5921_v45 }
 0x11c   :  { %4148 = vmatmul.mubr.msk.bf16.gmra.mrb[52].mxu1 %vm4147_vm12, %v7846_v55  ;;  %vm477_vm12 = vcmp.eq.s32.totalorder %v5163_v19, %v5862_v44  ;;  %4443 = vmatprep.subr.bf16.mxu1 %v4668_v29 }
 0x11d   :  { %4150 = vmatprep.mubr.msk.bf16.mxu1 %vm4149_vm10, %v7846_v55  ;;  %vm7883_vm10 = vnez %v7772_v30  ;;  %v4669_v30 = vld [vmem:[%s7709_s3 + $0x38] sm:$0xff]   ;;  %s3052_s3 = sld [smem:[#allocation3]] }
 0x11f   :  { %4444 = vmatpush3.bf16.msra.mxu1 %v4668_v29 }
 0x120   :  { %4445 = vmatprep.subr.bf16.mxu1 %v4669_v30 }
 0x121   :  { %4228 = vmatmul.mubr.msk.bf16.gmra.mrb[36].mxu0 %vm7881_vm14, %v7846_v55  ;;  %vm4155_vm14 = vmpackc.low %vm477_vm12, %vm473_vm3  ;;  %vm7885_vm3 = vnez %v7778_v25 }
 0x122   :  { %4230 = vmatprep.mubr.msk.bf16.mxu0 %vm7882_vm9, %v7846_v55  ;;  %vm485_vm9 = vcmp.eq.s32.totalorder %v5163_v19, %v5888_v34 }
 0x123   :  { %vm4159_vm12 = vmpackc.low %vm485_vm9, %vm481_vm15  ;;  %vm502_vm15 = vcmp.eq.s32.totalorder %v5171_v23, %v5947_v47  ;;  %4446 = vmatpush3.bf16.msra.mxu1 %v4669_v30  ;;  %p3053_p5 = scmp.lt.s32.totalorder %s3052_s3, 256 }
 0x124   :  { %4152 = vmatmul.mubr.msk.bf16.gmra.mrb[56].mxu1 %vm4151_vm0, %v7846_v55  ;;  %vm490_vm0 = vcmp.eq.s32.totalorder %v5171_v23, %v5924_v46  ;;  %vm4163_vm9 = vmpackc.low %vm493_vm1, %vm489_vm7  ;;  %v7921_v46 = vld [vmem:[#allocation14_spill] sm:$0xff] }
 0x125   :  { %4154 = vmatprep.mubr.msk.bf16.mxu1 %vm4153_vm6, %v7846_v55  ;;  %vm494_vm6 = vcmp.eq.s32.totalorder %v5171_v23, %v5921_v45  ;;  %s7928_s3 = smov (!%p3053_p5, %s3052_s3), 256 }
 0x129   :  { %4232 = vmatmul.mubr.msk.bf16.gmra.mrb[40].mxu0 %vm7883_vm10, %v7846_v55  ;;  %vm4161_vm10 = vmpackc.low %vm494_vm6, %vm490_vm0  ;;  %vm497_vm0 = vcmp.eq.s32.totalorder %v5163_v19, %v5949_v52  ;;  %vm501_vm6 = vcmp.eq.s32.totalorder %v5163_v19, %v5947_v47 }
 0x12a   :  { %4234 = vmatprep.mubr.msk.bf16.mxu0 %vm5589_vm13, %v7846_v55  ;;  %vm7884_vm13 = vnez %v7776_v36  ;;  %vm4167_vm7 = vmpackc.low %vm501_vm6, %vm497_vm0  ;;  %vm7890_vm0 = vnez %v7793_v62 }
 0x12c   :  { %4156 = vmatmul.mubr.msk.bf16.gmra.mrb[60].mxu1 %vm4155_vm14, %v7846_v55  ;;  %vm7886_vm14 = vnez %v7780_v42 }
 0x12d   :  { %4158 = vmatprep.mubr.msk.bf16.mxu1 %vm4157_vm4, %v7846_v55  ;;  %vm498_vm4 = vcmp.eq.s32.totalorder %v5171_v23, %v5949_v52 }
 0x131   :  { %4236 = vmatmul.mubr.msk.bf16.gmra.mrb[44].mxu0 %vm7884_vm13, %v7846_v55  ;;  %vm4165_vm13 = vmpackc.low %vm502_vm15, %vm498_vm4  ;;  %vm509_vm4 = vcmp.eq.s32.totalorder %v5163_v19, %v5977_v54  ;;  %vm7889_vm15 = vnez %v7791_v58  ;;  %v7909_v58 = vld [vmem:[#allocation9_spill] sm:$0xff] }
 0x132   :  { %4238 = vmatprep.mubr.msk.bf16.mxu0 %vm7885_vm3, %v7846_v55  ;;  %vm7887_vm3 = vnez %v7787_v51  ;;  %v7907_v51 = vld [vmem:[#allocation8_spill] sm:$0xff] }
 0x134   :  { %4160 = vmatmul.mubr.msk.bf16.gmra.mrb[64].mxu1 %vm4159_vm12, %v7846_v55  ;;  %vm506_vm12 = vcmp.eq.s32.totalorder %v5171_v23, %v5980_v56 }
 0x135   :  { %4162 = vmatprep.mubr.msk.bf16.mxu1 %vm4161_vm10, %v7846_v55  ;;  %vm7888_vm10 = vnez %v7789_v57 }
 0x139   :  { %4240 = vmatmul.mubr.msk.bf16.gmra.mrb[48].mxu0 %vm7886_vm14, %v7846_v55  ;;  %vm505_vm14 = vcmp.eq.s32.totalorder %v5163_v19, %v5980_v56 }
 0x13a   :  { %4242 = vmatprep.mubr.msk.bf16.mxu0 %vm5670_vm2, %v7846_v55  ;;  %vm510_vm2 = vcmp.eq.s32.totalorder %v5171_v23, %v5977_v54  ;;  %vm4171_vm6 = vmpackc.low %vm509_vm4, %vm505_vm14  ;;  %vm7892_vm14 = vnez %v7798_v4 }
 0x13b   :  { %vm4169_vm1 = vmpackc.low %vm510_vm2, %vm506_vm12  ;;  %vm513_vm12 = vcmp.eq.s32.totalorder %v5163_v19, %v6005_v59  ;;  %vm517_vm2 = vcmp.eq.s32.totalorder %v5163_v19, %v6003_v28 }
 0x13c   :  { %4164 = vmatmul.mubr.msk.bf16.gmra.mrb[68].mxu1 %vm4163_vm9, %v7846_v55  ;;  %vm514_vm9 = vcmp.eq.s32.totalorder %v5171_v23, %v6005_v59  ;;  %vm4175_vm4 = vmpackc.low %vm517_vm2, %vm513_vm12  ;;  %vm7894_vm12 = vnez %v7802_v9 }
 0x13d   :  { %4166 = vmatprep.mubr.msk.bf16.mxu1 %vm4165_vm13, %v7846_v55  ;;  %vm518_vm13 = vcmp.eq.s32.totalorder %v5171_v23, %v6003_v28  ;;  %v6312_v28 = vpop.permute.xlu1 %287 }
 0x141   :  { %4244 = vmatmul.mubr.msk.bf16.gmra.mrb[52].mxu0 %vm7887_vm3, %v7846_v55  ;;  %vm4173_vm3 = vmpackc.low %vm518_vm13, %vm514_vm9  ;;  %vm521_vm9 = vcmp.eq.s32.totalorder %v5163_v19, %v6049_v2  ;;  %vm525_vm13 = vcmp.eq.s32.totalorder %v5163_v19, %v6047_v0 }
 0x142   :  { %4246 = vmatprep.mubr.msk.bf16.mxu0 %vm7888_vm10, %v7846_v55  ;;  %vm7891_vm10 = vnez %v7795_v63  ;;  %vm4179_vm2 = vmpackc.low %vm525_vm13, %vm521_vm9  ;;  %vm7896_vm9 = vnez %v7808_v14  ;;  %v7914_v14 = vld [vmem:[#allocation11_spill] sm:$0xff] }
 0x144   :  { %4168 = vmatmul.mubr.msk.bf16.gmra.mrb[72].mxu1 %vm4167_vm7, %v7846_v55  ;;  %vm522_vm7 = vcmp.eq.s32.totalorder %v5171_v23, %v6049_v2 }
 0x145   :  { %4170 = vmatprep.mubr.msk.bf16.mxu1 %vm4169_vm1, %v7846_v55  ;;  %vm526_vm1 = vcmp.eq.s32.totalorder %v5171_v23, %v6047_v0 }
 0x149   :  { %4248 = vmatmul.mubr.msk.bf16.gmra.mrb[56].mxu0 %vm7889_vm15, %v7846_v55  ;;  %vm4177_vm15 = vmpackc.low %vm526_vm1, %vm522_vm7  ;;  %vm529_vm7 = vcmp.eq.s32.totalorder %v5163_v19, %v6090_v3  ;;  %vm533_vm1 = vcmp.eq.s32.totalorder %v5163_v19, %v6088_v26 }
 0x14a   :  { %4250 = vmatprep.mubr.msk.bf16.mxu0 %vm7890_vm0, %v7846_v55  ;;  %vm7893_vm0 = vnez %v7800_v38  ;;  %vm4183_vm13 = vmpackc.low %vm533_vm1, %vm529_vm7  ;;  %vm7899_vm7 = vnez %v7815_v27  ;;  %vm7900_vm1 = vnez %v7818_v33  ;;  %v7911_v38 = vld [vmem:[#allocation10_spill] sm:$0xff] }
 0x14c   :  { %4172 = vmatmul.mubr.msk.bf16.gmra.mrb[76].mxu1 %vm4171_vm6, %v7846_v55  ;;  %vm530_vm6 = vcmp.eq.s32.totalorder %v5171_v23, %v6090_v3 }
 0x14d   :  { %4174 = vmatprep.mubr.msk.bf16.mxu1 %vm4173_vm3, %v7846_v55  ;;  %vm534_vm3 = vcmp.eq.s32.totalorder %v5171_v23, %v6088_v26 }
 0x151   :  { %4252 = vmatmul.mubr.msk.bf16.gmra.mrb[60].mxu0 %vm7891_vm10, %v7846_v55  ;;  %vm4181_vm10 = vmpackc.low %vm534_vm3, %vm530_vm6  ;;  %vm537_vm6 = vcmp.eq.s32.totalorder %v5163_v19, %v6314_v35  ;;  %vm541_vm3 = vcmp.eq.s32.totalorder %v5163_v19, %v6312_v28 }
 0x152   :  { %4254 = vmatprep.mubr.msk.bf16.mxu0 %vm7892_vm14, %v7846_v55  ;;  %vm7895_vm14 = vnez %v7805_v10 }
 0x154   :  { %4176 = vmatmul.mubr.msk.bf16.gmra.mrb[80].mxu1 %vm4175_vm4, %v7846_v55  ;;  %vm538_vm4 = vcmp.eq.s32.totalorder %v5171_v23, %v6314_v35 }
 0x155   :  { %4178 = vmatprep.mubr.msk.bf16.mxu1 %vm4177_vm15, %v7846_v55  ;;  %vm542_vm15 = vcmp.eq.s32.totalorder %v5171_v23, %v6312_v28 }
 0x159   :  { %4256 = vmatmul.mubr.msk.bf16.gmra.mrb[64].mxu0 %vm7893_vm0, %v7846_v55  ;;  %vm4185_vm0 = vmpackc.low %vm542_vm15, %vm538_vm4  ;;  %vm7902_vm4 = vnez %v7822_v40  ;;  %vm7903_vm15 = vnez %v7825_v41 }
 0x15a   :  { %4258 = vmatprep.mubr.msk.bf16.mxu0 %vm7894_vm12, %v7846_v55  ;;  %vm7897_vm12 = vnez %v7810_v43 }
 0x15c   :  { %4180 = vmatmul.mubr.msk.bf16.gmra.mrb[84].mxu1 %vm4179_vm2, %v7846_v55  ;;  %vm7898_vm2 = vnez %v7812_v24 }
 0x15d   :  { %4182 = vmatprep.mubr.msk.bf16.mxu1 %vm4181_vm10, %v7846_v55  ;;  %vm4187_vm10 = vmpackc.low %vm541_vm3, %vm537_vm6  ;;  %vm7908_vm6 = vnez %v7907_v51  ;;  %vm7910_vm3 = vnez %v7909_v58 }
 0x161   :  { %4260 = vmatmul.mubr.msk.bf16.gmra.mrb[68].mxu0 %vm7895_vm14, %v7846_v55  ;;  %vm7901_vm14 = vnez %v7820_v48 }
 0x162   :  { %4262 = vmatprep.mubr.msk.bf16.mxu0 %vm7896_vm9, %v7846_v55  ;;  %vm7904_vm9 = vnez %v7828_v53 }
 0x164   :  { %4184 = vmatmul.mubr.msk.bf16.gmra.mrb[88].mxu1 %vm4183_vm13, %v7846_v55  ;;  %vm7905_vm13 = vnez %v7830_v21 }
 0x165   :  { %4186 = vmatprep.mubr.msk.bf16.mxu1 %vm4185_vm0, %v7846_v55  ;;  %vm7906_vm0 = vnez %v7832_v49 }
 0x169   :  { %4264 = vmatmul.mubr.msk.bf16.gmra.mrb[72].mxu0 %vm7897_vm12, %v7846_v55  ;;  %vm7912_vm12 = vnez %v7911_v38 }
 0x16a   :  { %4266 = vmatprep.mubr.msk.bf16.mxu0 %vm7898_vm2, %v7846_v55  ;;  %vm7913_vm2 = vnez %v7845_v16  ;;  %v7918_v16 = vld [vmem:[#allocation13_spill] sm:$0xff] }
 0x16c   :  { %4188 = vmatmul.mubr.msk.bf16.gmra.mrb[92].mxu1 %vm4187_vm10, %v7846_v55  ;;  %vm7915_vm10 = vnez %v7914_v14 }
 0x171   :  { %4268 = vmatmul.mubr.msk.bf16.gmra.mrb[76].mxu0 %vm7899_vm7, %v7846_v55  ;;  %vm7917_vm7 = vnez %v7916_v15 }
 0x172   :  { %4270 = vmatprep.mubr.msk.bf16.mxu0 %vm7900_vm1, %v7846_v55  ;;  %vm7919_vm1 = vnez %v7918_v16 }
 0x179   :  { %4272 = vmatmul.mubr.msk.bf16.gmra.mrb[80].mxu0 %vm7901_vm14, %v7846_v55  ;;  %vm7920_vm14 = vnez %v7859_v61 }
 0x17a   :  { %4274 = vmatprep.mubr.msk.bf16.mxu0 %vm7902_vm4, %v7846_v55  ;;  %vm7922_vm4 = vnez %v7921_v46 }
 0x181   :  { %4276 = vmatmul.mubr.msk.bf16.gmra.mrb[84].mxu0 %vm7903_vm15, %v7846_v55  ;;  %vm7923_vm15 = vnez %v7866_v6 }
 0x182   :  { %4278 = vmatprep.mubr.msk.bf16.mxu0 %vm7904_vm9, %v7846_v55  ;;  %vm7924_vm9 = vnez %v7868_v60 }
 0x187   :  { %v6361_v19 = vpop.f32.mrb[0].mxu1 }
 0x188   :  { %v1541_v23 = vpop.f32.mrb[1].mxu1 }
 0x189   :  { %4280 = vmatmul.mubr.msk.bf16.gmra.mrb[88].mxu0 %vm7905_vm13, %v7846_v55  ;;  %v6366_v36 = vpop.f32.mrb[2].mxu1  ;;  %vm7925_vm13 = vnez %v7870_v5 }
 0x18a   :  { %4282 = vmatprep.mubr.msk.bf16.mxu0 %vm7906_vm0, %v7846_v55  ;;  %v1544_v25 = vpop.f32.mrb[3].mxu1  ;;  %vm540_vm0 = vcmp.eq.s32.totalorder %v5206_v32, %v6314_v35 }
 0x18f   :  { %v6371_v42 = vpop.f32.mrb[4].mxu1 }
 0x190   :  { %v1549_v50 = vpop.f32.mrb[5].mxu1 }
 0x191   :  { %4284 = vmatmul.mubr.msk.bf16.gmra.mrb[92].mxu0 %vm7908_vm6, %v7846_v55  ;;  %v6376_v57 = vpop.f32.mrb[6].mxu1  ;;  %vm544_vm6 = vcmp.eq.s32.totalorder %v5206_v32, %v6312_v28 }
 0x192   :  { %4286 = vmatprep.mubr.msk.bf16.mxu0 %vm7910_vm3, %v7846_v55  ;;  %v1552_v62 = vpop.f32.mrb[7].mxu1  ;;  %vm543_vm3 = vcmp.eq.s32.totalorder %v5168_v22, %v6312_v28 }
 0x197   :  { %v6381_v63 = vpop.f32.mrb[8].mxu1 }
 0x198   :  { %v1557_v4 = vpop.f32.mrb[9].mxu1 }
 0x199   :  { %4288 = vmatmul.mubr.msk.bf16.gmra.mrb[96].mxu0 %vm7912_vm12, %v7846_v55  ;;  %v6386_v9 = vpop.f32.mrb[10].mxu1 }
 0x19a   :  { %4290 = vmatprep.mubr.msk.bf16.mxu0 %vm7913_vm2, %v7846_v55  ;;  %v1560_v10 = vpop.f32.mrb[11].mxu1 }
 0x19f   :  { %v6391_v39 = vpop.f32.mrb[12].mxu1 }
 0x1a0   :  { %v1565_v13 = vpop.f32.mrb[13].mxu1 }
 0x1a1   :  { %4292 = vmatmul.mubr.msk.bf16.gmra.mrb[100].mxu0 %vm7915_vm10, %v7846_v55  ;;  %v6396_v43 = vpop.f32.mrb[14].mxu1 }
 0x1a2   :  { %4294 = vmatprep.mubr.msk.bf16.mxu0 %vm7917_vm7, %v7846_v55  ;;  %v1568_v20 = vpop.f32.mrb[15].mxu1 }
 0x1a7   :  { %v6401_v24 = vpop.f32.mrb[16].mxu1 }
 0x1a8   :  { %v1573_v27 = vpop.f32.mrb[17].mxu1 }
 0x1a9   :  { %4296 = vmatmul.mubr.msk.bf16.gmra.mrb[104].mxu0 %vm7919_vm1, %v7846_v55  ;;  %v6406_v44 = vpop.f32.mrb[18].mxu1 }
 0x1aa   :  { %4298 = vmatprep.mubr.msk.bf16.mxu0 %vm7920_vm14, %v7846_v55  ;;  %v1576_v31 = vpop.f32.mrb[19].mxu1 }
 0x1ac   :  { %v1764_v33 = vpop.f32.mrb[0].mxu0 }
 0x1ad   :  { %v1766_v48 = vpop.f32.mrb[1].mxu0 }
 0x1ae   :  { %v1767_v34 = vpop.f32.mrb[2].mxu0 }
 0x1af   :  { %v2019_v37 = vpack.c.bf16 %v1767_v34, %v1764_v33  ;;  %v1769_v40 = vpop.f32.mrb[3].mxu0  ;;  %v6411_v41 = vpop.f32.mrb[20].mxu1 }
 0x1b0   :  { %v1581_v45 = vpop.f32.mrb[21].mxu1 }
 0x1b1   :  { %4300 = vmatmul.mubr.msk.bf16.gmra.mrb[108].mxu0 %vm7922_vm4, %v7846_v55  ;;  %4447 = vmatprep.mubr.bf16.mxu1 %v2019_v37  ;;  %v6416_v53 = vpop.f32.mrb[22].mxu1 }
 0x1b2   :  { %4302 = vmatprep.mubr.msk.bf16.mxu0 %vm7923_vm15, %v7846_v55  ;;  %v1584_v21 = vpop.f32.mrb[23].mxu1 }
 0x1b4   :  { %v1772_v47 = vpop.f32.mrb[4].mxu0 }
 0x1b5   :  { %v1774_v52 = vpop.f32.mrb[5].mxu0 }
 0x1b6   :  { %v1775_v49 = vpop.f32.mrb[6].mxu0 }
 0x1b7   :  { %v2020_v54 = vpack.c.bf16 %v1775_v49, %v1772_v47  ;;  %v1777_v56 = vpop.f32.mrb[7].mxu0  ;;  %v6421_v59 = vpop.f32.mrb[24].mxu1 }
 0x1b8   :  { %v1589_v2 = vpop.f32.mrb[25].mxu1 }
 0x1b9   :  { %4304 = vmatmul.mubr.msk.bf16.gmra.mrb[112].mxu0 %vm7924_vm9, %v7846_v55  ;;  %4448 = vmatmul.mubr.bf16.vlgmr.msra.gmra.mrb[96].mxu1 %v2020_v54  ;;  %v6426_v61 = vpop.f32.mrb[26].mxu1 }
 0x1ba   :  { %4306 = vmatprep.mubr.msk.bf16.mxu0 %vm7925_vm13, %v7846_v55  ;;  %v1592_v0 = vpop.f32.mrb[27].mxu1 }
 0x1bc   :  { %v1780_v26 = vpop.f32.mrb[8].mxu0 }
 0x1bd   :  { %v1782_v3 = vpop.f32.mrb[9].mxu0 }
 0x1be   :  { %v1783_v6 = vpop.f32.mrb[10].mxu0 }
 0x1bf   :  { %v2021_v11 = vpack.c.bf16 %v1783_v6, %v1780_v26  ;;  %v1785_v12 = vpop.f32.mrb[11].mxu0  ;;  %v6431_v17 = vpop.f32.mrb[28].mxu1 }
 0x1c0   :  { %v1597_v18 = vpop.f32.mrb[29].mxu1 }
 0x1c1   :  { %4308 = vmatmul.mubr.msk.bf16.gmra.mrb[116].mxu0 %vm6133_vm8, %v7846_v55  ;;  %4451 = vmatprep.mubr.bf16.mxu1 %v2021_v11  ;;  %v6436_v60 = vpop.f32.mrb[30].mxu1  ;;  %vm539_vm8 = vcmp.eq.s32.totalorder %v5168_v22, %v6314_v35 }
 0x1c2   :  { %4310 = vmatprep.mubr.msk.bf16.mxu0 %vm6140_vm5, %v7846_v55  ;;  %v1600_v5 = vpop.f32.mrb[31].mxu1  ;;  %vm4313_vm5 = vmpackc.low %vm544_vm6, %vm540_vm0 }
 0x1c4   :  { %v1788_v29 = vpop.f32.mrb[12].mxu0 }
 0x1c5   :  { %v1790_v30 = vpop.f32.mrb[13].mxu0 }
 0x1c6   :  { %v1791_v23 = vpop.f32.mrb[14].mxu0 }
 0x1c7   :  { %v2022_v25 = vpack.c.bf16 %v1791_v23, %v1788_v29  ;;  %v1793_v8 = vpop.f32.mrb[15].mxu0  ;;  %v6445_v50 = vpop.f32.mrb[32].mxu1 }
 0x1c8   :  { %v1605_v51 = vpop.f32.mrb[33].mxu1 }
 0x1c9   :  { %4312 = vmatmul.mubr.msk.bf16.gmra.mrb[120].mxu0 %vm6144_vm11, %v7846_v55  ;;  %4452 = vmatmul.mubr.bf16.gmra.mrb[100].mxu1 %v2022_v25  ;;  %v6450_v1 = vpop.f32.mrb[34].mxu1  ;;  %vm4315_vm11 = vmpackc.low %vm543_vm3, %vm539_vm8 }
 0x1ca   :  { %4314 = vmatprep.mubr.msk.bf16.mxu0 %vm4313_vm5, %v7846_v55  ;;  %v1608_v58 = vpop.f32.mrb[35].mxu1 }
 0x1cc   :  { %v1796_v62 = vpop.f32.mrb[16].mxu0 }
 0x1cd   :  { %v1798_v4 = vpop.f32.mrb[17].mxu0 }
 0x1ce   :  { %v1799_v32 = vpop.f32.mrb[18].mxu0 }
 0x1cf   :  { %v2023_v38 = vpack.c.bf16 %v1799_v32, %v1796_v62  ;;  %v1801_v10 = vpop.f32.mrb[19].mxu0  ;;  %v6457_v7 = vpop.f32.mrb[36].mxu1 }
 0x1d0   :  { %v1613_v13 = vpop.f32.mrb[37].mxu1 }
 0x1d1   :  { %4316 = vmatmul.mubr.msk.bf16.gmra.mrb[124].mxu0 %vm4315_vm11, %v7846_v55  ;;  %4455 = vmatprep.mubr.bf16.mxu1 %v2023_v38  ;;  %v6460_v14 = vpop.f32.mrb[38].mxu1 }
 0x1d2   :  { %v1616_v15 = vpop.f32.mrb[39].mxu1 }
 0x1d4   :  { %v1804_v20 = vpop.f32.mrb[20].mxu0 }
 0x1d5   :  { %v1806_v27 = vpop.f32.mrb[21].mxu0 }
 0x1d6   :  { %v1807_v16 = vpop.f32.mrb[22].mxu0 }
 0x1d7   :  { %v2024_v35 = vpack.c.bf16 %v1807_v16, %v1804_v20  ;;  %v1809_v31 = vpop.f32.mrb[23].mxu0  ;;  %v6462_v33 = vpop.f32.mrb[40].mxu1 }
 0x1d8   :  { %v1621_v22 = vpop.f32.mrb[41].mxu1 }
 0x1d9   :  { %4456 = vmatmul.mubr.bf16.gmra.mrb[104].mxu1 %v2024_v35  ;;  %v6464_v28 = vpop.f32.mrb[42].mxu1 }
 0x1da   :  { %v1624_v48 = vpop.f32.mrb[43].mxu1 }
 0x1dc   :  { %v1812_v34 = vpop.f32.mrb[24].mxu0 }
 0x1dd   :  { %v1814_v37 = vpop.f32.mrb[25].mxu0 }
 0x1de   :  { %v1815_v40 = vpop.f32.mrb[26].mxu0 }
 0x1df   :  { %v2025_v55 = vpack.c.bf16 %v1815_v40, %v1812_v34  ;;  %v1817_v45 = vpop.f32.mrb[27].mxu0  ;;  %v6466_v46 = vpop.f32.mrb[44].mxu1 }
 0x1e0   :  { %v1629_v21 = vpop.f32.mrb[45].mxu1 }
 0x1e1   :  { %4459 = vmatprep.mubr.bf16.mxu1 %v2025_v55  ;;  %v6468_v47 = vpop.f32.mrb[46].mxu1 }
 0x1e2   :  { %v1632_v52 = vpop.f32.mrb[47].mxu1 }
 0x1e4   :  { %v1820_v49 = vpop.f32.mrb[28].mxu0 }
 0x1e5   :  { %v1822_v54 = vpop.f32.mrb[29].mxu0 }
 0x1e6   :  { %v1823_v56 = vpop.f32.mrb[30].mxu0 }
 0x1e7   :  { %v2026_v2 = vpack.c.bf16 %v1823_v56, %v1820_v49  ;;  %v1825_v0 = vpop.f32.mrb[31].mxu0  ;;  %v6470_v26 = vpop.f32.mrb[48].mxu1 }
 0x1e8   :  { %v1637_v3 = vpop.f32.mrb[49].mxu1 }
 0x1e9   :  { %4460 = vmatmul.mubr.bf16.gmra.mrb[108].mxu1 %v2026_v2  ;;  %v6472_v6 = vpop.f32.mrb[50].mxu1 }
 0x1ea   :  { %v1640_v11 = vpop.f32.mrb[51].mxu1 }
 0x1ec   :  { %v1828_v12 = vpop.f32.mrb[32].mxu0 }
 0x1ed   :  { %v1829_v18 = vadd.f32 %v1828_v12, %v6361_v19  ;;  %v1830_v5 = vpop.f32.mrb[33].mxu0 }
 0x1ee   :  { %v1831_v29 = vpop.f32.mrb[34].mxu0 }
 0x1ef   :  { %v1832_v30 = vadd.f32 %v1831_v29, %v6366_v36  ;;  %v1833_v23 = vpop.f32.mrb[35].mxu0  ;;  %v6476_v25 = vpop.f32.mrb[52].mxu1 }
 0x1f0   :  { %v1645_v8 = vpop.f32.mrb[53].mxu1 }
 0x1f1   :  { %v2027_v51 = vpack.c.bf16 %v1832_v30, %v1829_v18  ;;  %v6478_v58 = vpop.f32.mrb[54].mxu1 }
 0x1f2   :  { %v1648_v62 = vpop.f32.mrb[55].mxu1 }
 0x1f3   :  { %4463 = vmatprep.mubr.bf16.mxu1 %v2027_v51 }
 0x1f4   :  { %v1836_v4 = vpop.f32.mrb[36].mxu0 }
 0x1f5   :  { %v1837_v32 = vadd.f32 %v1836_v4, %v6371_v42  ;;  %v1838_v38 = vpop.f32.mrb[37].mxu0 }
 0x1f6   :  { %v1839_v10 = vpop.f32.mrb[38].mxu0 }
 0x1f7   :  { %v1840_v19 = vadd.f32 %v1839_v10, %v6376_v57  ;;  %v1841_v13 = vpop.f32.mrb[39].mxu0  ;;  %v6482_v15 = vpop.f32.mrb[56].mxu1 }
 0x1f8   :  { %v1653_v36 = vpop.f32.mrb[57].mxu1 }
 0x1f9   :  { %v2028_v20 = vpack.c.bf16 %v1840_v19, %v1837_v32  ;;  %v6484_v27 = vpop.f32.mrb[58].mxu1 }
 0x1fa   :  { %v1656_v16 = vpop.f32.mrb[59].mxu1 }
 0x1fb   :  { %4464 = vmatmul.mubr.bf16.gmra.mrb[112].mxu1 %v2028_v20 }
 0x1fc   :  { %v1844_v35 = vpop.f32.mrb[40].mxu0 }
 0x1fd   :  { %v1845_v31 = vadd.f32 %v1844_v35, %v6381_v63  ;;  %v1846_v22 = vpop.f32.mrb[41].mxu0 }
 0x1fe   :  { %v1847_v48 = vpop.f32.mrb[42].mxu0 }
 0x1ff   :  { %v1848_v42 = vadd.f32 %v1847_v48, %v6386_v9  ;;  %v1849_v34 = vpop.f32.mrb[43].mxu0  ;;  %v6488_v37 = vpop.f32.mrb[60].mxu1 }
 0x200   :  { %v1661_v57 = vpop.f32.mrb[61].mxu1 }
 0x201   :  { %v2029_v40 = vpack.c.bf16 %v1848_v42, %v1845_v31  ;;  %v6490_v55 = vpop.f32.mrb[62].mxu1 }
 0x202   :  { %v1664_v45 = vpop.f32.mrb[63].mxu1 }
 0x203   :  { %4467 = vmatprep.mubr.bf16.mxu1 %v2029_v40 }
 0x204   :  { %v1852_v21 = vpop.f32.mrb[44].mxu0 }
 0x205   :  { %v1853_v52 = vadd.f32 %v1852_v21, %v6391_v39  ;;  %v1854_v49 = vpop.f32.mrb[45].mxu0 }
 0x206   :  { %v1855_v54 = vpop.f32.mrb[46].mxu0 }
 0x207   :  { %v1856_v63 = vadd.f32 %v1855_v54, %v6396_v43  ;;  %v1857_v56 = vpop.f32.mrb[47].mxu0  ;;  %v6494_v2 = vpop.f32.mrb[64].mxu1 }
 0x208   :  { %v1669_v9 = vpop.f32.mrb[65].mxu1 }
 0x209   :  { %v2030_v0 = vpack.c.bf16 %v1856_v63, %v1853_v52  ;;  %v6496_v3 = vpop.f32.mrb[66].mxu1 }
 0x20a   :  { %v1672_v11 = vpop.f32.mrb[67].mxu1 }
 0x20b   :  { %4468 = vmatmul.mubr.bf16.gmra.mrb[116].mxu1 %v2030_v0 }
 0x20c   :  { %v1860_v12 = vpop.f32.mrb[48].mxu0 }
 0x20d   :  { %v1861_v18 = vadd.f32 %v1860_v12, %v6401_v24  ;;  %v1862_v5 = vpop.f32.mrb[49].mxu0 }
 0x20e   :  { %v1863_v29 = vpop.f32.mrb[50].mxu0 }
 0x20f   :  { %v1864_v39 = vadd.f32 %v1863_v29, %v6406_v44  ;;  %v1865_v30 = vpop.f32.mrb[51].mxu0  ;;  %v6500_v23 = vpop.f32.mrb[68].mxu1 }
 0x210   :  { %v1677_v43 = vpop.f32.mrb[69].mxu1 }
 0x211   :  { %v2031_v8 = vpack.c.bf16 %v1864_v39, %v1861_v18  ;;  %v6502_v51 = vpop.f32.mrb[70].mxu1 }
 0x212   :  { %v1680_v62 = vpop.f32.mrb[71].mxu1 }
 0x213   :  { %4471 = vmatprep.mubr.bf16.mxu1 %v2031_v8 }
 0x214   :  { %v1868_v4 = vpop.f32.mrb[52].mxu0 }
 0x215   :  { %v1869_v32 = vadd.f32 %v1868_v4, %v6411_v41  ;;  %v1870_v38 = vpop.f32.mrb[53].mxu0 }
 0x216   :  { %v1871_v10 = vpop.f32.mrb[54].mxu0 }
 0x217   :  { %v1872_v24 = vadd.f32 %v1871_v10, %v6416_v53  ;;  %v1873_v19 = vpop.f32.mrb[55].mxu0  ;;  %v6506_v13 = vpop.f32.mrb[72].mxu1 }
 0x218   :  { %v1685_v44 = vpop.f32.mrb[73].mxu1 }
 0x219   :  { %v2032_v36 = vpack.c.bf16 %v1872_v24, %v1869_v32  ;;  %v6508_v20 = vpop.f32.mrb[74].mxu1 }
 0x21a   :  { %v1688_v16 = vpop.f32.mrb[75].mxu1 }
 0x21b   :  { %4472 = vmatmul.mubr.bf16.gmra.mrb[120].mxu1 %v2032_v36 }
 0x21c   :  { %v1876_v35 = vpop.f32.mrb[56].mxu0 }
 0x21d   :  { %v1877_v31 = vadd.f32 %v1876_v35, %v6421_v59  ;;  %v1878_v22 = vpop.f32.mrb[57].mxu0 }
 0x21e   :  { %v1879_v48 = vpop.f32.mrb[58].mxu0 }
 0x21f   :  { %v1880_v41 = vadd.f32 %v1879_v48, %v6426_v61  ;;  %v1881_v42 = vpop.f32.mrb[59].mxu0  ;;  %v6512_v34 = vpop.f32.mrb[76].mxu1 }
 0x220   :  { %v1693_v53 = vpop.f32.mrb[77].mxu1 }
 0x221   :  { %v2033_v57 = vpack.c.bf16 %v1880_v41, %v1877_v31  ;;  %v6514_v40 = vpop.f32.mrb[78].mxu1 }
 0x222   :  { %v1696_v45 = vpop.f32.mrb[79].mxu1 }
 0x223   :  { %4475 = vmatprep.mubr.bf16.mxu1 %v2033_v57 }
 0x224   :  { %v1884_v21 = vpop.f32.mrb[60].mxu0 }
 0x225   :  { %v1885_v52 = vadd.f32 %v1884_v21, %v6431_v17  ;;  %v1886_v49 = vpop.f32.mrb[61].mxu0 }
 0x226   :  { %v1887_v54 = vpop.f32.mrb[62].mxu0 }
 0x227   :  { %v1888_v59 = vadd.f32 %v1887_v54, %v6436_v60  ;;  %v1889_v63 = vpop.f32.mrb[63].mxu0  ;;  %v6518_v56 = vpop.f32.mrb[80].mxu1 }
 0x228   :  { %v1701_v61 = vpop.f32.mrb[81].mxu1 }
 0x229   :  { %v2034_v9 = vpack.c.bf16 %v1888_v59, %v1885_v52  ;;  %v6520_v0 = vpop.f32.mrb[82].mxu1 }
 0x22a   :  { %v1704_v11 = vpop.f32.mrb[83].mxu1 }
 0x22b   :  { %4476 = vmatmul.mubr.bf16.gmra.mrb[124].mxu1 %v2034_v9 }
 0x22c   :  { %v1892_v12 = vpop.f32.mrb[64].mxu0 }
 0x22d   :  { %v1893_v18 = vadd.f32 %v1892_v12, %v6445_v50  ;;  %v1894_v5 = vpop.f32.mrb[65].mxu0 }
 0x22e   :  { %v1895_v29 = vpop.f32.mrb[66].mxu0 }
 0x22f   :  { %v1896_v17 = vadd.f32 %v1895_v29, %v6450_v1  ;;  %v1897_v39 = vpop.f32.mrb[67].mxu0  ;;  %v6524_v30 = vpop.f32.mrb[84].mxu1 }
 0x230   :  { %v1709_v60 = vpop.f32.mrb[85].mxu1 }
 0x231   :  { %v2035_v43 = vpack.c.bf16 %v1896_v17, %v1893_v18  ;;  %v6526_v8 = vpop.f32.mrb[86].mxu1 }
 0x232   :  { %v1712_v62 = vpop.f32.mrb[87].mxu1 }
 0x233   :  { %4479 = vmatprep.mubr.bf16.mxu1 %v2035_v43 }
 0x234   :  { %v1900_v4 = vpop.f32.mrb[68].mxu0 }
 0x235   :  { %v1901_v32 = vadd.f32 %v1900_v4, %v6457_v7  ;;  %v1902_v38 = vpop.f32.mrb[69].mxu0 }
 0x236   :  { %v1903_v10 = vpop.f32.mrb[70].mxu0 }
 0x237   :  { %v1904_v50 = vadd.f32 %v1903_v10, %v6460_v14  ;;  %v1905_v24 = vpop.f32.mrb[71].mxu0  ;;  %v6530_v19 = vpop.f32.mrb[88].mxu1 }
 0x238   :  { %v1717_v1 = vpop.f32.mrb[89].mxu1 }
 0x239   :  { %v2036_v44 = vpack.c.bf16 %v1904_v50, %v1901_v32  ;;  %v6532_v36 = vpop.f32.mrb[90].mxu1 }
 0x23a   :  { %v1720_v16 = vpop.f32.mrb[91].mxu1 }
 0x23b   :  { %4480 = vmatmul.mubr.bf16.gmra.mrb[128].mxu1 %v2036_v44 }
 0x23c   :  { %v1908_v35 = vpop.f32.mrb[72].mxu0 }
 0x23d   :  { %v1909_v31 = vadd.f32 %v1908_v35, %v6462_v33  ;;  %v1910_v22 = vpop.f32.mrb[73].mxu0 }
 0x23e   :  { %v1911_v48 = vpop.f32.mrb[74].mxu0 }
 0x23f   :  { %v1912_v7 = vadd.f32 %v1911_v48, %v6464_v28  ;;  %v1913_v41 = vpop.f32.mrb[75].mxu0  ;;  %v6536_v42 = vpop.f32.mrb[92].mxu1 }
 0x240   :  { %v1725_v14 = vpop.f32.mrb[93].mxu1 }
 0x241   :  { %v2037_v53 = vpack.c.bf16 %v1912_v7, %v1909_v31  ;;  %v6538_v57 = vpop.f32.mrb[94].mxu1 }
 0x242   :  { %v1728_v45 = vpop.f32.mrb[95].mxu1 }
 0x243   :  { %4483 = vmatprep.mubr.bf16.mxu1 %v2037_v53 }
 0x244   :  { %v1916_v21 = vpop.f32.mrb[76].mxu0 }
 0x245   :  { %v1917_v52 = vadd.f32 %v1916_v21, %v6466_v46  ;;  %v1918_v49 = vpop.f32.mrb[77].mxu0 }
 0x246   :  { %v1919_v54 = vpop.f32.mrb[78].mxu0 }
 0x247   :  { %v1920_v33 = vadd.f32 %v1919_v54, %v6468_v47  ;;  %v1921_v59 = vpop.f32.mrb[79].mxu0 }
 0x249   :  { %v2038_v63 = vpack.c.bf16 %v1920_v33, %v1917_v52  ;;  %v7926_v52 = vlaneseq }
 0x24b   :  { %4484 = vmatmul.mubr.bf16.gmra.mrb[132].mxu1 %v2038_v63  ;;  %v6555_v49 = vshrl.u32 %v7926_v52, 7 }
 0x24c   :  { %v1924_v28 = vpop.f32.mrb[80].mxu0 }
 0x24d   :  { %v1925_v61 = vadd.f32 %v1924_v28, %v6470_v26  ;;  %v1926_v9 = vpop.f32.mrb[81].mxu0  ;;  %v2989_v59 = vadd.s32 8, %v6555_v49  ;;  %v6560_v28 = vstv %s7928_s3 }
 0x24e   :  { %v1927_v11 = vpop.f32.mrb[82].mxu0  ;;  %vm3317_vm12 = vcmp.lt.s32.totalorder %v6555_v49, %v6560_v28 }
 0x24f   :  { %v1928_v12 = vadd.f32 %v1927_v11, %v6472_v6  ;;  %v1929_v18 = vpop.f32.mrb[83].mxu0  ;;  %vm3318_vm2 = vcmp.lt.s32.totalorder %v2989_v59, %v6560_v28 }
 0x251   :  { %v2039_v5 = vpack.c.bf16 %v1928_v12, %v1925_v61  ;;  %v2990_v61 = vadd.s32 16, %v6555_v49  ;;  %v4847_v12 = vmov 0.0  }
 0x252   :  { %v6568_v18 = vsel %vm3317_vm12, 1.0, %v4847_v12 }
 0x253   :  { %4487 = vmatprep.mubr.bf16.mxu1 %v2039_v5  ;;  %vm3319_vm10 = vcmp.lt.s32.totalorder %v2990_v61, %v6560_v28  ;;  %v2995_v61 = vadd.s32 56, %v6555_v49 }
 0x254   :  { %v1932_v29 = vpop.f32.mrb[84].mxu0 }
 0x255   :  { %v1933_v46 = vadd.f32 %v1932_v29, %v6476_v25  ;;  %v1934_v17 = vpop.f32.mrb[85].mxu0  ;;  %v2991_v29 = vadd.s32 24, %v6555_v49  ;;  %vm3324_vm15 = vcmp.lt.s32.totalorder %v2995_v61, %v6560_v28 }
 0x256   :  { %v1935_v39 = vpop.f32.mrb[86].mxu0 }
 0x257   :  { %v1936_v47 = vadd.f32 %v1935_v39, %v6478_v58  ;;  %v1937_v60 = vpop.f32.mrb[87].mxu0  ;;  %vm3320_vm7 = vcmp.lt.s32.totalorder %v2991_v29, %v6560_v28 }
 0x258   :  { %v6584_v60 = vld [vmem:[%s7710_s4] ss:$0 sm:$0xff] }
 0x259   :  { %v2040_v43 = vpack.c.bf16 %v1936_v47, %v1933_v46  ;;  %v6579_v47 = vsel %vm3319_vm10, 1.0, %v4847_v12 }
 0x25b   :  { %4488 = vmatmul.mubr.bf16.gmra.mrb[136].mxu1 %v2040_v43 }
 0x25c   :  { %v1940_v62 = vpop.f32.mrb[88].mxu0 }
 0x25d   :  { %v1941_v26 = vadd.f32 %v1940_v62, %v6482_v15  ;;  %v1942_v4 = vpop.f32.mrb[89].mxu0  ;;  %v2992_v62 = vadd.s32 32, %v6555_v49 }
 0x25e   :  { %v1943_v32 = vpop.f32.mrb[90].mxu0 }
 0x25f   :  { %v1944_v6 = vadd.f32 %v1943_v32, %v6484_v27  ;;  %v1945_v38 = vpop.f32.mrb[91].mxu0  ;;  %vm3321_vm1 = vcmp.lt.s32.totalorder %v2992_v62, %v6560_v28 }
 0x261   :  { %v2041_v10 = vpack.c.bf16 %v1944_v6, %v1941_v26 }
 0x263   :  { %4491 = vmatprep.mubr.bf16.mxu1 %v2041_v10  ;;  %v6594_v10 = vsel %vm3320_vm7, 1.0, %v4847_v12 }
 0x264   :  { %v1948_v50 = vpop.f32.mrb[92].mxu0 }
 0x265   :  { %v1949_v25 = vadd.f32 %v1948_v50, %v6488_v37  ;;  %v1950_v24 = vpop.f32.mrb[93].mxu0 }
 0x266   :  { %v1951_v1 = vpop.f32.mrb[94].mxu0 }
 0x267   :  { %v1952_v58 = vadd.f32 %v1951_v1, %v6490_v55  ;;  %v1953_v44 = vpop.f32.mrb[95].mxu0 }
 0x269   :  { %v2042_v16 = vpack.c.bf16 %v1952_v58, %v1949_v25 }
 0x26b   :  { %4492 = vmatmul.mubr.bf16.gmra.mrb[140].mxu1 %v2042_v16 }
 0x26c   :  { %v1956_v35 = vpop.f32.mrb[96].mxu0 }
 0x26d   :  { %v1957_v15 = vadd.f32 %v1956_v35, %v6494_v2  ;;  %v1958_v31 = vpop.f32.mrb[97].mxu0 }
 0x26e   :  { %v1959_v22 = vpop.f32.mrb[98].mxu0 }
 0x26f   :  { %v1960_v27 = vadd.f32 %v1959_v22, %v6496_v3  ;;  %v1961_v48 = vpop.f32.mrb[99].mxu0 }
 0x271   :  { %v2043_v7 = vpack.c.bf16 %v1960_v27, %v1957_v15  ;;  %v2993_v15 = vadd.s32 40, %v6555_v49 }
 0x273   :  { %4495 = vmatprep.mubr.bf16.mxu1 %v2043_v7  ;;  %vm3322_vm14 = vcmp.lt.s32.totalorder %v2993_v15, %v6560_v28  ;;  %v6659_v15 = vsel %vm3324_vm15, 1.0, %v4847_v12 }
 0x274   :  { %v1964_v41 = vpop.f32.mrb[100].mxu0 }
 0x275   :  { %v1965_v37 = vadd.f32 %v1964_v41, %v6500_v23  ;;  %v1966_v14 = vpop.f32.mrb[101].mxu0 }
 0x276   :  { %v1967_v53 = vpop.f32.mrb[102].mxu0  ;;  %v6623_v14 = vsel %vm3321_vm1, 1.0, %v4847_v12 }
 0x277   :  { %v1968_v55 = vadd.f32 %v1967_v53, %v6502_v51  ;;  %v1969_v45 = vpop.f32.mrb[103].mxu0 }
 0x279   :  { %v2044_v21 = vpack.c.bf16 %v1968_v55, %v1965_v37 }
 0x27b   :  { %4496 = vmatmul.mubr.bf16.gmra.mrb[144].mxu1 %v2044_v21 }
 0x27c   :  { %v1972_v2 = vpop.f32.mrb[104].mxu0 }
 0x27d   :  { %v1973_v3 = vadd.f32 %v1972_v2, %v6506_v13  ;;  %v1974_v54 = vpop.f32.mrb[105].mxu0 }
 0x27e   :  { %v1975_v33 = vpop.f32.mrb[106].mxu0 }
 0x27f   :  { %v1976_v23 = vadd.f32 %v1975_v33, %v6508_v20  ;;  %v1977_v63 = vpop.f32.mrb[107].mxu0  ;;  %v6571_v20 = vsel %vm3318_vm2, 1.0, %v4847_v12 }
 0x280   :  { %v3610_v46 = vadd.f32 %v6571_v20, %v6568_v18 }
 0x281   :  { %v2045_v51 = vpack.c.bf16 %v1976_v23, %v1973_v3 }
 0x282   :  { %v3611_v43 = vadd.f32 %v6579_v47, %v3610_v46 }
 0x283   :  { %4499 = vmatprep.mubr.bf16.mxu1 %v2045_v51 }
 0x284   :  { %v1980_v9 = vpop.f32.mrb[108].mxu0  ;;  %v3612_v1 = vadd.f32 %v6594_v10, %v3611_v43 }
 0x285   :  { %v1981_v13 = vadd.f32 %v1980_v9, %v6512_v34  ;;  %v1982_v11 = vpop.f32.mrb[109].mxu0  ;;  %v6635_v9 = vsel %vm3322_vm14, 1.0, %v4847_v12 }
 0x286   :  { %v1983_v5 = vpop.f32.mrb[110].mxu0  ;;  %v3613_v45 = vadd.f32 %v6623_v14, %v3612_v1 }
 0x287   :  { %v1984_v17 = vadd.f32 %v1983_v5, %v6514_v40  ;;  %v1985_v39 = vpop.f32.mrb[111].mxu0 }
 0x289   :  { %v2046_v34 = vpack.c.bf16 %v1984_v17, %v1981_v13 }
 0x28b   :  { %4500 = vmatmul.mubr.bf16.gmra.mrb[148].mxu1 %v2046_v34 }
 0x28c   :  { %v1988_v26 = vpop.f32.mrb[112].mxu0  ;;  %v4449_v4 = vpop.f32.mrb[96].mxu1 }
 0x28d   :  { %v1989_v40 = vadd.f32 %v1988_v26, %v6518_v56  ;;  %v6591_v32 = vadd.f32 %v4449_v4, %v6584_v60  ;;  %v1990_v6 = vpop.f32.mrb[113].mxu0  ;;  %v2156_v38 = vpop.f32.mrb[97].mxu1  ;;  %v2998_v26 = vadd.s32 80, %v6555_v49 }
 0x28e   :  { %v6597_v50 = vadd.f32 %v6584_v60, %v2156_v38  ;;  %v1991_v25 = vpop.f32.mrb[114].mxu0  ;;  %v4450_v24 = vpop.f32.mrb[98].mxu1 }
 0x28f   :  { %v2413_v56 = vmul.f32 %v6591_v32, %v6591_v32  ;;  %v1992_v58 = vadd.f32 %v1991_v25, %v6520_v0  ;;  %v6605_v44 = vadd.f32 %v4450_v24, %v6584_v60  ;;  %v1993_v16 = vpop.f32.mrb[115].mxu0  ;;  %v2159_v35 = vpop.f32.mrb[99].mxu1  ;;  %v2994_v0 = vadd.s32 48, %v6555_v49 }
 0x290   :  { %v2411_v31 = vmul.f32 %v6597_v50, %v6597_v50  ;;  %v6611_v22 = vadd.f32 %v6584_v60, %v2159_v35  ;;  %vm3327_vm9 = vcmp.lt.s32.totalorder %v2998_v26, %v6560_v28 }
 0x291   :  { %v2477_v27 = vmul.f32 %v2413_v56, %v6591_v32  ;;  %v2047_v48 = vpack.c.bf16 %v1992_v58, %v1989_v40  ;;  %v2414_v7 = vmul.f32 %v6605_v44, %v6605_v44  ;;  %vm3323_vm4 = vcmp.lt.s32.totalorder %v2994_v0, %v6560_v28 }
 0x292   :  { %v2475_v41 = vmul.f32 %v2411_v31, %v6597_v50  ;;  %v2412_v37 = vmul.f32 %v6611_v22, %v6611_v22  ;;  %v6644_v43 = vsel %vm3323_vm4, 1.0, %v4847_v12  ;;  %v2997_v56 = vadd.s32 72, %v6555_v49 }
 0x293   :  { %v2541_v53 = vmul.f32 0.044715, %v2477_v27  ;;  %v2478_v55 = vmul.f32 %v2414_v7, %v6605_v44  ;;  %4503 = vmatprep.mubr.bf16.mxu1 %v2047_v48 }
 0x294   :  { %v2539_v21 = vmul.f32 0.044715, %v2475_v41  ;;  %v2476_v2 = vmul.f32 %v2412_v37, %v6611_v22  ;;  %v1996_v52 = vpop.f32.mrb[116].mxu0  ;;  %vm3326_vm0 = vcmp.lt.s32.totalorder %v2997_v56, %v6560_v28 }
 0x295   :  { %v2605_v3 = vadd.f32 %v2541_v53, %v6591_v32  ;;  %v2542_v54 = vmul.f32 0.044715, %v2478_v55  ;;  %v1997_v33 = vadd.f32 %v1996_v52, %v6524_v30  ;;  %v1998_v59 = vpop.f32.mrb[117].mxu0  ;;  %v3614_v30 = vadd.f32 %v6635_v9, %v3613_v45 }
 0x296   :  { %v2603_v23 = vadd.f32 %v2539_v21, %v6597_v50  ;;  %v2540_v63 = vmul.f32 0.044715, %v2476_v2  ;;  %v1999_v51 = vpop.f32.mrb[118].mxu0  ;;  %v6685_v2 = vsel %vm3327_vm9, 1.0, %v4847_v12 }
 0x297   :  { %v2669_v13 = vmul.f32 0.7978846, %v2605_v3  ;;  %v2606_v11 = vadd.f32 %v2542_v54, %v6605_v44  ;;  %v2000_v5 = vadd.f32 %v1999_v51, %v6526_v8  ;;  %v2001_v29 = vpop.f32.mrb[119].mxu0  ;;  %v2996_v8 = vadd.s32 64, %v6555_v49 }
 0x298   :  { %v2667_v46 = vmul.f32 0.7978846, %v2603_v23  ;;  %v2604_v17 = vadd.f32 %v2540_v63, %v6611_v22  ;;  %v3615_v4 = vadd.f32 %v6644_v43, %v3614_v30  ;;  %v2999_v23 = vadd.s32 88, %v6555_v49 }
 0x299   :  { %4670 = vtanh.f32 %v2669_v13  ;;  %v2670_v39 = vmul.f32 0.7978846, %v2606_v11  ;;  %v2048_v34 = vpack.c.bf16 %v2000_v5, %v1997_v33  ;;  %vm3325_vm13 = vcmp.lt.s32.totalorder %v2996_v8, %v6560_v28 }
 0x29a   :  { %4672 = vtanh.f32 %v2667_v46  ;;  %v2668_v62 = vmul.f32 0.7978846, %v2604_v17  ;;  %v3616_v0 = vadd.f32 %v6659_v15, %v3615_v4  ;;  %v6690_v52 = vsel %vm3325_vm13, 1.0, %v4847_v12 }
 0x29b   :  { %4674 = vtanh.f32 %v2670_v39  ;;  %4504 = vmatmul.mubr.bf16.gmra.mrb[152].mxu1 %v2048_v34  ;;  %v6699_v5 = vsel %vm3326_vm0, 1.0, %v4847_v12  ;;  %vm3328_vm6 = vcmp.lt.s32.totalorder %v2999_v23, %v6560_v28 }
 0x29c   :  { %4676 = vtanh.f32 %v2668_v62  ;;  %v2004_v40 = vpop.f32.mrb[120].mxu0  ;;  %v4453_v6 = vpop.f32.mrb[100].mxu1  ;;  %v3617_v59 = vadd.f32 %v6690_v52, %v3616_v0 }
 0x29d   :  { %v2005_v38 = vadd.f32 %v2004_v40, %v6530_v19  ;;  %v6652_v25 = vadd.f32 %v4453_v6, %v6584_v60  ;;  %v2006_v24 = vpop.f32.mrb[121].mxu0  ;;  %v2172_v1 = vpop.f32.mrb[101].mxu1 }
 0x29e   :  { %v6656_v58 = vadd.f32 %v6584_v60, %v2172_v1  ;;  %v2007_v16 = vpop.f32.mrb[122].mxu0  ;;  %v4454_v35 = vpop.f32.mrb[102].mxu1 }
 0x29f   :  { %v2417_v19 = vmul.f32 %v6652_v25, %v6652_v25  ;;  %v2008_v31 = vadd.f32 %v2007_v16, %v6532_v36  ;;  %v6667_v27 = vadd.f32 %v4454_v35, %v6584_v60  ;;  %v2009_v48 = vpop.f32.mrb[123].mxu0  ;;  %v2175_v7 = vpop.f32.mrb[103].mxu1 }
 0x2a0   :  { %v2415_v41 = vmul.f32 %v6656_v58, %v6656_v58  ;;  %v6673_v37 = vadd.f32 %v6584_v60, %v2175_v7 }
 0x2a1   :  { %v2481_v53 = vmul.f32 %v2417_v19, %v6652_v25  ;;  %v2049_v55 = vpack.c.bf16 %v2008_v31, %v2005_v38  ;;  %v2418_v45 = vmul.f32 %v6667_v27, %v6667_v27 }
 0x2a2   :  { %v2479_v36 = vmul.f32 %v2415_v41, %v6656_v58  ;;  %v2416_v21 = vmul.f32 %v6673_v37, %v6673_v37 }
 0x2a3   :  { %v4671_v3 = vpop.eup %4670  ;;  %v2545_v54 = vmul.f32 0.044715, %v2481_v53  ;;  %v2482_v33 = vmul.f32 %v2418_v45, %v6667_v27  ;;  %4507 = vmatprep.mubr.bf16.mxu1 %v2049_v55  ;;  %v3000_v53 = vadd.s32 96, %v6555_v49 }
 0x2a4   :  { %v4673_v63 = vpop.eup %4672  ;;  %v2797_v51 = vadd.f32 1.0, %v4671_v3  ;;  %v2543_v61 = vmul.f32 0.044715, %v2479_v36  ;;  %v2480_v13 = vmul.f32 %v2416_v21, %v6673_v37  ;;  %v2012_v11 = vpop.f32.mrb[124].mxu0 }
 0x2a5   :  { %v4675_v29 = vpop.eup %4674  ;;  %v2795_v30 = vadd.f32 1.0, %v4673_v63  ;;  %v2609_v46 = vadd.f32 %v2545_v54, %v6652_v25  ;;  %v2546_v17 = vmul.f32 0.044715, %v2482_v33  ;;  %v2013_v39 = vadd.f32 %v2012_v11, %v6536_v42  ;;  %v2014_v34 = vpop.f32.mrb[125].mxu0 }
 0x2a6   :  { %v4677_v62 = vpop.eup %4676  ;;  %v2861_v26 = vmul.f32 0.5, %v2797_v51  ;;  %v2798_v8 = vadd.f32 1.0, %v4675_v29  ;;  %v2607_v4 = vadd.f32 %v2543_v61, %v6656_v58  ;;  %v2544_v40 = vmul.f32 0.044715, %v2480_v13  ;;  %v2015_v6 = vpop.f32.mrb[126].mxu0 }
 0x2a7   :  { %v2859_v38 = vmul.f32 0.5, %v2795_v30  ;;  %v2796_v24 = vadd.f32 1.0, %v4677_v62  ;;  %v2673_v1 = vmul.f32 0.7978846, %v2609_v46  ;;  %v2610_v56 = vadd.f32 %v2546_v17, %v6667_v27  ;;  %v2017_v16 = vpop.f32.mrb[127].mxu0 }
 0x2a8   :  { %v2862_v35 = vmul.f32 0.5, %v2798_v8  ;;  %v2671_v19 = vmul.f32 0.7978846, %v2607_v4  ;;  %v2608_v31 = vadd.f32 %v2544_v40, %v6673_v37  ;;  %v3618_v42 = vadd.f32 %v6699_v5, %v3617_v59 }
 0x2a9   :  { %v2923_v48 = vmul.f32 %v2859_v38, %v6597_v50  ;;  %v2860_v7 = vmul.f32 0.5, %v2796_v24  ;;  %4678 = vtanh.f32 %v2673_v1  ;;  %v2674_v0 = vmul.f32 0.7978846, %v2610_v56 }
 0x2aa   :  { %4680 = vtanh.f32 %v2671_v19  ;;  %v2672_v41 = vmul.f32 0.7978846, %v2608_v31  ;;  %v2925_v55 = vmul.f32 %v2861_v26, %v6591_v32  ;;  %v2016_v36 = vadd.f32 %v2015_v6, %v6538_v57 }
 0x2ab   :  { %v2924_v45 = vmul.f32 %v2860_v7, %v6611_v22  ;;  %4682 = vtanh.f32 %v2674_v0  ;;  %v2926_v21 = vmul.f32 %v2862_v35, %v6605_v44  ;;  %v3619_v3 = vadd.f32 %v6685_v2, %v3618_v42 }
 0x2ac   :  { %4684 = vtanh.f32 %v2672_v41  ;;  %v4457_v50 = vpop.f32.mrb[104].mxu1  ;;  %v3509_v54 = vmul.f32 %v6568_v18, %v2923_v48  ;;  %v2050_v59 = vpack.c.bf16 %v2016_v36, %v2013_v39  ;;  %v6726_v57 = vsel %vm3328_vm6, 1.0, %v4847_v12 }
 0x2ad   :  { %v3510_v33 = vmul.f32 %v6571_v20, %v2924_v45  ;;  %v6718_v63 = vadd.f32 %v4457_v50, %v6584_v60  ;;  %v2188_v32 = vpop.f32.mrb[105].mxu1  ;;  %v3002_v44 = vadd.s32 112, %v6555_v49  ;;  %vm3329_vm5 = vcmp.lt.s32.totalorder %v3000_v53, %v6560_v28 }
 0x2ae   :  { %v6721_v22 = vadd.f32 %v6584_v60, %v2188_v32  ;;  %v4458_v51 = vpop.f32.mrb[106].mxu1  ;;  %v3511_v18 = vmul.f32 %v6579_v47, %v2925_v55  ;;  %4508 = vmatmul.mubr.bf16.gmra.mrb[156].mxu1 %v2050_v59  ;;  %v3620_v30 = vadd.f32 %v6726_v57, %v3619_v3  ;;  %v3001_v46 = vadd.s32 104, %v6555_v49 }
 0x2af   :  { %v3573_v20 = vadd.f32 %v3510_v33, %v3509_v54  ;;  %v2421_v61 = vmul.f32 %v6718_v63, %v6718_v63  ;;  %v6734_v13 = vadd.f32 %v4458_v51, %v6584_v60  ;;  %v2191_v11 = vpop.f32.mrb[107].mxu1  ;;  %v3512_v47 = vmul.f32 %v6594_v10, %v2926_v21 }
 0x2b0   :  { %v2419_v23 = vmul.f32 %v6721_v22, %v6721_v22  ;;  %v6739_v29 = vadd.f32 %v6584_v60, %v2191_v11  ;;  %vm3331_vm8 = vcmp.lt.s32.totalorder %v3002_v44, %v6560_v28  ;;  %v6755_v10 = vsel %vm3329_vm5, 1.0, %v4847_v12 }
 0x2b1   :  { %v3574_v17 = vadd.f32 %v3573_v20, %v3511_v18  ;;  %v2485_v39 = vmul.f32 %v2421_v61, %v6718_v63  ;;  %v2422_v34 = vmul.f32 %v6734_v13, %v6734_v13  ;;  %v3621_v16 = vadd.f32 %v6755_v10, %v3620_v30 }
 0x2b2   :  { %v2483_v62 = vmul.f32 %v2419_v23, %v6721_v22  ;;  %v2420_v26 = vmul.f32 %v6739_v29, %v6739_v29  ;;  %vm3330_vm3 = vcmp.lt.s32.totalorder %v3001_v46, %v6560_v28  ;;  %v3003_v20 = vadd.s32 120, %v6555_v49 }
 0x2b3   :  { %v4679_v8 = vpop.eup %4678  ;;  %v3575_v4 = vadd.f32 %v3574_v17, %v3512_v47  ;;  %v2549_v40 = vmul.f32 0.044715, %v2485_v39  ;;  %v2486_v6 = vmul.f32 %v2422_v34, %v6734_v13  ;;  %v6765_v33 = vsel %vm3330_vm3, 1.0, %v4847_v12 }
 0x2b4   :  { %v4681_v38 = vpop.eup %4680  ;;  %v2801_v24 = vadd.f32 1.0, %v4679_v8  ;;  %v2547_v1 = vmul.f32 0.044715, %v2483_v62  ;;  %v2484_v56 = vmul.f32 %v2420_v26, %v6739_v29  ;;  %v3622_v61 = vadd.f32 %v6765_v33, %v3621_v16 }
 0x2b5   :  { %v4683_v35 = vpop.eup %4682  ;;  %v2799_v19 = vadd.f32 1.0, %v4681_v38  ;;  %v2613_v31 = vadd.f32 %v2549_v40, %v6718_v63  ;;  %v2550_v42 = vmul.f32 0.044715, %v2486_v6  ;;  %v3004_v47 = vadd.s32 128, %v6555_v49 }
 0x2b6   :  { %v4685_v48 = vpop.eup %4684  ;;  %v2865_v7 = vmul.f32 0.5, %v2801_v24  ;;  %v2802_v0 = vadd.f32 1.0, %v4683_v35  ;;  %v2611_v41 = vadd.f32 %v2547_v1, %v6721_v22  ;;  %v2548_v53 = vmul.f32 0.044715, %v2484_v56 }
 0x2b7   :  { %v2863_v55 = vmul.f32 0.5, %v2799_v19  ;;  %v2800_v45 = vadd.f32 1.0, %v4685_v48  ;;  %v2677_v36 = vmul.f32 0.7978846, %v2613_v31  ;;  %v2614_v21 = vadd.f32 %v2550_v42, %v6734_v13 }
 0x2b8   :  { %v2866_v50 = vmul.f32 0.5, %v2802_v0  ;;  %v2675_v3 = vmul.f32 0.7978846, %v2611_v41  ;;  %v2612_v54 = vadd.f32 %v2548_v53, %v6739_v29  ;;  %v2929_v11 = vmul.f32 %v2865_v7, %v6652_v25 }
 0x2b9   :  { %v2927_v59 = vmul.f32 %v2863_v55, %v6656_v58  ;;  %v2864_v32 = vmul.f32 0.5, %v2800_v45  ;;  %4686 = vtanh.f32 %v2677_v36  ;;  %v2678_v51 = vmul.f32 0.7978846, %v2614_v21 }
 0x2ba   :  { %4688 = vtanh.f32 %v2675_v3  ;;  %v2676_v18 = vmul.f32 0.7978846, %v2612_v54  ;;  %v6776_v58 = vsel %vm3331_vm8, 1.0, %v4847_v12  ;;  %v2930_v39 = vmul.f32 %v2866_v50, %v6667_v27 }
 0x2bb   :  { %v3513_v23 = vmul.f32 %v6623_v14, %v2927_v59  ;;  %v2928_v30 = vmul.f32 %v2864_v32, %v6673_v37  ;;  %4690 = vtanh.f32 %v2678_v51  ;;  %vm3332_vm11 = vcmp.lt.s32.totalorder %v3003_v20, %v6560_v28 }
 0x2bc   :  { %4692 = vtanh.f32 %v2676_v18  ;;  %v4461_v46 = vpop.f32.mrb[108].mxu1  ;;  %v3623_v44 = vadd.f32 %v6776_v58, %v3622_v61  ;;  %v6790_v26 = vadd.s32 144, %v6555_v49  ;;  %v3515_v8 = vmul.f32 %v6644_v43, %v2929_v11 }
 0x2bd   :  { %v3576_v17 = vadd.f32 %v3575_v4, %v3513_v23  ;;  %v3514_v34 = vmul.f32 %v6635_v9, %v2928_v30  ;;  %v6782_v25 = vadd.f32 %v4461_v46, %v6584_v60  ;;  %v2204_v14 = vpop.f32.mrb[109].mxu1  ;;  %vm3333_vm12 = vcmp.lt.s32.totalorder %v3004_v47, %v6560_v28 }
 0x2be   :  { %v6785_v37 = vadd.f32 %v6584_v60, %v2204_v14  ;;  %v4462_v62 = vpop.f32.mrb[110].mxu1  ;;  %v3005_v24 = vadd.s32 136, %v6555_v49  ;;  %v3516_v43 = vmul.f32 %v6659_v15, %v2930_v39  ;;  %v6813_v19 = vsel %vm3332_vm11, 1.0, %v4847_v12 }
 0x2bf   :  { %v3577_v27 = vadd.f32 %v3576_v17, %v3514_v34  ;;  %v2425_v9 = vmul.f32 %v6782_v25, %v6782_v25  ;;  %v6796_v4 = vadd.f32 %v4462_v62, %v6584_v60  ;;  %v2207_v40 = vpop.f32.mrb[111].mxu1  ;;  %vm3335_vm2 = vcmp.lt.s32.totalorder %v6790_v26, %v6560_v28 }
 0x2c0   :  { %v2423_v6 = vmul.f32 %v6785_v37, %v6785_v37  ;;  %v6801_v38 = vadd.f32 %v6584_v60, %v2207_v40  ;;  %v6821_v0 = vsel %vm3333_vm12, 1.0, %v4847_v12  ;;  %v3624_v36 = vadd.f32 %v6813_v19, %v3623_v44 }
 0x2c1   :  { %v3578_v1 = vadd.f32 %v3577_v27, %v3515_v8  ;;  %v2489_v56 = vmul.f32 %v2425_v9, %v6782_v25  ;;  %v2426_v16 = vmul.f32 %v6796_v4, %v6796_v4  ;;  %vm3334_vm10 = vcmp.lt.s32.totalorder %v3005_v24, %v6560_v28 }
 0x2c2   :  { %v2487_v35 = vmul.f32 %v2423_v6, %v6785_v37  ;;  %v2424_v31 = vmul.f32 %v6801_v38, %v6801_v38  ;;  %v3625_v39 = vadd.f32 %v6821_v0, %v3624_v36  ;;  %v3007_v8 = vadd.s32 152, %v6555_v49 }
 0x2c3   :  { %v4687_v42 = vpop.eup %4686  ;;  %v3579_v48 = vadd.f32 %v3578_v1, %v3516_v43  ;;  %v2553_v7 = vmul.f32 0.044715, %v2489_v56  ;;  %v2490_v15 = vmul.f32 %v2426_v16, %v6796_v4  ;;  %v6836_v27 = vsel %vm3334_vm10, 1.0, %v4847_v12 }
 0x2c4   :  { %v4689_v41 = vpop.eup %4688  ;;  %v2805_v53 = vadd.f32 1.0, %v4687_v42  ;;  %v2551_v55 = vmul.f32 0.044715, %v2487_v35  ;;  %v2488_v45 = vmul.f32 %v2424_v31, %v6801_v38  ;;  %v6848_v24 = vsel %vm3335_vm2, 1.0, %v4847_v12 }
 0x2c5   :  { %v4691_v21 = vpop.eup %4690  ;;  %v2803_v50 = vadd.f32 1.0, %v4689_v41  ;;  %v2617_v3 = vadd.f32 %v2553_v7, %v6782_v25  ;;  %v2554_v54 = vmul.f32 0.044715, %v2490_v15  ;;  %vm3336_vm7 = vcmp.lt.s32.totalorder %v3007_v8, %v6560_v28 }
 0x2c6   :  { %v4693_v59 = vpop.eup %4692  ;;  %v2869_v32 = vmul.f32 0.5, %v2805_v53  ;;  %v2806_v51 = vadd.f32 1.0, %v4691_v21  ;;  %v2615_v18 = vadd.f32 %v2551_v55, %v6785_v37  ;;  %v2552_v20 = vmul.f32 0.044715, %v2488_v45 }
 0x2c7   :  { %v2867_v61 = vmul.f32 0.5, %v2803_v50  ;;  %v2804_v11 = vadd.f32 1.0, %v4693_v59  ;;  %v2681_v23 = vmul.f32 0.7978846, %v2617_v3  ;;  %v2618_v30 = vadd.f32 %v2554_v54, %v6796_v4 }
 0x2c8   :  { %v2870_v46 = vmul.f32 0.5, %v2806_v51  ;;  %v2679_v47 = vmul.f32 0.7978846, %v2615_v18  ;;  %v2616_v17 = vadd.f32 %v2552_v20, %v6801_v38  ;;  %v2933_v9 = vmul.f32 %v2869_v32, %v6718_v63 }
 0x2c9   :  { %v2931_v34 = vmul.f32 %v2867_v61, %v6721_v22  ;;  %v2868_v14 = vmul.f32 0.5, %v2804_v11  ;;  %4694 = vtanh.f32 %v2681_v23  ;;  %v2682_v62 = vmul.f32 0.7978846, %v2618_v30 }
 0x2ca   :  { %4696 = vtanh.f32 %v2679_v47  ;;  %v2680_v44 = vmul.f32 0.7978846, %v2616_v17  ;;  %v3626_v22 = vadd.f32 %v6836_v27, %v3625_v39  ;;  %v2934_v1 = vmul.f32 %v2870_v46, %v6734_v13 }
 0x2cb   :  { %v3517_v40 = vmul.f32 %v6690_v52, %v2931_v34  ;;  %v2932_v6 = vmul.f32 %v2868_v14, %v6739_v29  ;;  %4698 = vtanh.f32 %v2682_v62  ;;  %v3519_v52 = vmul.f32 %v6685_v2, %v2933_v9 }
 0x2cc   :  { %4700 = vtanh.f32 %v2680_v44  ;;  %v3627_v31 = vadd.f32 %v6848_v24, %v3626_v22  ;;  %v3008_v42 = vadd.s32 160, %v6555_v49  ;;  %v3520_v26 = vmul.f32 %v6726_v57, %v2934_v1 }
 0x2cd   :  { %v3580_v43 = vadd.f32 %v3579_v48, %v3517_v40  ;;  %v3518_v56 = vmul.f32 %v6699_v5, %v2932_v6  ;;  %v6869_v53 = vsel %vm3336_vm7, 1.0, %v4847_v12  ;;  %v6878_v50 = vadd.s32 176, %v6555_v49 }
 0x2ce   :  { %v4465_v16 = vpop.f32.mrb[112].mxu1  ;;  %vm3337_vm1 = vcmp.lt.s32.totalorder %v3008_v42, %v6560_v28  ;;  %v3628_v11 = vadd.f32 %v6869_v53, %v3627_v31  ;;  %v3009_v40 = vadd.s32 168, %v6555_v49 }
 0x2cf   :  { %v3581_v63 = vadd.f32 %v3580_v43, %v3518_v56  ;;  %v6852_v29 = vadd.f32 %v4465_v16, %v6584_v60  ;;  %v2220_v35 = vpop.f32.mrb[113].mxu1  ;;  %vm3339_vm4 = vcmp.lt.s32.totalorder %v6878_v50, %v6560_v28 }
 0x2d0   :  { %v6856_v13 = vadd.f32 %v6584_v60, %v2220_v35  ;;  %v4466_v5 = vpop.f32.mrb[114].mxu1  ;;  %vm3338_vm14 = vcmp.lt.s32.totalorder %v3009_v40, %v6560_v28 }
 0x2d1   :  { %v3582_v48 = vadd.f32 %v3581_v63, %v3519_v52  ;;  %v2429_v2 = vmul.f32 %v6852_v29, %v6852_v29  ;;  %v6864_v7 = vadd.f32 %v4466_v5, %v6584_v60  ;;  %v2223_v15 = vpop.f32.mrb[115].mxu1  ;;  %v6897_v63 = vsel %vm3337_vm1, 1.0, %v4847_v12 }
 0x2d2   :  { %v2427_v41 = vmul.f32 %v6856_v13, %v6856_v13  ;;  %v6872_v55 = vadd.f32 %v6584_v60, %v2223_v15 }
 0x2d3   :  { %v4695_v45 = vpop.eup %4694  ;;  %v3583_v36 = vadd.f32 %v3582_v48, %v3520_v26  ;;  %v2493_v57 = vmul.f32 %v2429_v2, %v6852_v29  ;;  %v2430_v21 = vmul.f32 %v6864_v7, %v6864_v7  ;;  %v3629_v26 = vadd.f32 %v6897_v63, %v3628_v11 }
 0x2d4   :  { %v4697_v3 = vpop.eup %4696  ;;  %v2809_v54 = vadd.f32 1.0, %v4695_v45  ;;  %v2491_v59 = vmul.f32 %v2427_v41, %v6856_v13  ;;  %v2428_v32 = vmul.f32 %v6872_v55, %v6872_v55 }
 0x2d5   :  { %v4699_v51 = vpop.eup %4698  ;;  %v2807_v18 = vadd.f32 1.0, %v4697_v3  ;;  %v2557_v20 = vmul.f32 0.044715, %v2493_v57  ;;  %v2494_v61 = vmul.f32 %v2430_v21, %v6864_v7  ;;  %v6911_v57 = vsel %vm3338_vm14, 1.0, %v4847_v12 }
 0x2d6   :  { %v4701_v23 = vpop.eup %4700  ;;  %v2873_v30 = vmul.f32 0.5, %v2809_v54  ;;  %v2810_v46 = vadd.f32 1.0, %v4699_v51  ;;  %v2555_v47 = vmul.f32 0.044715, %v2491_v59  ;;  %v2492_v17 = vmul.f32 %v2428_v32, %v6872_v55 }
 0x2d7   :  { %v2871_v39 = vmul.f32 0.5, %v2807_v18  ;;  %v2808_v34 = vadd.f32 1.0, %v4701_v23  ;;  %v2621_v14 = vadd.f32 %v2557_v20, %v6852_v29  ;;  %v2558_v62 = vmul.f32 0.044715, %v2494_v61 }
 0x2d8   :  { %v2874_v44 = vmul.f32 0.5, %v2810_v46  ;;  %v2619_v8 = vadd.f32 %v2555_v47, %v6856_v13  ;;  %v2556_v9 = vmul.f32 0.044715, %v2492_v17  ;;  %v2937_v56 = vmul.f32 %v2873_v30, %v6782_v25 }
 0x2d9   :  { %v2935_v6 = vmul.f32 %v2871_v39, %v6785_v37  ;;  %v2872_v22 = vmul.f32 0.5, %v2808_v34  ;;  %v2685_v43 = vmul.f32 0.7978846, %v2621_v14  ;;  %v2622_v1 = vadd.f32 %v2558_v62, %v6864_v7 }
 0x2da   :  { %v2683_v16 = vmul.f32 0.7978846, %v2619_v8  ;;  %v2620_v52 = vadd.f32 %v2556_v9, %v6872_v55  ;;  %v2938_v48 = vmul.f32 %v2874_v44, %v6796_v4  ;;  %v3012_v21 = vadd.s32 192, %v6555_v49 }
 0x2db   :  { %v3521_v35 = vmul.f32 %v6755_v10, %v2935_v6  ;;  %v2936_v5 = vmul.f32 %v2872_v22, %v6801_v38  ;;  %4702 = vtanh.f32 %v2685_v43  ;;  %v2686_v37 = vmul.f32 0.7978846, %v2622_v1 }
 0x2dc   :  { %4704 = vtanh.f32 %v2683_v16  ;;  %v2684_v31 = vmul.f32 0.7978846, %v2620_v52  ;;  %v3011_v10 = vadd.s32 184, %v6555_v49  ;;  %v3523_v38 = vmul.f32 %v6776_v58, %v2937_v56 }
 0x2dd   :  { %v3584_v25 = vadd.f32 %v3583_v36, %v3521_v35  ;;  %v3522_v2 = vmul.f32 %v6765_v33, %v2936_v5  ;;  %4706 = vtanh.f32 %v2686_v37  ;;  %v3630_v36 = vadd.f32 %v6911_v57, %v3629_v26 }
 0x2de   :  { %4708 = vtanh.f32 %v2684_v31  ;;  %v4469_v42 = vpop.f32.mrb[116].mxu1  ;;  %v3524_v58 = vmul.f32 %v6813_v19, %v2938_v48  ;;  %vm3340_vm15 = vcmp.lt.s32.totalorder %v3011_v10, %v6560_v28  ;;  %v3014_v20 = vadd.s32 208, %v6555_v49 }
 0x2df   :  { %v3585_v15 = vadd.f32 %v3584_v25, %v3522_v2  ;;  %v6908_v41 = vadd.f32 %v4469_v42, %v6584_v60  ;;  %v2236_v45 = vpop.f32.mrb[117].mxu1  ;;  %v6940_v23 = vsel %vm3339_vm4, 1.0, %v4847_v12  ;;  %vm3341_vm9 = vcmp.lt.s32.totalorder %v3012_v21, %v6560_v28 }
 0x2e0   :  { %v6916_v33 = vadd.f32 %v6584_v60, %v2236_v45  ;;  %v4470_v4 = vpop.f32.mrb[118].mxu1  ;;  %v6948_v34 = vsel %vm3340_vm15, 1.0, %v4847_v12  ;;  %v3631_v14 = vadd.f32 %v6940_v23, %v3630_v36  ;;  %vm3343_vm13 = vcmp.lt.s32.totalorder %v3014_v20, %v6560_v28 }
 0x2e1   :  { %v3586_v3 = vadd.f32 %v3585_v15, %v3523_v38  ;;  %v2433_v54 = vmul.f32 %v6908_v41, %v6908_v41  ;;  %v6924_v59 = vadd.f32 %v4470_v4, %v6584_v60  ;;  %v2239_v32 = vpop.f32.mrb[119].mxu1  ;;  %v6955_v43 = vsel %vm3341_vm9, 1.0, %v4847_v12 }
 0x2e2   :  { %v2431_v51 = vmul.f32 %v6916_v33, %v6916_v33  ;;  %v6930_v18 = vadd.f32 %v6584_v60, %v2239_v32  ;;  %v3632_v42 = vadd.f32 %v6948_v34, %v3631_v14  ;;  %v3015_v4 = vadd.s32 216, %v6555_v49 }
 0x2e3   :  { %v3587_v61 = vadd.f32 %v3586_v3, %v3524_v58  ;;  %v2497_v19 = vmul.f32 %v2433_v54, %v6908_v41  ;;  %v2434_v11 = vmul.f32 %v6924_v59, %v6924_v59  ;;  %v3013_v36 = vadd.s32 200, %v6555_v49 }
 0x2e4   :  { %v2495_v30 = vmul.f32 %v2431_v51, %v6916_v33  ;;  %v2432_v46 = vmul.f32 %v6930_v18, %v6930_v18  ;;  %v6972_v54 = vsel %vm3343_vm13, 1.0, %v4847_v12  ;;  %v6975_v32 = vadd.f32 %v6955_v43, %v3632_v42 }
 0x2e5   :  { %v4703_v47 = vpop.eup %4702  ;;  %v2561_v17 = vmul.f32 0.044715, %v2497_v19  ;;  %v2498_v39 = vmul.f32 %v2434_v11, %v6924_v59  ;;  %v3016_v51 = vadd.s32 224, %v6555_v49  ;;  %vm3344_vm0 = vcmp.lt.s32.totalorder %v3015_v4, %v6560_v28 }
 0x2e6   :  { %v4705_v62 = vpop.eup %4704  ;;  %v2813_v50 = vadd.f32 1.0, %v4703_v47  ;;  %v2559_v44 = vmul.f32 0.044715, %v2495_v30  ;;  %v2496_v8 = vmul.f32 %v2432_v46, %v6930_v18  ;;  %vm3342_vm6 = vcmp.lt.s32.totalorder %v3013_v36, %v6560_v28 }
 0x2e7   :  { %v4707_v9 = vpop.eup %4706  ;;  %v2811_v40 = vadd.f32 1.0, %v4705_v62  ;;  %v2625_v6 = vadd.f32 %v2561_v17, %v6908_v41  ;;  %v2562_v22 = vmul.f32 0.044715, %v2498_v39  ;;  %v3018_v46 = vadd.s32 240, %v6555_v49 }
 0x2e8   :  { %v4709_v1 = vpop.eup %4708  ;;  %v2877_v56 = vmul.f32 0.5, %v2813_v50  ;;  %v2814_v16 = vadd.f32 1.0, %v4707_v9  ;;  %v2623_v52 = vadd.f32 %v2559_v44, %v6916_v33  ;;  %v2560_v35 = vmul.f32 0.044715, %v2496_v8 }
 0x2e9   :  { %v2875_v5 = vmul.f32 0.5, %v2811_v40  ;;  %v2812_v37 = vadd.f32 1.0, %v4709_v1  ;;  %v2689_v31 = vmul.f32 0.7978846, %v2625_v6  ;;  %v2626_v26 = vadd.f32 %v2562_v22, %v6924_v59 }
 0x2ea   :  { %v2878_v25 = vmul.f32 0.5, %v2814_v16  ;;  %v2687_v48 = vmul.f32 0.7978846, %v2623_v52  ;;  %v2624_v2 = vadd.f32 %v2560_v35, %v6930_v18  ;;  %v2941_v21 = vmul.f32 %v2877_v56, %v6852_v29 }
 0x2eb   :  { %v2939_v10 = vmul.f32 %v2875_v5, %v6856_v13  ;;  %v2876_v38 = vmul.f32 0.5, %v2812_v37  ;;  %4710 = vtanh.f32 %v2689_v31  ;;  %v2690_v15 = vmul.f32 0.7978846, %v2626_v26 }
 0x2ec   :  { %4712 = vtanh.f32 %v2687_v48  ;;  %v2688_v45 = vmul.f32 0.7978846, %v2624_v2  ;;  %v2942_v29 = vmul.f32 %v2878_v25, %v6864_v7  ;;  %vm3345_vm5 = vcmp.lt.s32.totalorder %v3016_v51, %v6560_v28 }
 0x2ed   :  { %v3525_v58 = vmul.f32 %v6821_v0, %v2939_v10  ;;  %v2940_v3 = vmul.f32 %v2876_v38, %v6872_v55  ;;  %4714 = vtanh.f32 %v2690_v15  ;;  %v3017_v62 = vadd.s32 232, %v6555_v49 }
 0x2ee   :  { %4716 = vtanh.f32 %v2688_v45  ;;  %v4473_v13 = vpop.f32.mrb[120].mxu1  ;;  %v7011_v40 = vsel %vm3344_vm0, 1.0, %v4847_v12  ;;  %v7022_v52 = vsel %vm3345_vm5, 1.0, %v4847_v12  ;;  %vm3347_vm8 = vcmp.lt.s32.totalorder %v3018_v46, %v6560_v28 }
 0x2ef   :  { %v3588_v19 = vadd.f32 %v3587_v61, %v3525_v58  ;;  %v3526_v0 = vmul.f32 %v6836_v27, %v2940_v3  ;;  %v6981_v55 = vadd.f32 %v4473_v13, %v6584_v60  ;;  %v2252_v11 = vpop.f32.mrb[121].mxu1  ;;  %v3527_v61 = vmul.f32 %v6848_v24, %v2941_v21 }
 0x2f0   :  { %v6984_v30 = vadd.f32 %v6584_v60, %v2252_v11  ;;  %v4474_v20 = vpop.f32.mrb[122].mxu1  ;;  %v3528_v24 = vmul.f32 %v6869_v53, %v2942_v29  ;;  %v7018_v53 = vsel %vm3342_vm6, 1.0, %v4847_v12  ;;  %vm3346_vm3 = vcmp.lt.s32.totalorder %v3017_v62, %v6560_v28 }
 0x2f1   :  { %v3589_v7 = vadd.f32 %v3588_v19, %v3526_v0  ;;  %v2437_v27 = vmul.f32 %v6981_v55, %v6981_v55  ;;  %v6993_v47 = vadd.f32 %v4474_v20, %v6584_v60  ;;  %v2255_v17 = vpop.f32.mrb[123].mxu1  ;;  %v3019_v19 = vadd.s32 248, %v6555_v49 }
 0x2f2   :  { %v2435_v39 = vmul.f32 %v6984_v30, %v6984_v30  ;;  %v6998_v14 = vadd.f32 %v6584_v60, %v2255_v17  ;;  %v3020_v46 = vadd.s32 256, %v6555_v49 }
 0x2f3   :  { %v3590_v50 = vadd.f32 %v3589_v7, %v3527_v61  ;;  %v2501_v44 = vmul.f32 %v2437_v27, %v6981_v55  ;;  %v2438_v8 = vmul.f32 %v6993_v47, %v6993_v47  ;;  %v7042_v61 = vsel %vm3347_vm8, 1.0, %v4847_v12 }
 0x2f4   :  { %v2499_v9 = vmul.f32 %v2435_v39, %v6984_v30  ;;  %v2436_v6 = vmul.f32 %v6998_v14, %v6998_v14  ;;  %v7047_v7 = vsel %vm3346_vm3, 1.0, %v4847_v12  ;;  %vm3348_vm11 = vcmp.lt.s32.totalorder %v3019_v19, %v6560_v28 }
 0x2f5   :  { %v4711_v22 = vpop.eup %4710  ;;  %v3591_v1 = vadd.f32 %v3590_v50, %v3528_v24  ;;  %v2565_v56 = vmul.f32 0.044715, %v2501_v44  ;;  %v2502_v16 = vmul.f32 %v2438_v8, %v6993_v47  ;;  %v7053_v24 = vstv %s3251_s9 }
 0x2f6   :  { %v4713_v35 = vpop.eup %4712  ;;  %v2817_v5 = vadd.f32 1.0, %v4711_v22  ;;  %v2563_v37 = vmul.f32 0.044715, %v2499_v9  ;;  %v2500_v31 = vmul.f32 %v2436_v6, %v6998_v14  ;;  %v3022_v6 = vadd.s32 272, %v6555_v49 }
 0x2f7   :  { %v4715_v26 = vpop.eup %4714  ;;  %v2815_v25 = vadd.f32 1.0, %v4713_v35  ;;  %v2629_v48 = vadd.f32 %v2565_v56, %v6981_v55  ;;  %v2566_v2 = vmul.f32 0.044715, %v2502_v16  ;;  %v3023_v22 = vadd.s32 280, %v6555_v49 }
 0x2f8   :  { %v4717_v42 = vpop.eup %4716  ;;  %v2881_v10 = vmul.f32 0.5, %v2817_v5  ;;  %v2818_v38 = vadd.f32 1.0, %v4715_v26  ;;  %v2627_v15 = vadd.f32 %v2563_v37, %v6984_v30  ;;  %v2564_v45 = vmul.f32 0.044715, %v2500_v31 }
 0x2f9   :  { %v2879_v4 = vmul.f32 0.5, %v2815_v25  ;;  %v2816_v36 = vadd.f32 1.0, %v4717_v42  ;;  %v2693_v21 = vmul.f32 0.7978846, %v2629_v48  ;;  %v2630_v58 = vadd.f32 %v2566_v2, %v6993_v47 }
 0x2fa   :  { %v2882_v3 = vmul.f32 0.5, %v2818_v38  ;;  %v2691_v13 = vmul.f32 0.7978846, %v2627_v15  ;;  %v2628_v51 = vadd.f32 %v2564_v45, %v6998_v14  ;;  %v2945_v27 = vmul.f32 %v2881_v10, %v6908_v41 }
 0x2fb   :  { %v2943_v29 = vmul.f32 %v2879_v4, %v6916_v33  ;;  %v2880_v0 = vmul.f32 0.5, %v2816_v36  ;;  %4718 = vtanh.f32 %v2693_v21  ;;  %v2694_v11 = vmul.f32 0.7978846, %v2630_v58 }
 0x2fc   :  { %4720 = vtanh.f32 %v2691_v13  ;;  %v2692_v20 = vmul.f32 0.7978846, %v2628_v51  ;;  %v2946_v62 = vmul.f32 %v2882_v3, %v6924_v59  ;;  %v3021_v59 = vadd.s32 264, %v6555_v49 }
 0x2fd   :  { %v3529_v33 = vmul.f32 %v6897_v63, %v2943_v29  ;;  %v2944_v17 = vmul.f32 %v2880_v0, %v6930_v18  ;;  %4722 = vtanh.f32 %v2694_v11  ;;  %v7064_v18 = vld [vmem:[%s7710_s4] ss:$0 sm:$0xff]  ;;  %v7083_v5 = vsel %vm3348_vm11, 1.0, %v4847_v12 }
 0x2fe   :  { %4724 = vtanh.f32 %v2692_v20  ;;  %v4477_v39 = vpop.f32.mrb[124].mxu1  ;;  %vm3349_vm12 = vcmp.lt.s32.totalorder %v3020_v46, %v7053_v24  ;;  %vm3351_vm2 = vcmp.lt.s32.totalorder %v3022_v6, %v7053_v24  ;;  %vm3350_vm10 = vcmp.lt.s32.totalorder %v3021_v59, %v7053_v24 }
 0x2ff   :  { %v3592_v50 = vadd.f32 %v3591_v1, %v3529_v33  ;;  %v3530_v44 = vmul.f32 %v6911_v57, %v2944_v17  ;;  %v7059_v41 = vadd.f32 %v4477_v39, %v6584_v60  ;;  %v2268_v63 = vpop.f32.mrb[125].mxu1  ;;  %v3531_v57 = vmul.f32 %v6940_v23, %v2945_v27 }
 0x300   :  { %v7067_v8 = vadd.f32 %v7064_v18, %v2268_v63  ;;  %v4478_v9 = vpop.f32.mrb[126].mxu1  ;;  %v3532_v23 = vmul.f32 %v6948_v34, %v2946_v62  ;;  %vm3352_vm7 = vcmp.lt.s32.totalorder %v3023_v22, %v7053_v24  ;;  %v7104_v36 = vsel %vm3349_vm12, 1.0, %v4847_v12 }
 0x301   :  { %v3593_v60 = vadd.f32 %v3592_v50, %v3530_v44  ;;  %v2441_v1 = vmul.f32 %v7059_v41, %v7059_v41  ;;  %v7076_v56 = vadd.f32 %v7064_v18, %v4478_v9  ;;  %v2271_v16 = vpop.f32.mrb[127].mxu1  ;;  %v7108_v51 = vsel %vm3350_vm10, 1.0, %v4847_v12 }
 0x302   :  { %v2439_v35 = vmul.f32 %v7067_v8, %v7067_v8  ;;  %v7086_v37 = vadd.f32 %v7064_v18, %v2271_v16  ;;  %v3689_v44 = vadd.f32 %v7108_v51, %v7104_v36 }
 0x303   :  { %v3594_v31 = vadd.f32 %v3593_v60, %v3531_v57  ;;  %v2505_v26 = vmul.f32 %v2441_v1, %v7059_v41  ;;  %v2442_v25 = vmul.f32 %v7076_v56, %v7076_v56  ;;  %v7119_v60 = vsel %vm3351_vm2, 1.0, %v4847_v12 }
 0x304   :  { %v2503_v48 = vmul.f32 %v2439_v35, %v7067_v8  ;;  %v2440_v28 = vmul.f32 %v7086_v37, %v7086_v37  ;;  %v3024_v1 = vadd.s32 288, %v6555_v49  ;;  %v3690_v6 = vadd.f32 %v7119_v60, %v3689_v44 }
 0x305   :  { %v4719_v2 = vpop.eup %4718  ;;  %v3595_v42 = vadd.f32 %v3594_v31, %v3532_v23  ;;  %v2569_v10 = vmul.f32 0.044715, %v2505_v26  ;;  %v2506_v34 = vmul.f32 %v2442_v25, %v7076_v56  ;;  %v7128_v31 = vsel %vm3352_vm7, 1.0, %v4847_v12 }
 0x306   :  { %v4721_v38 = vpop.eup %4720  ;;  %v2821_v15 = vadd.f32 1.0, %v4719_v2  ;;  %v2567_v45 = vmul.f32 0.044715, %v2503_v48  ;;  %v2504_v4 = vmul.f32 %v2440_v28, %v7086_v37  ;;  %v7132_v26 = vadd.s32 304, %v6555_v49 }
 0x307   :  { %v4723_v21 = vpop.eup %4722  ;;  %v2819_v58 = vadd.f32 1.0, %v4721_v38  ;;  %v2633_v3 = vadd.f32 %v2569_v10, %v7059_v41  ;;  %v2570_v13 = vmul.f32 0.044715, %v2506_v34  ;;  %vm3353_vm1 = vcmp.lt.s32.totalorder %v3024_v1, %v7053_v24 }
 0x308   :  { %v4725_v19 = vpop.eup %4724  ;;  %v2885_v29 = vmul.f32 0.5, %v2821_v15  ;;  %v2822_v0 = vadd.f32 1.0, %v4723_v21  ;;  %v2631_v11 = vadd.f32 %v2567_v45, %v7067_v8  ;;  %v2568_v20 = vmul.f32 0.044715, %v2504_v4 }
 0x309   :  { %v2883_v27 = vmul.f32 0.5, %v2819_v58  ;;  %v2820_v33 = vadd.f32 1.0, %v4725_v19  ;;  %v2697_v17 = vmul.f32 0.7978846, %v2633_v3  ;;  %v2634_v39 = vadd.f32 %v2570_v13, %v7076_v56 }
 0x30a   :  { %v2886_v46 = vmul.f32 0.5, %v2822_v0  ;;  %v2695_v50 = vmul.f32 0.7978846, %v2631_v11  ;;  %v2632_v62 = vadd.f32 %v2568_v20, %v7086_v37  ;;  %v2949_v16 = vmul.f32 %v2885_v29, %v6981_v55 }
 0x30b   :  { %v2947_v63 = vmul.f32 %v2883_v27, %v6984_v30  ;;  %v2884_v9 = vmul.f32 0.5, %v2820_v33  ;;  %4726 = vtanh.f32 %v2697_v17  ;;  %v2698_v59 = vmul.f32 0.7978846, %v2634_v39 }
 0x30c   :  { %4728 = vtanh.f32 %v2695_v50  ;;  %v2696_v57 = vmul.f32 0.7978846, %v2632_v62  ;;  %v2950_v55 = vmul.f32 %v2886_v46, %v6993_v47  ;;  %v3027_v2 = vadd.s32 312, %v6555_v49 }
 0x30d   :  { %v3533_v35 = vmul.f32 %v6955_v43, %v2947_v63  ;;  %v2948_v23 = vmul.f32 %v2884_v9, %v6998_v14  ;;  %4730 = vtanh.f32 %v2698_v59  ;;  %v3025_v10 = vadd.s32 296, %v6555_v49 }
 0x30e   :  { %4732 = vtanh.f32 %v2696_v57  ;;  %v4481_v30 = vpop.f32.mrb[128].mxu1  ;;  %vm3355_vm14 = vcmp.lt.s32.totalorder %v7132_v26, %v7053_v24  ;;  %v3691_v21 = vadd.f32 %v7128_v31, %v3690_v6  ;;  %v3536_v58 = vmul.f32 %v7011_v40, %v2950_v55 }
 0x30f   :  { %v3596_v25 = vadd.f32 %v3595_v42, %v3533_v35  ;;  %v3534_v43 = vmul.f32 %v7018_v53, %v2948_v23  ;;  %v7137_v14 = vadd.f32 %v7064_v18, %v4481_v30  ;;  %v2284_v48 = vpop.f32.mrb[129].mxu1  ;;  %v3535_v42 = vmul.f32 %v6972_v54, %v2949_v16 }
 0x310   :  { %v7140_v28 = vadd.f32 %v7064_v18, %v2284_v48  ;;  %v4482_v22 = vpop.f32.mrb[130].mxu1  ;;  %v7169_v11 = vsel %vm3353_vm1, 1.0, %v4847_v12  ;;  %vm3354_vm4 = vcmp.lt.s32.totalorder %v3025_v10, %v7053_v24  ;;  %vm3356_vm15 = vcmp.lt.s32.totalorder %v3027_v2, %v7053_v24 }
 0x311   :  { %v3597_v34 = vadd.f32 %v3596_v25, %v3534_v43  ;;  %v2445_v47 = vmul.f32 %v7137_v14, %v7137_v14  ;;  %v7149_v38 = vadd.f32 %v7064_v18, %v4482_v22  ;;  %v2287_v15 = vpop.f32.mrb[131].mxu1  ;;  %v3692_v44 = vadd.f32 %v7169_v11, %v3691_v21 }
 0x312   :  { %v2443_v45 = vmul.f32 %v7140_v28, %v7140_v28  ;;  %v7154_v4 = vadd.f32 %v7064_v18, %v2287_v15  ;;  %v7178_v1 = vsel %vm3354_vm4, 1.0, %v4847_v12 }
 0x313   :  { %v3598_v3 = vadd.f32 %v3597_v34, %v3535_v42  ;;  %v2509_v13 = vmul.f32 %v2445_v47, %v7137_v14  ;;  %v2446_v19 = vmul.f32 %v7149_v38, %v7149_v38  ;;  %v3693_v34 = vadd.f32 %v7178_v1, %v3692_v44 }
 0x314   :  { %v2507_v29 = vmul.f32 %v2443_v45, %v7140_v28  ;;  %v2444_v0 = vmul.f32 %v7154_v4, %v7154_v4 }
 0x315   :  { %v4727_v20 = vpop.eup %4726  ;;  %v3599_v27 = vadd.f32 %v3598_v3, %v3536_v58  ;;  %v2573_v33 = vmul.f32 0.044715, %v2509_v13  ;;  %v2510_v17 = vmul.f32 %v2446_v19, %v7149_v38  ;;  %v7189_v58 = vsel %vm3355_vm14, 1.0, %v4847_v12 }
 0x316   :  { %v4729_v39 = vpop.eup %4728  ;;  %v2825_v46 = vadd.f32 1.0, %v4727_v20  ;;  %v2571_v50 = vmul.f32 0.044715, %v2507_v29  ;;  %v2508_v62 = vmul.f32 %v2444_v0, %v7154_v4  ;;  %v3028_v3 = vadd.s32 320, %v6555_v49 }
 0x317   :  { %v4731_v63 = vpop.eup %4730  ;;  %v2823_v9 = vadd.f32 1.0, %v4729_v39  ;;  %v2637_v59 = vadd.f32 %v2573_v33, %v7137_v14  ;;  %v2574_v57 = vmul.f32 0.044715, %v2510_v17  ;;  %v7198_v0 = vsel %vm3356_vm15, 1.0, %v4847_v12 }
 0x318   :  { %v4733_v16 = vpop.eup %4732  ;;  %v2889_v35 = vmul.f32 0.5, %v2825_v46  ;;  %v2826_v23 = vadd.f32 1.0, %v4731_v63  ;;  %v2635_v30 = vadd.f32 %v2571_v50, %v7140_v28  ;;  %v2572_v6 = vmul.f32 0.044715, %v2508_v62 }
 0x319   :  { %v2887_v25 = vmul.f32 0.5, %v2823_v9  ;;  %v2824_v55 = vadd.f32 1.0, %v4733_v16  ;;  %v2701_v43 = vmul.f32 0.7978846, %v2637_v59  ;;  %v2638_v48 = vadd.f32 %v2574_v57, %v7149_v38 }
 0x31a   :  { %v2890_v22 = vmul.f32 0.5, %v2826_v23  ;;  %v2699_v10 = vmul.f32 0.7978846, %v2635_v30  ;;  %v2636_v42 = vadd.f32 %v2572_v6, %v7154_v4  ;;  %v2953_v13 = vmul.f32 %v2889_v35, %v7059_v41 }
 0x31b   :  { %v2951_v47 = vmul.f32 %v2887_v25, %v7067_v8  ;;  %v2888_v15 = vmul.f32 0.5, %v2824_v55  ;;  %4734 = vtanh.f32 %v2701_v43  ;;  %v2702_v45 = vmul.f32 0.7978846, %v2638_v48 }
 0x31c   :  { %4736 = vtanh.f32 %v2699_v10  ;;  %v2700_v21 = vmul.f32 0.7978846, %v2636_v42  ;;  %v3694_v26 = vadd.f32 %v7189_v58, %v3693_v34  ;;  %v7202_v20 = vadd.s32 336, %v6555_v49 }
 0x31d   :  { %v3537_v19 = vmul.f32 %v7022_v52, %v2951_v47  ;;  %v2952_v29 = vmul.f32 %v2888_v15, %v7086_v37  ;;  %4738 = vtanh.f32 %v2702_v45  ;;  %v2954_v41 = vmul.f32 %v2890_v22, %v7076_v56 }
 0x31e   :  { %4740 = vtanh.f32 %v2700_v21  ;;  %v4485_v8 = vpop.f32.mrb[132].mxu1  ;;  %vm3357_vm9 = vcmp.lt.s32.totalorder %v3028_v3, %v7053_v24  ;;  %v3031_v50 = vadd.s32 344, %v6555_v49  ;;  %v3029_v62 = vadd.s32 328, %v6555_v49 }
 0x31f   :  { %v3600_v33 = vadd.f32 %v3599_v27, %v3537_v19  ;;  %v3538_v17 = vmul.f32 %v7047_v7, %v2952_v29  ;;  %v7207_v37 = vadd.f32 %v7064_v18, %v4485_v8  ;;  %v2300_v39 = vpop.f32.mrb[133].mxu1  ;;  %v3539_v27 = vmul.f32 %v7042_v61, %v2953_v13 }
 0x320   :  { %v7210_v46 = vadd.f32 %v7064_v18, %v2300_v39  ;;  %v4486_v2 = vpop.f32.mrb[134].mxu1  ;;  %vm3359_vm13 = vcmp.lt.s32.totalorder %v7202_v20, %v7053_v24  ;;  %v3695_v16 = vadd.f32 %v7198_v0, %v3694_v26  ;;  %v3540_v35 = vmul.f32 %v7083_v5, %v2954_v41 }
 0x321   :  { %v3601_v44 = vadd.f32 %v3600_v33, %v3538_v17  ;;  %v2449_v56 = vmul.f32 %v7207_v37, %v7207_v37  ;;  %v7219_v63 = vadd.f32 %v7064_v18, %v4486_v2  ;;  %v2303_v9 = vpop.f32.mrb[135].mxu1  ;;  %v7239_v43 = vsel %vm3357_vm9, 1.0, %v4847_v12 }
 0x322   :  { %v2447_v59 = vmul.f32 %v7210_v46, %v7210_v46  ;;  %v7224_v57 = vadd.f32 %v7064_v18, %v2303_v9  ;;  %vm3358_vm0 = vcmp.lt.s32.totalorder %v3029_v62, %v7053_v24  ;;  %vm3360_vm6 = vcmp.lt.s32.totalorder %v3031_v50, %v7053_v24 }
 0x323   :  { %v3602_v23 = vadd.f32 %v3601_v44, %v3539_v27  ;;  %v2513_v30 = vmul.f32 %v2449_v56, %v7207_v37  ;;  %v2450_v6 = vmul.f32 %v7219_v63, %v7219_v63  ;;  %v3696_v21 = vadd.f32 %v7239_v43, %v3695_v16 }
 0x324   :  { %v2511_v25 = vmul.f32 %v2447_v59, %v7210_v46  ;;  %v2448_v55 = vmul.f32 %v7224_v57, %v7224_v57  ;;  %v7250_v8 = vsel %vm3358_vm0, 1.0, %v4847_v12 }
 0x325   :  { %v4735_v48 = vpop.eup %4734  ;;  %v7242_v22 = vadd.f32 %v3602_v23, %v3540_v35  ;;  %v2577_v10 = vmul.f32 0.044715, %v2513_v30  ;;  %v2514_v42 = vmul.f32 %v2450_v6, %v7219_v63  ;;  %v3697_v16 = vadd.f32 %v7250_v8, %v3696_v21 }
 0x326   :  { %v4737_v34 = vpop.eup %4736  ;;  %v2829_v47 = vadd.f32 1.0, %v4735_v48  ;;  %v2575_v15 = vmul.f32 0.044715, %v2511_v25  ;;  %v2512_v45 = vmul.f32 %v2448_v55, %v7224_v57  ;;  %v7259_v6 = vadd.f32 %v7018_v53, %v6975_v32 }
 0x327   :  { %v4739_v3 = vpop.eup %4738  ;;  %v2827_v13 = vadd.f32 1.0, %v4737_v34  ;;  %v2641_v19 = vadd.f32 %v2577_v10, %v7207_v37  ;;  %v2578_v29 = vmul.f32 0.044715, %v2514_v42  ;;  %v3032_v55 = vadd.s32 352, %v6555_v49 }
 0x328   :  { %v4741_v26 = vpop.eup %4740  ;;  %v2893_v33 = vmul.f32 0.5, %v2829_v47  ;;  %v2830_v41 = vadd.f32 1.0, %v4739_v3  ;;  %v2639_v17 = vadd.f32 %v2575_v15, %v7210_v46  ;;  %v2576_v39 = vmul.f32 0.044715, %v2512_v45 }
 0x329   :  { %v2891_v2 = vmul.f32 0.5, %v2827_v13  ;;  %v2828_v62 = vadd.f32 1.0, %v4741_v26  ;;  %v2705_v27 = vmul.f32 0.7978846, %v2641_v19  ;;  %v2642_v44 = vadd.f32 %v2578_v29, %v7219_v63 }
 0x32a   :  { %v2894_v56 = vmul.f32 0.5, %v2830_v41  ;;  %v2703_v9 = vmul.f32 0.7978846, %v2639_v17  ;;  %v2640_v59 = vadd.f32 %v2576_v39, %v7224_v57  ;;  %v2957_v48 = vmul.f32 %v2893_v33, %v7137_v14 }
 0x32b   :  { %v2955_v35 = vmul.f32 %v2891_v2, %v7140_v28  ;;  %v2892_v23 = vmul.f32 0.5, %v2828_v62  ;;  %4742 = vtanh.f32 %v2705_v27  ;;  %v2706_v30 = vmul.f32 0.7978846, %v2642_v44 }
 0x32c   :  { %4744 = vtanh.f32 %v2703_v9  ;;  %v2704_v25 = vmul.f32 0.7978846, %v2640_v59  ;;  %v7268_v28 = vsel %vm3359_vm13, 1.0, %v4847_v12  ;;  %v7273_v32 = vsel %vm3360_vm6, 1.0, %v4847_v12 }
 0x32d   :  { %v2956_v10 = vmul.f32 %v2892_v23, %v7154_v4  ;;  %4746 = vtanh.f32 %v2706_v30  ;;  %v3698_v53 = vadd.f32 %v7268_v28, %v3697_v16  ;;  %v7277_v14 = vadd.s32 368, %v6555_v49 }
 0x32e   :  { %4748 = vtanh.f32 %v2704_v25  ;;  %v4489_v42 = vpop.f32.mrb[136].mxu1  ;;  %v3541_v4 = vmul.f32 %v7104_v36, %v2955_v35  ;;  %v2958_v34 = vmul.f32 %v2894_v56, %v7149_v38  ;;  %vm3361_vm5 = vcmp.lt.s32.totalorder %v3032_v55, %v7053_v24 }
 0x32f   :  { %v3542_v20 = vmul.f32 %v7108_v51, %v2956_v10  ;;  %v7283_v47 = vadd.f32 %v7064_v18, %v4489_v42  ;;  %v2316_v15 = vpop.f32.mrb[137].mxu1  ;;  %v3035_v21 = vadd.s32 376, %v6555_v49  ;;  %v3033_v3 = vadd.s32 360, %v6555_v49 }
 0x330   :  { %v7286_v45 = vadd.f32 %v7064_v18, %v2316_v15  ;;  %v4490_v50 = vpop.f32.mrb[138].mxu1  ;;  %v3543_v36 = vmul.f32 %v7119_v60, %v2957_v48  ;;  %vm3363_vm8 = vcmp.lt.s32.totalorder %v7277_v14, %v7053_v24  ;;  %v3699_v33 = vadd.f32 %v7273_v32, %v3698_v53 }
 0x331   :  { %v3652_v13 = vadd.f32 %v3542_v20, %v3541_v4  ;;  %v2453_v51 = vmul.f32 %v7283_v47, %v7283_v47  ;;  %v7295_v38 = vadd.f32 %v7064_v18, %v4490_v50  ;;  %v2319_v19 = vpop.f32.mrb[139].mxu1  ;;  %v3544_v60 = vmul.f32 %v7128_v31, %v2958_v34 }
 0x332   :  { %v2451_v29 = vmul.f32 %v7286_v45, %v7286_v45  ;;  %v7300_v26 = vadd.f32 %v7064_v18, %v2319_v19  ;;  %v7315_v27 = vsel %vm3361_vm5, 1.0, %v4847_v12  ;;  %vm3362_vm3 = vcmp.lt.s32.totalorder %v3033_v3, %v7053_v24 }
 0x333   :  { %v3653_v41 = vadd.f32 %v3652_v13, %v3543_v36  ;;  %v2517_v17 = vmul.f32 %v2453_v51, %v7283_v47  ;;  %v2454_v39 = vmul.f32 %v7295_v38, %v7295_v38  ;;  %vm3364_vm11 = vcmp.lt.s32.totalorder %v3035_v21, %v7053_v24 }
 0x334   :  { %v2515_v2 = vmul.f32 %v2451_v29, %v7286_v45  ;;  %v2452_v62 = vmul.f32 %v7300_v26, %v7300_v26  ;;  %v3700_v30 = vadd.f32 %v7315_v27, %v3699_v33  ;;  %v7324_v42 = vsel %vm3362_vm3, 1.0, %v4847_v12 }
 0x335   :  { %v4743_v44 = vpop.eup %4742  ;;  %v3654_v31 = vadd.f32 %v3653_v41, %v3544_v60  ;;  %v2581_v56 = vmul.f32 0.044715, %v2517_v17  ;;  %v2518_v9 = vmul.f32 %v2454_v39, %v7295_v38  ;;  %v7358_v21 = vadd.s32 408, %v6555_v49 }
 0x336   :  { %v4745_v59 = vpop.eup %4744  ;;  %v2833_v16 = vadd.f32 1.0, %v4743_v44  ;;  %v2579_v35 = vmul.f32 0.044715, %v2515_v2  ;;  %v2516_v23 = vmul.f32 %v2452_v62, %v7300_v26  ;;  %v3701_v33 = vadd.f32 %v7324_v42, %v3700_v30 }
 0x337   :  { %v4747_v25 = vpop.eup %4746  ;;  %v2831_v55 = vadd.f32 1.0, %v4745_v59  ;;  %v2645_v48 = vadd.f32 %v2581_v56, %v7283_v47  ;;  %v2582_v10 = vmul.f32 0.044715, %v2518_v9  ;;  %v7335_v2 = vsel %vm3363_vm8, 1.0, %v4847_v12 }
 0x338   :  { %v4749_v53 = vpop.eup %4748  ;;  %v2897_v4 = vmul.f32 0.5, %v2833_v16  ;;  %v2834_v34 = vadd.f32 1.0, %v4747_v25  ;;  %v2643_v20 = vadd.f32 %v2579_v35, %v7286_v45  ;;  %v2580_v15 = vmul.f32 0.044715, %v2516_v23 }
 0x339   :  { %v2895_v50 = vmul.f32 0.5, %v2831_v55  ;;  %v2832_v3 = vadd.f32 1.0, %v4749_v53  ;;  %v2709_v36 = vmul.f32 0.7978846, %v2645_v48  ;;  %v2646_v13 = vadd.f32 %v2582_v10, %v7295_v38 }
 0x33a   :  { %v2898_v51 = vmul.f32 0.5, %v2834_v34  ;;  %v2707_v19 = vmul.f32 0.7978846, %v2643_v20  ;;  %v2644_v29 = vadd.f32 %v2580_v15, %v7300_v26  ;;  %v3038_v62 = vadd.s32 400, %v6555_v49 }
 0x33b   :  { %v2959_v60 = vmul.f32 %v2895_v50, %v7210_v46  ;;  %v2896_v41 = vmul.f32 0.5, %v2832_v3  ;;  %4750 = vtanh.f32 %v2709_v36  ;;  %v2710_v17 = vmul.f32 0.7978846, %v2646_v13 }
 0x33c   :  { %4752 = vtanh.f32 %v2707_v19  ;;  %v2708_v39 = vmul.f32 0.7978846, %v2644_v29  ;;  %v2961_v44 = vmul.f32 %v2897_v4, %v7207_v37  ;;  %v7344_v59 = vsel %vm3364_vm11, 1.0, %v4847_v12 }
 0x33d   :  { %v3545_v56 = vmul.f32 %v7169_v11, %v2959_v60  ;;  %v2960_v9 = vmul.f32 %v2896_v41, %v7224_v57  ;;  %4754 = vtanh.f32 %v2710_v17  ;;  %v3702_v14 = vadd.f32 %v7335_v2, %v3701_v33 }
 0x33e   :  { %4756 = vtanh.f32 %v2708_v39  ;;  %v4493_v46 = vpop.f32.mrb[140].mxu1  ;;  %v3036_v16 = vadd.s32 384, %v6555_v49  ;;  %v2962_v23 = vmul.f32 %v2898_v51, %v7219_v63  ;;  %vm3367_vm12 = vcmp.lt.s32.totalorder %v3038_v62, %v7053_v24 }
 0x33f   :  { %v3655_v35 = vadd.f32 %v3654_v31, %v3545_v56  ;;  %v3546_v37 = vmul.f32 %v7178_v1, %v2960_v9  ;;  %v7351_v11 = vadd.f32 %v7064_v18, %v4493_v46  ;;  %v2332_v57 = vpop.f32.mrb[141].mxu1  ;;  %v3037_v55 = vadd.s32 392, %v6555_v49 }
 0x340   :  { %v7354_v30 = vadd.f32 %v7064_v18, %v2332_v57  ;;  %v4494_v25 = vpop.f32.mrb[142].mxu1  ;;  %v3547_v31 = vmul.f32 %v7189_v58, %v2961_v44  ;;  %vm3365_vm2 = vcmp.lt.s32.totalorder %v3036_v16, %v7053_v24  ;;  %v3703_v34 = vadd.f32 %v7344_v59, %v3702_v14 }
 0x341   :  { %v3656_v63 = vadd.f32 %v3655_v35, %v3546_v37  ;;  %v2457_v1 = vmul.f32 %v7351_v11, %v7351_v11  ;;  %v7365_v48 = vadd.f32 %v7064_v18, %v4494_v25  ;;  %v2335_v10 = vpop.f32.mrb[143].mxu1  ;;  %v3548_v58 = vmul.f32 %v7198_v0, %v2962_v23 }
 0x342   :  { %v2455_v53 = vmul.f32 %v7354_v30, %v7354_v30  ;;  %v7370_v4 = vadd.f32 %v7064_v18, %v2335_v10  ;;  %v7384_v13 = vsel %vm3367_vm12, 1.0, %v4847_v12  ;;  %vm3366_vm10 = vcmp.lt.s32.totalorder %v3037_v55, %v7053_v24 }
 0x343   :  { %v3657_v20 = vadd.f32 %v3656_v63, %v3547_v31  ;;  %v2521_v15 = vmul.f32 %v2457_v1, %v7351_v11  ;;  %v2458_v50 = vmul.f32 %v7365_v48, %v7365_v48  ;;  %v7389_v33 = vsel %vm3365_vm2, 1.0, %v4847_v12 }
 0x344   :  { %v2519_v3 = vmul.f32 %v2455_v53, %v7354_v30  ;;  %v2456_v36 = vmul.f32 %v7370_v4, %v7370_v4  ;;  %v3704_v44 = vadd.f32 %v7389_v33, %v3703_v34  ;;  %v7395_v14 = vsel %vm3366_vm10, 1.0, %v4847_v12 }
 0x345   :  { %v4751_v51 = vpop.eup %4750  ;;  %v3658_v0 = vadd.f32 %v3657_v20, %v3548_v58  ;;  %v2585_v19 = vmul.f32 0.044715, %v2521_v15  ;;  %v2522_v29 = vmul.f32 %v2458_v50, %v7365_v48  ;;  %vm3368_vm7 = vcmp.lt.s32.totalorder %v7358_v21, %v7053_v24 }
 0x346   :  { %v4753_v60 = vpop.eup %4752  ;;  %v2837_v41 = vadd.f32 1.0, %v4751_v51  ;;  %v2583_v17 = vmul.f32 0.044715, %v2519_v3  ;;  %v2520_v39 = vmul.f32 %v2456_v36, %v7370_v4  ;;  %v3705_v34 = vadd.f32 %v7395_v14, %v3704_v44 }
 0x347   :  { %v4755_v62 = vpop.eup %4754  ;;  %v2835_v56 = vadd.f32 1.0, %v4753_v60  ;;  %v2649_v9 = vadd.f32 %v2585_v19, %v7351_v11  ;;  %v2586_v46 = vmul.f32 0.044715, %v2522_v29  ;;  %v3040_v3 = vadd.s32 416, %v6555_v49 }
 0x348   :  { %v4757_v16 = vpop.eup %4756  ;;  %v2901_v35 = vmul.f32 0.5, %v2837_v41  ;;  %v2838_v23 = vadd.f32 1.0, %v4755_v62  ;;  %v2647_v37 = vadd.f32 %v2583_v17, %v7354_v30  ;;  %v2584_v57 = vmul.f32 0.044715, %v2520_v39 }
 0x349   :  { %v2899_v25 = vmul.f32 0.5, %v2835_v56  ;;  %v2836_v55 = vadd.f32 1.0, %v4757_v16  ;;  %v2713_v31 = vmul.f32 0.7978846, %v2649_v9  ;;  %v2650_v63 = vadd.f32 %v2586_v46, %v7365_v48 }
 0x34a   :  { %v2902_v1 = vmul.f32 0.5, %v2838_v23  ;;  %v2711_v10 = vmul.f32 0.7978846, %v2647_v37  ;;  %v2648_v53 = vadd.f32 %v2584_v57, %v7370_v4  ;;  %v2965_v36 = vmul.f32 %v2901_v35, %v7283_v47 }
 0x34b   :  { %v2963_v58 = vmul.f32 %v2899_v25, %v7286_v45  ;;  %v2900_v20 = vmul.f32 0.5, %v2836_v55  ;;  %4758 = vtanh.f32 %v2713_v31  ;;  %v2714_v15 = vmul.f32 0.7978846, %v2650_v63 }
 0x34c   :  { %4760 = vtanh.f32 %v2711_v10  ;;  %v2712_v50 = vmul.f32 0.7978846, %v2648_v53  ;;  %v3635_v45 = vadd.f32 %v6972_v54, %v7259_v6  ;;  %v3706_v60 = vadd.f32 %v7384_v13, %v3705_v34 }
 0x34d   :  { %v3549_v51 = vmul.f32 %v7239_v43, %v2963_v58  ;;  %v2964_v19 = vmul.f32 %v2900_v20, %v7300_v26  ;;  %4762 = vtanh.f32 %v2714_v15  ;;  %v2966_v17 = vmul.f32 %v2902_v1, %v7295_v38 }
 0x34e   :  { %4764 = vtanh.f32 %v2712_v50  ;;  %v4497_v29 = vpop.f32.mrb[144].mxu1  ;;  %v7423_v54 = vsel %vm3368_vm7, 1.0, %v4847_v12  ;;  %v3042_v6 = vadd.s32 432, %v6555_v49  ;;  %vm3369_vm1 = vcmp.lt.s32.totalorder %v3040_v3, %v7053_v24 }
 0x34f   :  { %v3659_v41 = vadd.f32 %v3658_v0, %v3549_v51  ;;  %v3550_v39 = vmul.f32 %v7250_v8, %v2964_v19  ;;  %v7414_v44 = vadd.f32 %v7064_v18, %v4497_v29  ;;  %v2348_v47 = vpop.f32.mrb[145].mxu1  ;;  %v3551_v8 = vmul.f32 %v7268_v28, %v2965_v36 }
 0x350   :  { %v7417_v43 = vadd.f32 %v7064_v18, %v2348_v47  ;;  %v4498_v26 = vpop.f32.mrb[146].mxu1  ;;  %v3707_v46 = vadd.f32 %v7423_v54, %v3706_v60  ;;  %v3041_v16 = vadd.s32 424, %v6555_v49  ;;  %v3552_v28 = vmul.f32 %v7273_v32, %v2966_v17 }
 0x351   :  { %v3660_v38 = vadd.f32 %v3659_v41, %v3550_v39  ;;  %v2461_v0 = vmul.f32 %v7414_v44, %v7414_v44  ;;  %v7431_v62 = vadd.f32 %v7064_v18, %v4498_v26  ;;  %v2351_v56 = vpop.f32.mrb[147].mxu1  ;;  %v3636_v57 = vadd.f32 %v7011_v40, %v3635_v45 }
 0x352   :  { %v2459_v9 = vmul.f32 %v7417_v43, %v7417_v43  ;;  %v7436_v21 = vadd.f32 %v7064_v18, %v2351_v56  ;;  %vm3371_vm14 = vcmp.lt.s32.totalorder %v3042_v6, %v7053_v24  ;;  %v7453_v10 = vsel %vm3369_vm1, 1.0, %v4847_v12 }
 0x353   :  { %v3661_v35 = vadd.f32 %v3660_v38, %v3551_v8  ;;  %v2525_v23 = vmul.f32 %v2461_v0, %v7414_v44  ;;  %v2462_v37 = vmul.f32 %v7431_v62, %v7431_v62  ;;  %v3708_v20 = vadd.f32 %v7453_v10, %v3707_v46 }
 0x354   :  { %v2523_v25 = vmul.f32 %v2459_v9, %v7417_v43  ;;  %v2460_v55 = vmul.f32 %v7436_v21, %v7436_v21  ;;  %vm3370_vm4 = vcmp.lt.s32.totalorder %v3041_v16, %v7053_v24  ;;  %vm3650_vm12 = vcmp.eq.s32.totalorder %v6555_v49, 0 }
 0x355   :  { %v4759_v31 = vpop.eup %4758  ;;  %v3662_v63 = vadd.f32 %v3661_v35, %v3552_v28  ;;  %v2589_v1 = vmul.f32 0.044715, %v2525_v23  ;;  %v2526_v32 = vmul.f32 %v2462_v37, %v7431_v62  ;;  %v7463_v0 = vsel %vm3370_vm4, 1.0, %v4847_v12 }
 0x356   :  { %v4761_v53 = vpop.eup %4760  ;;  %v2841_v34 = vadd.f32 1.0, %v4759_v31  ;;  %v2587_v40 = vmul.f32 0.044715, %v2523_v25  ;;  %v2524_v58 = vmul.f32 %v2460_v55, %v7436_v21  ;;  %v3043_v28 = vadd.s32 440, %v6555_v49 }
 0x357   :  { %v4763_v15 = vpop.eup %4762  ;;  %v2839_v50 = vadd.f32 1.0, %v4761_v53  ;;  %v2653_v36 = vadd.f32 %v2589_v1, %v7414_v44  ;;  %v2590_v51 = vmul.f32 0.044715, %v2526_v32  ;;  %v3709_v35 = vadd.f32 %v7463_v0, %v3708_v20 }
 0x358   :  { %v4765_v19 = vpop.eup %4764  ;;  %v2905_v45 = vmul.f32 0.5, %v2841_v34  ;;  %v2842_v29 = vadd.f32 1.0, %v4763_v15  ;;  %v2651_v3 = vadd.f32 %v2587_v40, %v7417_v43  ;;  %v2588_v60 = vmul.f32 0.044715, %v2524_v58 }
 0x359   :  { %v2903_v41 = vmul.f32 0.5, %v2839_v50  ;;  %v2840_v17 = vadd.f32 1.0, %v4765_v19  ;;  %v2717_v39 = vmul.f32 0.7978846, %v2653_v36  ;;  %v2654_v47 = vadd.f32 %v2590_v51, %v7431_v62 }
 0x35a   :  { %v2906_v26 = vmul.f32 0.5, %v2842_v29  ;;  %v2715_v8 = vmul.f32 0.7978846, %v2651_v3  ;;  %v2652_v38 = vadd.f32 %v2588_v60, %v7436_v21  ;;  %v2969_v23 = vmul.f32 %v2905_v45, %v7351_v11 }
 0x35b   :  { %v2967_v56 = vmul.f32 %v2903_v41, %v7354_v30  ;;  %v2904_v9 = vmul.f32 0.5, %v2840_v17  ;;  %4766 = vtanh.f32 %v2717_v39  ;;  %v2718_v46 = vmul.f32 0.7978846, %v2654_v47 }
 0x35c   :  { %4768 = vtanh.f32 %v2715_v8  ;;  %v2716_v16 = vmul.f32 0.7978846, %v2652_v38  ;;  %v7474_v30 = vsel %vm3371_vm14, 1.0, %v4847_v12  ;;  %v3044_v31 = vadd.s32 448, %v6555_v49 }
 0x35d   :  { %v3553_v37 = vmul.f32 %v7315_v27, %v2967_v56  ;;  %v2968_v25 = vmul.f32 %v2904_v9, %v7370_v4  ;;  %4770 = vtanh.f32 %v2718_v46  ;;  %v2970_v32 = vmul.f32 %v2906_v26, %v7365_v48 }
 0x35e   :  { %4772 = vtanh.f32 %v2716_v16  ;;  %v4501_v55 = vpop.f32.mrb[148].mxu1  ;;  %v3637_v4 = vadd.f32 %v7022_v52, %v3636_v57  ;;  %vm3372_vm15 = vcmp.lt.s32.totalorder %v3043_v28, %v7053_v24  ;;  %v3710_v6 = vadd.f32 %v7474_v30, %v3709_v35 }
 0x35f   :  { %v3663_v1 = vadd.f32 %v3662_v63, %v3553_v37  ;;  %v3554_v53 = vmul.f32 %v7324_v42, %v2968_v25  ;;  %v7480_v11 = vadd.f32 %v7064_v18, %v4501_v55  ;;  %v2364_v27 = vpop.f32.mrb[149].mxu1  ;;  %v3555_v63 = vmul.f32 %v7335_v2, %v2969_v23 }
 0x360   :  { %v7484_v34 = vadd.f32 %v7064_v18, %v2364_v27  ;;  %v4502_v40 = vpop.f32.mrb[150].mxu1  ;;  %vm3373_vm9 = vcmp.lt.s32.totalorder %v3044_v31, %v7053_v24  ;;  %v3045_v15 = vadd.s32 456, %v6555_v49  ;;  %v3556_v2 = vmul.f32 %v7344_v59, %v2970_v32 }
 0x361   :  { %v3664_v58 = vadd.f32 %v3663_v1, %v3554_v53  ;;  %v2465_v42 = vmul.f32 %v7480_v11, %v7480_v11  ;;  %v7492_v48 = vadd.f32 %v7064_v18, %v4502_v40  ;;  %v2367_v20 = vpop.f32.mrb[151].mxu1  ;;  %v7509_v45 = vsel %vm3372_vm15, 1.0, %v4847_v12 }
 0x362   :  { %v2463_v52 = vmul.f32 %v7484_v34, %v7484_v34  ;;  %v7497_v57 = vadd.f32 %v7064_v18, %v2367_v20  ;;  %v7514_v3 = vadd.s32 464, %v6555_v49  ;;  %v7518_v39 = vsel %vm3373_vm9, 1.0, %v4847_v12 }
 0x363   :  { %v3665_v50 = vadd.f32 %v3664_v58, %v3555_v63  ;;  %v2529_v36 = vmul.f32 %v2465_v42, %v7480_v11  ;;  %v2466_v51 = vmul.f32 %v7492_v48, %v7492_v48  ;;  %v3711_v56 = vadd.f32 %v7509_v45, %v3710_v6 }
 0x364   :  { %v2527_v19 = vmul.f32 %v2463_v52, %v7484_v34  ;;  %v2464_v29 = vmul.f32 %v7497_v57, %v7497_v57  ;;  %vm3374_vm13 = vcmp.lt.s32.totalorder %v3045_v15, %v7053_v24  ;;  %v3047_v63 = vadd.s32 472, %v6555_v49 }
 0x365   :  { %v4767_v59 = vpop.eup %4766  ;;  %v3666_v60 = vadd.f32 %v3665_v50, %v3556_v2  ;;  %v2593_v41 = vmul.f32 0.044715, %v2529_v36  ;;  %v2530_v17 = vmul.f32 %v2466_v51, %v7492_v48  ;;  %v3712_v2 = vadd.f32 %v7518_v39, %v3711_v56  ;;  %v7564_v56 = vld [vmem:[%s7710_s4] ss:$0 sm:$0xff]  ;;  %s4848_s4 = smov [#allocation4]  }
 0x366   :  { %v4769_v47 = vpop.eup %4768  ;;  %v2845_v26 = vadd.f32 1.0, %v4767_v59  ;;  %v2591_v8 = vmul.f32 0.044715, %v2527_v19  ;;  %v2528_v38 = vmul.f32 %v2464_v29, %v7497_v57  ;;  %v7533_v50 = vsel %vm3374_vm13, 1.0, %v4847_v12  ;;  %s3761_s13 = sshll.u32 %s4848_s4, 4  ;;  %s3762_s13 = int_to_ptr.vmem [resolvable:$true] %s3761_s13 }
 0x367   :  { %v4771_v9 = vpop.eup %4770  ;;  %v2843_v46 = vadd.f32 1.0, %v4769_v47  ;;  %v2657_v16 = vadd.f32 %v2593_v41, %v7480_v11  ;;  %v2594_v28 = vmul.f32 0.044715, %v2530_v17  ;;  %v3048_v59 = vadd.s32 480, %v6555_v49  ;;  %s4818_s14 = scalar_lea.vmem %s3762_s13, 32  ;;  %p4823_p8 = scmp.lt.s32.totalorder %s3762_s13, %s3762_s13 }
 0x368   :  { %v4773_v35 = vpop.eup %4772  ;;  %v2909_v23 = vmul.f32 0.5, %v2845_v26  ;;  %v2846_v37 = vadd.f32 1.0, %v4771_v9  ;;  %v2655_v25 = vadd.f32 %v2591_v8, %v7484_v34  ;;  %v2592_v55 = vmul.f32 0.044715, %v2528_v38  ;;  %p4819_p7 = scmp.ne.s32.totalorder %s3762_s13, %s4818_s14  ;;  %p4824_p9 = scmp.lt.s32.totalorder %s4818_s14, %s4818_s14 }
 0x369   :  { %v2907_v31 = vmul.f32 0.5, %v2843_v46  ;;  %v2844_v1 = vadd.f32 1.0, %v4773_v35  ;;  %v2721_v32 = vmul.f32 0.7978846, %v2657_v16  ;;  %v2658_v53 = vadd.f32 %v2594_v28, %v7492_v48 }
 0x36a   :  { %v2910_v27 = vmul.f32 0.5, %v2846_v37  ;;  %v2719_v40 = vmul.f32 0.7978846, %v2655_v25  ;;  %v2656_v6 = vadd.f32 %v2592_v55, %v7497_v57  ;;  %v2973_v36 = vmul.f32 %v2909_v23, %v7414_v44  ;;  %p4825_p10 = por %p4824_p9, %p4823_p8 }
 0x36b   :  { %v2971_v58 = vmul.f32 %v2907_v31, %v7417_v43  ;;  %v2908_v42 = vmul.f32 0.5, %v2844_v1  ;;  %4774 = vtanh.f32 %v2721_v32  ;;  %v2722_v20 = vmul.f32 0.7978846, %v2658_v53 }
 0x36c   :  { %4776 = vtanh.f32 %v2719_v40  ;;  %v2720_v52 = vmul.f32 0.7978846, %v2656_v6  ;;  %v3638_v43 = vadd.f32 %v7047_v7, %v3637_v4  ;;  %v2974_v17 = vmul.f32 %v2910_v27, %v7431_v62  ;;  %p4826_p11 = pnand %p4825_p10, %p4819_p7 }
 0x36d   :  { %v3557_v51 = vmul.f32 %v7389_v33, %v2971_v58  ;;  %v2972_v19 = vmul.f32 %v2908_v42, %v7436_v21  ;;  %4778 = vtanh.f32 %v2722_v20  ;;  %vm3375_vm0 = vcmp.lt.s32.totalorder %v7514_v3, %v7053_v24 }
 0x36e   :  { %4780 = vtanh.f32 %v2720_v52  ;;  %v4505_v29 = vpop.f32.mrb[152].mxu1  ;;  %vm3376_vm6 = vcmp.lt.s32.totalorder %v3047_v63, %v7053_v24  ;;  %v3713_v21 = vadd.f32 %v7533_v50, %v3712_v2  ;;  %v3559_v4 = vmul.f32 %v7384_v13, %v2973_v36 }
 0x36f   :  { %v3667_v41 = vadd.f32 %v3666_v60, %v3557_v51  ;;  %v3558_v15 = vmul.f32 %v7395_v14, %v2972_v19  ;;  %v7543_v47 = vadd.f32 %v7064_v18, %v4505_v29  ;;  %v2380_v44 = vpop.f32.mrb[153].mxu1  ;;  %v3639_v8 = vadd.f32 %v7042_v61, %v3638_v43 }
 0x370   :  { %v7548_v33 = vadd.f32 %v7064_v18, %v2380_v44  ;;  %v4506_v7 = vpop.f32.mrb[154].mxu1  ;;  %vm3377_vm5 = vcmp.lt.s32.totalorder %v3048_v59, %v7053_v24  ;;  %v3560_v9 = vmul.f32 %v7423_v54, %v2974_v17  ;;  %v7578_v16 = vsel %vm3375_vm0, 1.0, %v4847_v12 }
 0x371   :  { %v3668_v62 = vadd.f32 %v3667_v41, %v3558_v15  ;;  %v2469_v14 = vmul.f32 %v7543_v47, %v7543_v47  ;;  %v7556_v60 = vadd.f32 %v7064_v18, %v4506_v7  ;;  %v2383_v26 = vpop.f32.mrb[155].mxu1  ;;  %v7584_v35 = vsel %vm3376_vm6, 1.0, %v4847_v12 }
 0x372   :  { %v2467_v38 = vmul.f32 %v7548_v33, %v7548_v33  ;;  %v7567_v13 = vadd.f32 %v7564_v56, %v2383_v26  ;;  %v3714_v31 = vadd.f32 %v7578_v16, %v3713_v21  ;;  %v7594_v27 = vsel %vm3377_vm5, 1.0, %v4847_v12 }
 0x373   :  { %v3669_v18 = vadd.f32 %v3668_v62, %v3559_v4  ;;  %v2533_v46 = vmul.f32 %v2469_v14, %v7543_v47  ;;  %v2470_v61 = vmul.f32 %v7556_v60, %v7556_v60  ;;  %v3049_v42 = vadd.s32 488, %v6555_v49 }
 0x374   :  { %v2531_v28 = vmul.f32 %v2467_v38, %v7548_v33  ;;  %v2468_v54 = vmul.f32 %v7567_v13, %v7567_v13  ;;  %v3715_v44 = vadd.f32 %v7584_v35, %v3714_v31  ;;  %v3050_v14 = vadd.s32 496, %v6555_v49 }
 0x375   :  { %v4775_v23 = vpop.eup %4774  ;;  %v3670_v37 = vadd.f32 %v3669_v18, %v3560_v9  ;;  %v2597_v25 = vmul.f32 0.044715, %v2533_v46  ;;  %v2534_v55 = vmul.f32 %v2470_v61, %v7556_v60  ;;  %vm3378_vm8 = vcmp.lt.s32.totalorder %v3049_v42, %v7053_v24 }
 0x376   :  { %v4777_v3 = vpop.eup %4776  ;;  %v2849_v1 = vadd.f32 1.0, %v4775_v23  ;;  %v2595_v32 = vmul.f32 0.044715, %v2531_v28  ;;  %v2532_v53 = vmul.f32 %v2468_v54, %v7567_v13  ;;  %v3716_v18 = vadd.f32 %v7594_v27, %v3715_v44 }
 0x377   :  { %v4779_v40 = vpop.eup %4778  ;;  %v2847_v6 = vadd.f32 1.0, %v4777_v3  ;;  %v2661_v63 = vadd.f32 %v2597_v25, %v7543_v47  ;;  %v2598_v58 = vmul.f32 0.044715, %v2534_v55  ;;  %v7612_v28 = vsel %vm3378_vm8, 1.0, %v4847_v12 }
 0x378   :  { %v4781_v20 = vpop.eup %4780  ;;  %v2913_v52 = vmul.f32 0.5, %v2849_v1  ;;  %v2850_v2 = vadd.f32 1.0, %v4779_v40  ;;  %v2659_v36 = vadd.f32 %v2595_v32, %v7548_v33  ;;  %v2596_v51 = vmul.f32 0.044715, %v2532_v53 }
 0x379   :  { %v2911_v19 = vmul.f32 0.5, %v2847_v6  ;;  %v2848_v43 = vadd.f32 1.0, %v4781_v20  ;;  %v2725_v29 = vmul.f32 0.7978846, %v2661_v63  ;;  %v2662_v59 = vadd.f32 %v2598_v58, %v7556_v60 }
 0x37a   :  { %v2914_v41 = vmul.f32 0.5, %v2850_v2  ;;  %v2723_v17 = vmul.f32 0.7978846, %v2659_v36  ;;  %v2660_v15 = vadd.f32 %v2596_v51, %v7567_v13  ;;  %v2977_v26 = vmul.f32 %v2913_v52, %v7480_v11 }
 0x37b   :  { %v2975_v7 = vmul.f32 %v2911_v19, %v7484_v34  ;;  %v2912_v21 = vmul.f32 0.5, %v2848_v43  ;;  %4782 = vtanh.f32 %v2725_v29  ;;  %v2726_v4 = vmul.f32 0.7978846, %v2662_v59 }
 0x37c   :  { %4784 = vtanh.f32 %v2723_v17  ;;  %v2724_v62 = vmul.f32 0.7978846, %v2660_v15  ;;  %v2978_v46 = vmul.f32 %v2914_v41, %v7492_v48  ;;  %vm3379_vm3 = vcmp.lt.s32.totalorder %v3050_v14, %v7053_v24 }
 0x37d   :  { %v3561_v38 = vmul.f32 %v7453_v10, %v2975_v7  ;;  %v2976_v9 = vmul.f32 %v2912_v21, %v7497_v57  ;;  %4786 = vtanh.f32 %v2726_v4  ;;  %v3051_v11 = vadd.s32 504, %v6555_v49 }
 0x37e   :  { %4788 = vtanh.f32 %v2724_v62  ;;  %v3640_v10 = vadd.f32 %v7083_v5, %v3639_v8  ;;  %v3563_v57 = vmul.f32 %v7474_v30, %v2977_v26  ;;  %v3717_v25 = vadd.f32 %v7612_v28, %v3716_v18 }
 0x37f   :  { %v3671_v34 = vadd.f32 %v3670_v37, %v3561_v38  ;;  %v3562_v61 = vmul.f32 %v7463_v0, %v2976_v9  ;;  %v3564_v37 = vmul.f32 %v7509_v45, %v2978_v46  ;;  %v7624_v55 = vsel %vm3379_vm3, 1.0, %v4847_v12 }
 0x380   :  { %vm3380_vm11 = vcmp.lt.s32.totalorder %v3051_v11, %v7053_v24  ;;  %v3641_v8 = vrot.slane %v3640_v10, 4  ;;  %v3718_v42 = vadd.f32 %v7624_v55, %v3717_v25  ;;  %vm3729_vm2 = vcmp.eq.s32.totalorder %v6555_v49, 1 }
 0x381   :  { %v3672_v54 = vadd.f32 %v3671_v34, %v3562_v61  ;;  %v4509_v23 = vpop.f32.mrb[156].mxu1  ;;  %v7647_v51 = vsel %vm3380_vm11, 1.0, %v4847_v12  ;;  %vm3733_vm10 = vcmask 1041408  }
 0x382   :  { %v7621_v0 = vadd.f32 %v7564_v56, %v4509_v23  ;;  %v2396_v31 = vpop.f32.mrb[157].mxu1  ;;  %v3719_v12 = vadd.f32 %v7647_v51, %v3718_v42  ;;  %v3642_v38 = vadd.f32 %v3641_v8, %v3640_v10 }
 0x383   :  { %v3673_v48 = vadd.f32 %v3672_v54, %v3563_v57  ;;  %v7627_v3 = vadd.f32 %v7564_v56, %v2396_v31  ;;  %v4510_v5 = vpop.f32.mrb[158].mxu1 }
 0x384   :  { %v2473_v45 = vmul.f32 %v7621_v0, %v7621_v0  ;;  %v7633_v32 = vadd.f32 %v7564_v56, %v4510_v5  ;;  %v2399_v53 = vpop.f32.mrb[159].mxu1  ;;  %v3720_v25 = vrot.slane %v3719_v12, 4  ;;  %v3643_v5 = vrot.slane %v3642_v38, 2 }
 0x385   :  { %v4783_v30 = vpop.eup %4782  ;;  %v3674_v1 = vadd.f32 %v3673_v48, %v3564_v37  ;;  %v2471_v63 = vmul.f32 %v7627_v3, %v7627_v3  ;;  %v7638_v58 = vadd.f32 %v7564_v56, %v2399_v53 }
 0x386   :  { %v4785_v40 = vpop.eup %4784  ;;  %v2853_v6 = vadd.f32 1.0, %v4783_v30  ;;  %v2537_v2 = vmul.f32 %v2473_v45, %v7621_v0  ;;  %v2474_v36 = vmul.f32 %v7633_v32, %v7633_v32  ;;  %v3644_v53 = vadd.f32 %v3643_v5, %v3642_v38 }
 0x387   :  { %v4787_v20 = vpop.eup %4786  ;;  %v2851_v52 = vadd.f32 1.0, %v4785_v40  ;;  %v2535_v56 = vmul.f32 %v2471_v63, %v7627_v3  ;;  %v2472_v59 = vmul.f32 %v7638_v58, %v7638_v58 }
 0x388   :  { %v4789_v19 = vpop.eup %4788  ;;  %v2917_v43 = vmul.f32 0.5, %v2853_v6  ;;  %v2854_v29 = vadd.f32 1.0, %v4787_v20  ;;  %v2601_v15 = vmul.f32 0.044715, %v2537_v2  ;;  %v2538_v44 = vmul.f32 %v2474_v36, %v7633_v32 }
 0x389   :  { %v2915_v41 = vmul.f32 0.5, %v2851_v52  ;;  %v2852_v17 = vadd.f32 1.0, %v4789_v19  ;;  %v2599_v21 = vmul.f32 0.044715, %v2535_v56  ;;  %v2536_v4 = vmul.f32 %v2472_v59, %v7638_v58 }
 0x38a   :  { %v2918_v7 = vmul.f32 0.5, %v2854_v29  ;;  %v2665_v14 = vadd.f32 %v2601_v15, %v7621_v0  ;;  %v2602_v26 = vmul.f32 0.044715, %v2538_v44  ;;  %v2981_v9 = vmul.f32 %v2917_v43, %v7543_v47 }
 0x38b   :  { %v2979_v24 = vmul.f32 %v2915_v41, %v7548_v33  ;;  %v2916_v62 = vmul.f32 0.5, %v2852_v17  ;;  %v2663_v18 = vadd.f32 %v2599_v21, %v7627_v3  ;;  %v2600_v34 = vmul.f32 0.044715, %v2536_v4 }
 0x38c   :  { %v2729_v11 = vmul.f32 0.7978846, %v2665_v14  ;;  %v2666_v57 = vadd.f32 %v2602_v26, %v7633_v32  ;;  %v2982_v54 = vmul.f32 %v2918_v7, %v7556_v60  ;;  %v3645_v42 = vrot.slane %v3644_v53, 1 }
 0x38d   :  { %v3565_v46 = vmul.f32 %v7518_v39, %v2979_v24  ;;  %v2980_v61 = vmul.f32 %v2916_v62, %v7567_v13  ;;  %v2727_v33 = vmul.f32 0.7978846, %v2663_v18  ;;  %v2664_v23 = vadd.f32 %v2600_v34, %v7638_v58 }
 0x38e   :  { %4790 = vtanh.f32 %v2729_v11  ;;  %v2730_v47 = vmul.f32 0.7978846, %v2666_v57  ;;  %v3567_v39 = vmul.f32 %v7578_v16, %v2981_v9  ;;  %v3721_v13 = vadd.f32 %v3720_v25, %v3719_v12 }
 0x38f   :  { %v3675_v37 = vadd.f32 %v3674_v1, %v3565_v46  ;;  %v3566_v10 = vmul.f32 %v7533_v50, %v2980_v61  ;;  %4792 = vtanh.f32 %v2727_v33  ;;  %v2728_v48 = vmul.f32 0.7978846, %v2664_v23 }
 0x390   :  { %4794 = vtanh.f32 %v2730_v47  ;;  %v3568_v60 = vmul.f32 %v7584_v35, %v2982_v54  ;;  %v3722_v45 = vrot.slane %v3721_v13, 2  ;;  %v3604_v2 = vrot.slane %v7242_v22, 4 }
 0x391   :  { %v3676_v31 = vadd.f32 %v3675_v37, %v3566_v10  ;;  %4796 = vtanh.f32 %v2728_v48  ;;  %v3646_v41 = vadd.f32 %v3645_v42, %v3644_v53  ;;  %v3741_v47 = vsub.s32 1, %v6555_v49 }
 0x392   :  { %v3723_v6 = vadd.f32 %v3722_v45, %v3721_v13  ;;  %v3605_v17 = vadd.f32 %v3604_v2, %v7242_v22  ;;  %v3746_v48 = vsub.s32 0, %v6555_v49 }
 0x393   :  { %v3677_v30 = vadd.f32 %v3676_v31, %v3567_v39  ;;  %v3647_v62 = vmax.f32 %v3646_v41, 1.0 }
 0x394   :  { %v3724_v29 = vrot.slane %v3723_v6, 1  ;;  %v3606_v14 = vrot.slane %v3605_v17, 2 }
 0x395   :  { %v3678_v8 = vadd.f32 %v3677_v30, %v3568_v60  ;;  %4798 = vrcp.f32 %v3647_v62 }
 0x396   :  { %v3725_v21 = vadd.f32 %v3724_v29, %v3723_v6 }
 0x398   :  { %v4791_v1 = vpop.eup %4790  ;;  %v3726_v38 = vmax.f32 %v3725_v21, 1.0 }
 0x399   :  { %v4793_v40 = vpop.eup %4792  ;;  %v2857_v50 = vadd.f32 1.0, %v4791_v1 }
 0x39a   :  { %v4795_v63 = vpop.eup %4794  ;;  %v2855_v20 = vadd.f32 1.0, %v4793_v40  ;;  %4800 = vrcp.f32 %v3726_v38 }
 0x39b   :  { %v4797_v52 = vpop.eup %4796  ;;  %v2858_v16 = vadd.f32 1.0, %v4795_v63  ;;  %v2921_v36 = vmul.f32 0.5, %v2857_v50 }
 0x39c   :  { %v2919_v19 = vmul.f32 0.5, %v2855_v20  ;;  %v2856_v43 = vadd.f32 1.0, %v4797_v52 }
 0x39d   :  { %v2922_v56 = vmul.f32 0.5, %v2858_v16  ;;  %v2985_v15 = vmul.f32 %v2921_v36, %v7621_v0  ;;  %v3607_v0 = vadd.f32 %v3606_v14, %v3605_v17 }
 0x39e   :  { %v2983_v35 = vmul.f32 %v2919_v19, %v7627_v3  ;;  %v2920_v59 = vmul.f32 0.5, %v2856_v43 }
 0x39f   :  { %v2986_v12 = vmul.f32 %v2922_v56, %v7633_v32  ;;  %v3571_v3 = vmul.f32 %v7624_v55, %v2985_v15  ;;  %v3608_v18 = vrot.slane %v3607_v0, 1  ;;  %v4799_v61 = vpop.eup %4798 }
 0x3a0   :  { %v3569_v44 = vmul.f32 %v7594_v27, %v2983_v35  ;;  %v2984_v7 = vmul.f32 %v2920_v59, %v7638_v58 }
 0x3a1   :  { %v3572_v22 = vmul.f32 %v7647_v51, %v2986_v12  ;;  %v3609_v32 = vadd.f32 %v3608_v18, %v3607_v0 }
 0x3a2   :  { %v3679_v4 = vadd.f32 %v3678_v8, %v3569_v44  ;;  %v3570_v24 = vmul.f32 %v7612_v28, %v2984_v7 }
 0x3a3   :  { %v3649_v54 = vmul.f32 %v4799_v61, %v3609_v32 }
 0x3a4   :  { %v3680_v26 = vadd.f32 %v3679_v4, %v3570_v24  ;;  %v4801_v57 = vpop.eup %4800 }
 0x3a5   :  { %v3651_v33 = vsel %vm3650_vm12, %v3649_v54, 0.0 }
 0x3a6   :  { %v3681_v9 = vadd.f32 %v3680_v26, %v3571_v3 }
 0x3a8   :  { %v3682_v27 = vadd.f32 %v3681_v9, %v3572_v22 }
 0x3aa   :  { %v3683_v58 = vrot.slane %v3682_v27, 4 }
 0x3ac   :  { %v3684_v34 = vadd.f32 %v3683_v58, %v3682_v27 }
 0x3ae   :  { %v3685_v46 = vrot.slane %v3684_v34, 2 }
 0x3b0   :  { %v3686_v28 = vadd.f32 %v3685_v46, %v3684_v34 }
 0x3b2   :  { %v3687_v11 = vrot.slane %v3686_v28, 1 }
 0x3b4   :  { %v3688_v55 = vadd.f32 %v3687_v11, %v3686_v28 }
 0x3b6   :  { %v3728_v51 = vmul.f32 %v4801_v57, %v3688_v55 }
 0x3b8   :  { %v3730_v23 = vsel %vm3729_vm2, %v3728_v51, %v3651_v33 }
 0x3b9   :  { %v3732_v25 = vmul.f32 %v3730_v23, %v3730_v23  ;;  %3731 = vst [vmem:[#allocation4] sm:$0x3] %v3730_v23 }
 0x3bb   :  { %v3734_v37 = vsel %vm3733_vm10, %v3732_v25, 0.0 }
 0x3bc   :  { %3735 = vadd.xlane.f32.xlu0 %v3734_v37 }
 0x449   :  { %v3736_v10 = vpop.xlane.xlu0 %3735 }
 0x44a   :  { %4802 = vrsqrt.f32 %v3736_v10 }
 0x454   :  { %v4803_v39 = vpop.eup %4802 }
 0x455   :  { %v3738_v31 = vmul.f32 %v4803_v39, %v3730_v23 }
 0x457   :  { %v3742_v13 = vrot.slane %v3738_v31, %v3741_v47  ;;  %v3747_v5 = vrot.slane %v3738_v31, %v3746_v48 }
 0x459   :  { %v3743_v60 = vsel %vm3650_vm12, %v3742_v13, 0.0 }
 0x45a   :  { %v3748_v30 = vsel %vm3729_vm2, %v3747_v5, %v3743_v60 }
 0x45b   :  { %v3749_v8 = vmul.f32 %v3748_v30, %v3738_v31 }
 0x45d   :  { %v3750_v45 = vsel %vm3733_vm10, %v3749_v8, 0.0 }
 0x45e   :  { %3751 = vadd.xlane.f32.xlu1 %v3750_v45 }
 0x45f   :  { %4829 = shalt.err (!%p4826_p11)
}
 0x460   :  { %s4830_s16 = scalar_lea.hbm %s7711_s5, 32 }
 0x461   :  { %p4831_p12 = scmp.ne.s32.totalorder %s7711_s5, %s4830_s16  ;;  %p4834_p13 = scmp.lt.u32.totalorder %s4830_s16, %s7711_s5 }
 0x463   :  { %p4836_p0 = pnand %p4834_p13, %p4831_p12 }
 0x465   :  { %4839 = shalt.err (!%p4836_p0)
}
 0x466   :  { %3764 = dma.vmem_to_hbm [thread:$0]  %s3762_s13, 32, %s7711_s5, [#allocation5]   ;;  %vm3753_vm7 = vcmask 1024  }
 0x4eb   :  { %v3752_v49 = vpop.xlane.xlu1 %3751 }
 0x4ec   :  { %3754 = vst.msk [vmem:[%s7712_s6] sm:$0x3] %vm3753_vm7, %v3752_v49 }
 0x4ed   :  { %4842 = dma.done.wait [#allocation5], 32  }
 0x4ee   :  { %4843 = vsyncadd [#allocation5], 4294967264 }
 0x4ef   :  { %3772 = vsyncpa [#allocation5], 1 }

</bundles_post_ra>
